<compile_context>
chip_gen: v6e
topology: v6e:2x2x1
jax: 0.10.0
libtpu: 0.0.40
codegen_flags: <defaults>
</compile_context>

<pallas_src>
import jax
import jax.numpy as jnp
from jax import lax
from jax.experimental import pallas as pl
from jax.experimental.pallas import tpu as pltpu


def kws_kernel(x_ref,        # (T*B, D)    flattened sequence
               wi1_ref,      # (D, 3*HP)   layer-1 input weights  [r|z|n], lane-padded
               b1_ref,       # (1, 3*HP)   [bi_r+bh_r | bi_z+bh_z | bi_n]
               bh1n_ref,     # (1, HP)     layer-1 bh_n (stays inside r*(...))
               wf_ref,       # (HP, 6*HP)  fused [wi2 | wh1]
               wh2_ref,      # (HP, 3*HP)
               b2_ref,       # (1, 3*HP)
               bh2n_ref,     # (1, HP)
               wc_ref,       # (HP, KP)    hidden2keyword (zero-padded)
               bc_ref,       # (1, KP)     pad columns = -1e30
               out_ref):     # (B, KP)     log-softmax scores
    TB, _ = x_ref.shape
    B, KP = out_ref.shape
    T = TB // B
    HP = bh1n_ref.shape[1]        # 128 (per-gate lane tile)
    G2 = 2 * HP
    G3 = 3 * HP

    # --- Hoisted layer-1 input projection: one big MXU matmul, bias folded ---
    xproj = jnp.dot(x_ref[...], wi1_ref[...],
                    preferred_element_type=jnp.float32) + b1_ref[...]   # (T*B, 3HP)

    # Hoist weight / (pre-broadcast) bias loads out of the recurrence.
    wf = wf_ref[...]
    wh2 = wh2_ref[...]
    b2 = jnp.broadcast_to(b2_ref[...], (B, G3))
    bh1n = jnp.broadcast_to(bh1n_ref[...], (B, HP))
    bh2n = jnp.broadcast_to(bh2n_ref[...], (B, HP))

    # init_hidden(): state cleared.  hh1 = h1_{t-1} @ W_hh1 is carried
    # (pre-computed by the previous step's fused matmul); zero at t=0.
    h1 = jnp.zeros((B, HP), jnp.float32)
    h2 = jnp.zeros((B, HP), jnp.float32)
    hh1 = jnp.zeros((B, G3), jnp.float32)

    # TODO(synk): for long sequences switch to lax.fori_loop with a partial
    # unroll (4-8) and a T-tiled / double-buffered projection pipeline; the
    # fully-unrolled static loop is right for small T.
    for t in range(T):
        # Layer-2 recurrent matmul depends only on h2: issue it first so it
        # overlaps the whole layer-1 gate chain (off the critical path).
        hh2 = jnp.dot(h2, wh2, preferred_element_type=jnp.float32)       # (B, 3HP)

        xp = xproj[t * B:(t + 1) * B, :]                                 # (B, 3HP)

        # ---- layer 1 GRU cell (PyTorch gate order r, z, n) ----
        rz1 = jax.nn.sigmoid(xp[:, :G2] + hh1[:, :G2])                   # 1 EUP op
        r1 = rz1[:, :HP]
        z1 = rz1[:, HP:G2]
        n1 = jnp.tanh(xp[:, G2:G3] + r1 * (hh1[:, G2:G3] + bh1n))
        h1 = (1.0 - z1) * n1 + z1 * h1

        # Fused MXU call: layer-2 input projection for THIS step + layer-1
        # recurrent projection for the NEXT step (shared LHS h1).
        f = jnp.dot(h1, wf, preferred_element_type=jnp.float32)          # (B, 6HP)
        ip2 = f[:, :G3] + b2
        hh1 = f[:, G3:]                                                  # for t+1

        # ---- layer 2 GRU cell ----
        rz2 = jax.nn.sigmoid(ip2[:, :G2] + hh2[:, :G2])
        r2 = rz2[:, :HP]
        z2 = rz2[:, HP:G2]
        n2 = jnp.tanh(ip2[:, G2:G3] + r2 * (hh2[:, G2:G3] + bh2n))
        h2 = (1.0 - z2) * n2 + z2 * h2

    # hidden2keyword linear on the last timestep + log_softmax over the
    # lane-dense (K-padded) keyword axis.  Pad logits are -1e30 -> exp()==0,
    # so the softmax denominator only sees the real keywords.
    logits = jnp.dot(h2, wc_ref[...],
                     preferred_element_type=jnp.float32) + bc_ref[...]
    m = jnp.max(logits, axis=-1, keepdims=True)
    e = jnp.exp(logits - m)
    out_ref[...] = (logits - m) - jnp.log(jnp.sum(e, axis=-1, keepdims=True))


def keyword_spotter_forward(x, params):
    """x: (T, B, D) float32 -> (B, K) log-probabilities."""
    T, B, D = x.shape
    H = params["wh1"].shape[2]
    K = params["wc"].shape[1]

    HP = 128                                  # per-gate lane tile (aligned slices)
    KP = ((K + 127) // 128) * 128             # lane-dense output
    Bp = max(8, ((B + 7) // 8) * 8)           # sublane-aligned batch

    if Bp != B:
        x = jnp.pad(x, ((0, 0), (0, Bp - B), (0, 0)))

    def pad_lanes(a, width):
        return jnp.pad(a, ((0, 0), (0, width - a.shape[1])))

    def stack_w(w, pad_rows):
        # (3, A, H) -> (A or HP, 3*HP): gate g occupies lanes [g*HP, g*HP+H).
        g = jnp.concatenate([pad_lanes(w[0], HP), pad_lanes(w[1], HP),
                             pad_lanes(w[2], HP)], axis=-1)
        if pad_rows:
            g = jnp.pad(g, ((0, HP - g.shape[0]), (0, 0)))
        return g

    def stack_b(bi, bh):
        # Pre-sum input/hidden biases for r and z; bh_n stays separate
        # (PyTorch n-gate: tanh(i_n + b_in + r * (h@W_hn + b_hn))).
        b = jnp.concatenate([pad_lanes(bi[0] + bh[0], HP),
                             pad_lanes(bi[1] + bh[1], HP),
                             pad_lanes(bi[2], HP)], axis=-1)
        return b, pad_lanes(bh[2], HP)

    wi1 = stack_w(params["wi1"], pad_rows=False)           # (D, 3*HP)
    wh1 = stack_w(params["wh1"], pad_rows=True)            # (HP, 3*HP)
    wi2 = stack_w(params["wi2"], pad_rows=True)            # (HP, 3*HP)
    wh2 = stack_w(params["wh2"], pad_rows=True)            # (HP, 3*HP)
    wf = jnp.concatenate([wi2, wh1], axis=-1)              # (HP, 6*HP) fused slab
    b1, bh1n = stack_b(params["bi1"], params["bh1"])
    b2, bh2n = stack_b(params["bi2"], params["bh2"])

    # Classifier: zero-pad rows/cols; pad bias columns to -1e30 so the padded
    # logits vanish in the softmax sum.
    wc = jnp.pad(params["wc"], ((0, HP - H), (0, KP - K)))
    bc = jnp.pad(params["bc"], ((0, 0), (0, KP - K)), constant_values=-1e30)

    x2 = x.reshape(T * Bp, D)

    args = (x2, wi1, b1, bh1n, wf, wh2, b2, bh2n, wc, bc)
    vmem = pl.BlockSpec(memory_space=pltpu.MemorySpace.VMEM)

    flops = (2 * T * Bp * D * 3 * HP                 # hoisted layer-1 input proj
             + T * (2 * Bp * HP * 6 * HP             # fused wi2|wh1 matmul / step
                    + 2 * Bp * HP * 3 * HP)          # hh2 matmul / step
             + 2 * Bp * HP * KP)                     # classifier
    transc = T * 6 * Bp * HP                         # sigmoid + tanh lanes / step
    nbytes = 4 * (sum(int(a.size) for a in args) + Bp * KP)
    cost = pl.CostEstimate(flops=flops, transcendentals=transc,
                           bytes_accessed=nbytes)

    # TODO(synk): at production T/B, tile the sequence over a grid axis (and
    # split batch over a "parallel" axis for v7x's second TensorCore) instead
    # of this single grid-less call; fine at small shapes.
    out = pl.pallas_call(
        kws_kernel,
        out_shape=jax.ShapeDtypeStruct((Bp, KP), jnp.float32),
        in_specs=[vmem] * len(args),
        out_specs=vmem,
        cost_estimate=cost,
    )(*args)
    return out[:B, :K]


def init_params(key, D, H, K):
    """Deterministic init, PyTorch-style U(-1/sqrt(H), 1/sqrt(H))."""
    ks = jax.random.split(key, 11)
    bnd = 1.0 / float(H) ** 0.5

    def u(k, shape):
        return jax.random.uniform(k, shape, jnp.float32, -bnd, bnd)

    return {
        # layer 1 GRU: input D -> hidden H   (gates stacked [r, z, n])
        "wi1": u(ks[0], (3, D, H)), "wh1": u(ks[1], (3, H, H)),
        "bi1": u(ks[2], (3, 1, H)), "bh1": u(ks[3], (3, 1, H)),
        # layer 2 GRU: hidden H -> hidden H
        "wi2": u(ks[4], (3, H, H)), "wh2": u(ks[5], (3, H, H)),
        "bi2": u(ks[6], (3, 1, H)), "bh2": u(ks[7], (3, 1, H)),
        # hidden2keyword linear
        "wc": u(ks[8], (H, K)), "bc": u(ks[9], (1, K)),
    }


def reference_forward(x, p):
    """Pure-JAX reference with identical (PyTorch GRU) semantics."""
    def gru_layer(xs, wi, wh, bi, bh):
        B = xs.shape[1]
        H = wh.shape[2]

        def cell(h, x_t):
            i_r = x_t @ wi[0] + bi[0]
            i_z = x_t @ wi[1] + bi[1]
            i_n = x_t @ wi[2] + bi[2]
            h_r = h @ wh[0] + bh[0]
            h_z = h @ wh[1] + bh[1]
            h_n = h @ wh[2] + bh[2]
            r = jax.nn.sigmoid(i_r + h_r)
            z = jax.nn.sigmoid(i_z + h_z)
            n = jnp.tanh(i_n + r * h_n)
            h_new = (1.0 - z) * n + z * h
            return h_new, h_new

        h0 = jnp.zeros((B, H), jnp.float32)
        h_last, hs = lax.scan(cell, h0, xs)
        return hs, h_last

    hs1, _ = gru_layer(x, p["wi1"], p["wh1"], p["bi1"], p["bh1"])
    _, h2_last = gru_layer(hs1, p["wi2"], p["wh2"], p["bi2"], p["bh2"])
    logits = h2_last @ p["wc"] + p["bc"]
    return jax.nn.log_softmax(logits, axis=-1)


if __name__ == "__main__":
    T, B, D = 8, 2, 32          # seq_len, batch, input_dim
    H, K = 32, 10               # hidden_units, num_keywords

    key = jax.random.PRNGKey(0)
    kx, kp = jax.random.split(key)
    x = jax.random.normal(kx, (T, B, D), jnp.float32)
    params = init_params(kp, D, H, K)

    out = keyword_spotter_forward(x, params)
    out = jax.block_until_ready(out)

    ref = jax.block_until_ready(reference_forward(x, params))
    assert out.shape == (B, K)
    assert jnp.allclose(out, ref, rtol=1e-4, atol=1e-4), (out, ref)

    print("KERNEL_OK")
</pallas_src>

<mosaic_0001>
module attributes {stable_mosaic.version = 11 : i64} {
  func.func @kws_kernel(%arg0: memref<64x32xf32, #tpu.memory_space<vmem>>, %arg1: memref<32x384xf32, #tpu.memory_space<vmem>>, %arg2: memref<1x384xf32, #tpu.memory_space<vmem>>, %arg3: memref<1x128xf32, #tpu.memory_space<vmem>>, %arg4: memref<128x768xf32, #tpu.memory_space<vmem>>, %arg5: memref<128x384xf32, #tpu.memory_space<vmem>>, %arg6: memref<1x384xf32, #tpu.memory_space<vmem>>, %arg7: memref<1x128xf32, #tpu.memory_space<vmem>>, %arg8: memref<128x128xf32, #tpu.memory_space<vmem>>, %arg9: memref<1x128xf32, #tpu.memory_space<vmem>>, %arg10: memref<8x128xf32, #tpu.memory_space<vmem>>) attributes {dimension_semantics = [], scalar_prefetch = 0 : i64, scratch_operands = 0 : i64, tpu.core_type = #tpu.core_type<tc>} {
    %c0 = arith.constant 0 : index
    %c0_0 = arith.constant 0 : index
    %0 = vector.load %arg0[%c0, %c0_0] : memref<64x32xf32, #tpu.memory_space<vmem>>, vector<64x32xf32>
    %c0_1 = arith.constant 0 : index
    %c0_2 = arith.constant 0 : index
    %1 = vector.load %arg1[%c0_1, %c0_2] : memref<32x384xf32, #tpu.memory_space<vmem>>, vector<32x384xf32>
    %cst = arith.constant dense<0.000000e+00> : vector<64x384xf32>
    %2 = tpu.matmul %0, %1, %cst {dimension_numbers = #tpu.dot_dimension_numbers<[1], [0], [0], [1], [0, 0, 1, 1], [], []>} : vector<64x32xf32>, vector<32x384xf32>, vector<64x384xf32> -> vector<64x384xf32>
    %c0_3 = arith.constant 0 : index
    %c0_4 = arith.constant 0 : index
    %3 = vector.load %arg2[%c0_3, %c0_4] : memref<1x384xf32, #tpu.memory_space<vmem>>, vector<1x384xf32>
    %4 = vector.broadcast %3 : vector<1x384xf32> to vector<64x384xf32>
    %5 = arith.addf %2, %4 : vector<64x384xf32>
    %c0_5 = arith.constant 0 : index
    %c0_6 = arith.constant 0 : index
    %6 = vector.load %arg4[%c0_5, %c0_6] : memref<128x768xf32, #tpu.memory_space<vmem>>, vector<128x768xf32>
    %c0_7 = arith.constant 0 : index
    %c0_8 = arith.constant 0 : index
    %7 = vector.load %arg5[%c0_7, %c0_8] : memref<128x384xf32, #tpu.memory_space<vmem>>, vector<128x384xf32>
    %c0_9 = arith.constant 0 : index
    %c0_10 = arith.constant 0 : index
    %8 = vector.load %arg6[%c0_9, %c0_10] : memref<1x384xf32, #tpu.memory_space<vmem>>, vector<1x384xf32>
    %9 = vector.shape_cast %8 : vector<1x384xf32> to vector<1x384xf32>
    %10 = vector.broadcast %9 : vector<1x384xf32> to vector<8x384xf32>
    %c0_11 = arith.constant 0 : index
    %c0_12 = arith.constant 0 : index
    %11 = vector.load %arg3[%c0_11, %c0_12] : memref<1x128xf32, #tpu.memory_space<vmem>>, vector<1x128xf32>
    %12 = vector.shape_cast %11 : vector<1x128xf32> to vector<1x128xf32>
    %13 = vector.broadcast %12 : vector<1x128xf32> to vector<8x128xf32>
    %c0_13 = arith.constant 0 : index
    %c0_14 = arith.constant 0 : index
    %14 = vector.load %arg7[%c0_13, %c0_14] : memref<1x128xf32, #tpu.memory_space<vmem>>, vector<1x128xf32>
    %15 = vector.shape_cast %14 : vector<1x128xf32> to vector<1x128xf32>
    %16 = vector.broadcast %15 : vector<1x128xf32> to vector<8x128xf32>
    %cst_15 = arith.constant 0.000000e+00 : f32
    %17 = vector.broadcast %cst_15 : f32 to vector<8x128xf32>
    %cst_16 = arith.constant 0.000000e+00 : f32
    %18 = vector.broadcast %cst_16 : f32 to vector<8x128xf32>
    %cst_17 = arith.constant 0.000000e+00 : f32
    %19 = vector.broadcast %cst_17 : f32 to vector<8x384xf32>
    %cst_18 = arith.constant dense<0.000000e+00> : vector<8x384xf32>
    %20 = tpu.matmul %18, %7, %cst_18 {dimension_numbers = #tpu.dot_dimension_numbers<[1], [0], [0], [1], [0, 0, 1, 1], [], []>} : vector<8x128xf32>, vector<128x384xf32>, vector<8x384xf32> -> vector<8x384xf32>
    %21 = vector.extract_strided_slice %5 {offsets = [0, 0], sizes = [8, 384], strides = [1, 1]} : vector<64x384xf32> to vector<8x384xf32>
    %22 = vector.extract_strided_slice %21 {offsets = [0, 0], sizes = [8, 256], strides = [1, 1]} : vector<8x384xf32> to vector<8x256xf32>
    %23 = vector.extract_strided_slice %19 {offsets = [0, 0], sizes = [8, 256], strides = [1, 1]} : vector<8x384xf32> to vector<8x256xf32>
    %24 = arith.addf %22, %23 : vector<8x256xf32>
    %25 = arith.negf %24 : vector<8x256xf32>
    %26 = math.exp %25 : vector<8x256xf32>
    %cst_19 = arith.constant 1.000000e+00 : f32
    %27 = vector.broadcast %cst_19 : f32 to vector<8x256xf32>
    %28 = arith.addf %27, %26 : vector<8x256xf32>
    %29 = arith.divf %27, %28 : vector<8x256xf32>
    %30 = vector.extract_strided_slice %29 {offsets = [0, 0], sizes = [8, 128], strides = [1, 1]} : vector<8x256xf32> to vector<8x128xf32>
    %31 = vector.extract_strided_slice %29 {offsets = [0, 128], sizes = [8, 128], strides = [1, 1]} : vector<8x256xf32> to vector<8x128xf32>
    %32 = vector.extract_strided_slice %21 {offsets = [0, 256], sizes = [8, 128], strides = [1, 1]} : vector<8x384xf32> to vector<8x128xf32>
    %33 = vector.extract_strided_slice %19 {offsets = [0, 256], sizes = [8, 128], strides = [1, 1]} : vector<8x384xf32> to vector<8x128xf32>
    %34 = arith.addf %33, %13 : vector<8x128xf32>
    %35 = arith.mulf %30, %34 : vector<8x128xf32>
    %36 = arith.addf %32, %35 : vector<8x128xf32>
    %37 = math.tanh %36 : vector<8x128xf32>
    %cst_20 = arith.constant 1.000000e+00 : f32
    %38 = vector.broadcast %cst_20 : f32 to vector<8x128xf32>
    %39 = arith.subf %38, %31 : vector<8x128xf32>
    %40 = arith.mulf %39, %37 : vector<8x128xf32>
    %41 = arith.mulf %31, %17 : vector<8x128xf32>
    %42 = arith.addf %40, %41 : vector<8x128xf32>
    %cst_21 = arith.constant dense<0.000000e+00> : vector<8x768xf32>
    %43 = tpu.matmul %42, %6, %cst_21 {dimension_numbers = #tpu.dot_dimension_numbers<[1], [0], [0], [1], [0, 0, 1, 1], [], []>} : vector<8x128xf32>, vector<128x768xf32>, vector<8x768xf32> -> vector<8x768xf32>
    %44 = vector.extract_strided_slice %43 {offsets = [0, 0], sizes = [8, 384], strides = [1, 1]} : vector<8x768xf32> to vector<8x384xf32>
    %45 = arith.addf %44, %10 : vector<8x384xf32>
    %46 = vector.extract_strided_slice %43 {offsets = [0, 384], sizes = [8, 384], strides = [1, 1]} : vector<8x768xf32> to vector<8x384xf32>
    %47 = vector.extract_strided_slice %45 {offsets = [0, 0], sizes = [8, 256], strides = [1, 1]} : vector<8x384xf32> to vector<8x256xf32>
    %48 = vector.extract_strided_slice %20 {offsets = [0, 0], sizes = [8, 256], strides = [1, 1]} : vector<8x384xf32> to vector<8x256xf32>
    %49 = arith.addf %47, %48 : vector<8x256xf32>
    %50 = arith.negf %49 : vector<8x256xf32>
    %51 = math.exp %50 : vector<8x256xf32>
    %cst_22 = arith.constant 1.000000e+00 : f32
    %52 = vector.broadcast %cst_22 : f32 to vector<8x256xf32>
    %53 = arith.addf %52, %51 : vector<8x256xf32>
    %54 = arith.divf %52, %53 : vector<8x256xf32>
    %55 = vector.extract_strided_slice %54 {offsets = [0, 0], sizes = [8, 128], strides = [1, 1]} : vector<8x256xf32> to vector<8x128xf32>
    %56 = vector.extract_strided_slice %54 {offsets = [0, 128], sizes = [8, 128], strides = [1, 1]} : vector<8x256xf32> to vector<8x128xf32>
    %57 = vector.extract_strided_slice %45 {offsets = [0, 256], sizes = [8, 128], strides = [1, 1]} : vector<8x384xf32> to vector<8x128xf32>
    %58 = vector.extract_strided_slice %20 {offsets = [0, 256], sizes = [8, 128], strides = [1, 1]} : vector<8x384xf32> to vector<8x128xf32>
    %59 = arith.addf %58, %16 : vector<8x128xf32>
    %60 = arith.mulf %55, %59 : vector<8x128xf32>
    %61 = arith.addf %57, %60 : vector<8x128xf32>
    %62 = math.tanh %61 : vector<8x128xf32>
    %cst_23 = arith.constant 1.000000e+00 : f32
    %63 = vector.broadcast %cst_23 : f32 to vector<8x128xf32>
    %64 = arith.subf %63, %56 : vector<8x128xf32>
    %65 = arith.mulf %64, %62 : vector<8x128xf32>
    %66 = arith.mulf %56, %18 : vector<8x128xf32>
    %67 = arith.addf %65, %66 : vector<8x128xf32>
    %cst_24 = arith.constant dense<0.000000e+00> : vector<8x384xf32>
    %68 = tpu.matmul %67, %7, %cst_24 {dimension_numbers = #tpu.dot_dimension_numbers<[1], [0], [0], [1], [0, 0, 1, 1], [], []>} : vector<8x128xf32>, vector<128x384xf32>, vector<8x384xf32> -> vector<8x384xf32>
    %69 = vector.extract_strided_slice %5 {offsets = [8, 0], sizes = [8, 384], strides = [1, 1]} : vector<64x384xf32> to vector<8x384xf32>
    %70 = vector.extract_strided_slice %69 {offsets = [0, 0], sizes = [8, 256], strides = [1, 1]} : vector<8x384xf32> to vector<8x256xf32>
    %71 = vector.extract_strided_slice %46 {offsets = [0, 0], sizes = [8, 256], strides = [1, 1]} : vector<8x384xf32> to vector<8x256xf32>
    %72 = arith.addf %70, %71 : vector<8x256xf32>
    %73 = arith.negf %72 : vector<8x256xf32>
    %74 = math.exp %73 : vector<8x256xf32>
    %cst_25 = arith.constant 1.000000e+00 : f32
    %75 = vector.broadcast %cst_25 : f32 to vector<8x256xf32>
    %76 = arith.addf %75, %74 : vector<8x256xf32>
    %77 = arith.divf %75, %76 : vector<8x256xf32>
    %78 = vector.extract_strided_slice %77 {offsets = [0, 0], sizes = [8, 128], strides = [1, 1]} : vector<8x256xf32> to vector<8x128xf32>
    %79 = vector.extract_strided_slice %77 {offsets = [0, 128], sizes = [8, 128], strides = [1, 1]} : vector<8x256xf32> to vector<8x128xf32>
    %80 = vector.extract_strided_slice %69 {offsets = [0, 256], sizes = [8, 128], strides = [1, 1]} : vector<8x384xf32> to vector<8x128xf32>
    %81 = vector.extract_strided_slice %46 {offsets = [0, 256], sizes = [8, 128], strides = [1, 1]} : vector<8x384xf32> to vector<8x128xf32>
    %82 = arith.addf %81, %13 : vector<8x128xf32>
    %83 = arith.mulf %78, %82 : vector<8x128xf32>
    %84 = arith.addf %80, %83 : vector<8x128xf32>
    %85 = math.tanh %84 : vector<8x128xf32>
    %cst_26 = arith.constant 1.000000e+00 : f32
    %86 = vector.broadcast %cst_26 : f32 to vector<8x128xf32>
    %87 = arith.subf %86, %79 : vector<8x128xf32>
    %88 = arith.mulf %87, %85 : vector<8x128xf32>
    %89 = arith.mulf %79, %42 : vector<8x128xf32>
    %90 = arith.addf %88, %89 : vector<8x128xf32>
    %cst_27 = arith.constant dense<0.000000e+00> : vector<8x768xf32>
    %91 = tpu.matmul %90, %6, %cst_27 {dimension_numbers = #tpu.dot_dimension_numbers<[1], [0], [0], [1], [0, 0, 1, 1], [], []>} : vector<8x128xf32>, vector<128x768xf32>, vector<8x768xf32> -> vector<8x768xf32>
    %92 = vector.extract_strided_slice %91 {offsets = [0, 0], sizes = [8, 384], strides = [1, 1]} : vector<8x768xf32> to vector<8x384xf32>
    %93 = arith.addf %92, %10 : vector<8x384xf32>
    %94 = vector.extract_strided_slice %91 {offsets = [0, 384], sizes = [8, 384], strides = [1, 1]} : vector<8x768xf32> to vector<8x384xf32>
    %95 = vector.extract_strided_slice %93 {offsets = [0, 0], sizes = [8, 256], strides = [1, 1]} : vector<8x384xf32> to vector<8x256xf32>
    %96 = vector.extract_strided_slice %68 {offsets = [0, 0], sizes = [8, 256], strides = [1, 1]} : vector<8x384xf32> to vector<8x256xf32>
    %97 = arith.addf %95, %96 : vector<8x256xf32>
    %98 = arith.negf %97 : vector<8x256xf32>
    %99 = math.exp %98 : vector<8x256xf32>
    %cst_28 = arith.constant 1.000000e+00 : f32
    %100 = vector.broadcast %cst_28 : f32 to vector<8x256xf32>
    %101 = arith.addf %100, %99 : vector<8x256xf32>
    %102 = arith.divf %100, %101 : vector<8x256xf32>
    %103 = vector.extract_strided_slice %102 {offsets = [0, 0], sizes = [8, 128], strides = [1, 1]} : vector<8x256xf32> to vector<8x128xf32>
    %104 = vector.extract_strided_slice %102 {offsets = [0, 128], sizes = [8, 128], strides = [1, 1]} : vector<8x256xf32> to vector<8x128xf32>
    %105 = vector.extract_strided_slice %93 {offsets = [0, 256], sizes = [8, 128], strides = [1, 1]} : vector<8x384xf32> to vector<8x128xf32>
    %106 = vector.extract_strided_slice %68 {offsets = [0, 256], sizes = [8, 128], strides = [1, 1]} : vector<8x384xf32> to vector<8x128xf32>
    %107 = arith.addf %106, %16 : vector<8x128xf32>
    %108 = arith.mulf %103, %107 : vector<8x128xf32>
    %109 = arith.addf %105, %108 : vector<8x128xf32>
    %110 = math.tanh %109 : vector<8x128xf32>
    %cst_29 = arith.constant 1.000000e+00 : f32
    %111 = vector.broadcast %cst_29 : f32 to vector<8x128xf32>
    %112 = arith.subf %111, %104 : vector<8x128xf32>
    %113 = arith.mulf %112, %110 : vector<8x128xf32>
    %114 = arith.mulf %104, %67 : vector<8x128xf32>
    %115 = arith.addf %113, %114 : vector<8x128xf32>
    %cst_30 = arith.constant dense<0.000000e+00> : vector<8x384xf32>
    %116 = tpu.matmul %115, %7, %cst_30 {dimension_numbers = #tpu.dot_dimension_numbers<[1], [0], [0], [1], [0, 0, 1, 1], [], []>} : vector<8x128xf32>, vector<128x384xf32>, vector<8x384xf32> -> vector<8x384xf32>
    %117 = vector.extract_strided_slice %5 {offsets = [16, 0], sizes = [8, 384], strides = [1, 1]} : vector<64x384xf32> to vector<8x384xf32>
    %118 = vector.extract_strided_slice %117 {offsets = [0, 0], sizes = [8, 256], strides = [1, 1]} : vector<8x384xf32> to vector<8x256xf32>
    %119 = vector.extract_strided_slice %94 {offsets = [0, 0], sizes = [8, 256], strides = [1, 1]} : vector<8x384xf32> to vector<8x256xf32>
    %120 = arith.addf %118, %119 : vector<8x256xf32>
    %121 = arith.negf %120 : vector<8x256xf32>
    %122 = math.exp %121 : vector<8x256xf32>
    %cst_31 = arith.constant 1.000000e+00 : f32
    %123 = vector.broadcast %cst_31 : f32 to vector<8x256xf32>
    %124 = arith.addf %123, %122 : vector<8x256xf32>
    %125 = arith.divf %123, %124 : vector<8x256xf32>
    %126 = vector.extract_strided_slice %125 {offsets = [0, 0], sizes = [8, 128], strides = [1, 1]} : vector<8x256xf32> to vector<8x128xf32>
    %127 = vector.extract_strided_slice %125 {offsets = [0, 128], sizes = [8, 128], strides = [1, 1]} : vector<8x256xf32> to vector<8x128xf32>
    %128 = vector.extract_strided_slice %117 {offsets = [0, 256], sizes = [8, 128], strides = [1, 1]} : vector<8x384xf32> to vector<8x128xf32>
    %129 = vector.extract_strided_slice %94 {offsets = [0, 256], sizes = [8, 128], strides = [1, 1]} : vector<8x384xf32> to vector<8x128xf32>
    %130 = arith.addf %129, %13 : vector<8x128xf32>
    %131 = arith.mulf %126, %130 : vector<8x128xf32>
    %132 = arith.addf %128, %131 : vector<8x128xf32>
    %133 = math.tanh %132 : vector<8x128xf32>
    %cst_32 = arith.constant 1.000000e+00 : f32
    %134 = vector.broadcast %cst_32 : f32 to vector<8x128xf32>
    %135 = arith.subf %134, %127 : vector<8x128xf32>
    %136 = arith.mulf %135, %133 : vector<8x128xf32>
    %137 = arith.mulf %127, %90 : vector<8x128xf32>
    %138 = arith.addf %136, %137 : vector<8x128xf32>
    %cst_33 = arith.constant dense<0.000000e+00> : vector<8x768xf32>
    %139 = tpu.matmul %138, %6, %cst_33 {dimension_numbers = #tpu.dot_dimension_numbers<[1], [0], [0], [1], [0, 0, 1, 1], [], []>} : vector<8x128xf32>, vector<128x768xf32>, vector<8x768xf32> -> vector<8x768xf32>
    %140 = vector.extract_strided_slice %139 {offsets = [0, 0], sizes = [8, 384], strides = [1, 1]} : vector<8x768xf32> to vector<8x384xf32>
    %141 = arith.addf %140, %10 : vector<8x384xf32>
    %142 = vector.extract_strided_slice %139 {offsets = [0, 384], sizes = [8, 384], strides = [1, 1]} : vector<8x768xf32> to vector<8x384xf32>
    %143 = vector.extract_strided_slice %141 {offsets = [0, 0], sizes = [8, 256], strides = [1, 1]} : vector<8x384xf32> to vector<8x256xf32>
    %144 = vector.extract_strided_slice %116 {offsets = [0, 0], sizes = [8, 256], strides = [1, 1]} : vector<8x384xf32> to vector<8x256xf32>
    %145 = arith.addf %143, %144 : vector<8x256xf32>
    %146 = arith.negf %145 : vector<8x256xf32>
    %147 = math.exp %146 : vector<8x256xf32>
    %cst_34 = arith.constant 1.000000e+00 : f32
    %148 = vector.broadcast %cst_34 : f32 to vector<8x256xf32>
    %149 = arith.addf %148, %147 : vector<8x256xf32>
    %150 = arith.divf %148, %149 : vector<8x256xf32>
    %151 = vector.extract_strided_slice %150 {offsets = [0, 0], sizes = [8, 128], strides = [1, 1]} : vector<8x256xf32> to vector<8x128xf32>
    %152 = vector.extract_strided_slice %150 {offsets = [0, 128], sizes = [8, 128], strides = [1, 1]} : vector<8x256xf32> to vector<8x128xf32>
    %153 = vector.extract_strided_slice %141 {offsets = [0, 256], sizes = [8, 128], strides = [1, 1]} : vector<8x384xf32> to vector<8x128xf32>
    %154 = vector.extract_strided_slice %116 {offsets = [0, 256], sizes = [8, 128], strides = [1, 1]} : vector<8x384xf32> to vector<8x128xf32>
    %155 = arith.addf %154, %16 : vector<8x128xf32>
    %156 = arith.mulf %151, %155 : vector<8x128xf32>
    %157 = arith.addf %153, %156 : vector<8x128xf32>
    %158 = math.tanh %157 : vector<8x128xf32>
    %cst_35 = arith.constant 1.000000e+00 : f32
    %159 = vector.broadcast %cst_35 : f32 to vector<8x128xf32>
    %160 = arith.subf %159, %152 : vector<8x128xf32>
    %161 = arith.mulf %160, %158 : vector<8x128xf32>
    %162 = arith.mulf %152, %115 : vector<8x128xf32>
    %163 = arith.addf %161, %162 : vector<8x128xf32>
    %cst_36 = arith.constant dense<0.000000e+00> : vector<8x384xf32>
    %164 = tpu.matmul %163, %7, %cst_36 {dimension_numbers = #tpu.dot_dimension_numbers<[1], [0], [0], [1], [0, 0, 1, 1], [], []>} : vector<8x128xf32>, vector<128x384xf32>, vector<8x384xf32> -> vector<8x384xf32>
    %165 = vector.extract_strided_slice %5 {offsets = [24, 0], sizes = [8, 384], strides = [1, 1]} : vector<64x384xf32> to vector<8x384xf32>
    %166 = vector.extract_strided_slice %165 {offsets = [0, 0], sizes = [8, 256], strides = [1, 1]} : vector<8x384xf32> to vector<8x256xf32>
    %167 = vector.extract_strided_slice %142 {offsets = [0, 0], sizes = [8, 256], strides = [1, 1]} : vector<8x384xf32> to vector<8x256xf32>
    %168 = arith.addf %166, %167 : vector<8x256xf32>
    %169 = arith.negf %168 : vector<8x256xf32>
    %170 = math.exp %169 : vector<8x256xf32>
    %cst_37 = arith.constant 1.000000e+00 : f32
    %171 = vector.broadcast %cst_37 : f32 to vector<8x256xf32>
    %172 = arith.addf %171, %170 : vector<8x256xf32>
    %173 = arith.divf %171, %172 : vector<8x256xf32>
    %174 = vector.extract_strided_slice %173 {offsets = [0, 0], sizes = [8, 128], strides = [1, 1]} : vector<8x256xf32> to vector<8x128xf32>
    %175 = vector.extract_strided_slice %173 {offsets = [0, 128], sizes = [8, 128], strides = [1, 1]} : vector<8x256xf32> to vector<8x128xf32>
    %176 = vector.extract_strided_slice %165 {offsets = [0, 256], sizes = [8, 128], strides = [1, 1]} : vector<8x384xf32> to vector<8x128xf32>
    %177 = vector.extract_strided_slice %142 {offsets = [0, 256], sizes = [8, 128], strides = [1, 1]} : vector<8x384xf32> to vector<8x128xf32>
    %178 = arith.addf %177, %13 : vector<8x128xf32>
    %179 = arith.mulf %174, %178 : vector<8x128xf32>
    %180 = arith.addf %176, %179 : vector<8x128xf32>
    %181 = math.tanh %180 : vector<8x128xf32>
    %cst_38 = arith.constant 1.000000e+00 : f32
    %182 = vector.broadcast %cst_38 : f32 to vector<8x128xf32>
    %183 = arith.subf %182, %175 : vector<8x128xf32>
    %184 = arith.mulf %183, %181 : vector<8x128xf32>
    %185 = arith.mulf %175, %138 : vector<8x128xf32>
    %186 = arith.addf %184, %185 : vector<8x128xf32>
    %cst_39 = arith.constant dense<0.000000e+00> : vector<8x768xf32>
    %187 = tpu.matmul %186, %6, %cst_39 {dimension_numbers = #tpu.dot_dimension_numbers<[1], [0], [0], [1], [0, 0, 1, 1], [], []>} : vector<8x128xf32>, vector<128x768xf32>, vector<8x768xf32> -> vector<8x768xf32>
    %188 = vector.extract_strided_slice %187 {offsets = [0, 0], sizes = [8, 384], strides = [1, 1]} : vector<8x768xf32> to vector<8x384xf32>
    %189 = arith.addf %188, %10 : vector<8x384xf32>
    %190 = vector.extract_strided_slice %187 {offsets = [0, 384], sizes = [8, 384], strides = [1, 1]} : vector<8x768xf32> to vector<8x384xf32>
    %191 = vector.extract_strided_slice %189 {offsets = [0, 0], sizes = [8, 256], strides = [1, 1]} : vector<8x384xf32> to vector<8x256xf32>
    %192 = vector.extract_strided_slice %164 {offsets = [0, 0], sizes = [8, 256], strides = [1, 1]} : vector<8x384xf32> to vector<8x256xf32>
    %193 = arith.addf %191, %192 : vector<8x256xf32>
    %194 = arith.negf %193 : vector<8x256xf32>
    %195 = math.exp %194 : vector<8x256xf32>
    %cst_40 = arith.constant 1.000000e+00 : f32
    %196 = vector.broadcast %cst_40 : f32 to vector<8x256xf32>
    %197 = arith.addf %196, %195 : vector<8x256xf32>
    %198 = arith.divf %196, %197 : vector<8x256xf32>
    %199 = vector.extract_strided_slice %198 {offsets = [0, 0], sizes = [8, 128], strides = [1, 1]} : vector<8x256xf32> to vector<8x128xf32>
    %200 = vector.extract_strided_slice %198 {offsets = [0, 128], sizes = [8, 128], strides = [1, 1]} : vector<8x256xf32> to vector<8x128xf32>
    %201 = vector.extract_strided_slice %189 {offsets = [0, 256], sizes = [8, 128], strides = [1, 1]} : vector<8x384xf32> to vector<8x128xf32>
    %202 = vector.extract_strided_slice %164 {offsets = [0, 256], sizes = [8, 128], strides = [1, 1]} : vector<8x384xf32> to vector<8x128xf32>
    %203 = arith.addf %202, %16 : vector<8x128xf32>
    %204 = arith.mulf %199, %203 : vector<8x128xf32>
    %205 = arith.addf %201, %204 : vector<8x128xf32>
    %206 = math.tanh %205 : vector<8x128xf32>
    %cst_41 = arith.constant 1.000000e+00 : f32
    %207 = vector.broadcast %cst_41 : f32 to vector<8x128xf32>
    %208 = arith.subf %207, %200 : vector<8x128xf32>
    %209 = arith.mulf %208, %206 : vector<8x128xf32>
    %210 = arith.mulf %200, %163 : vector<8x128xf32>
    %211 = arith.addf %209, %210 : vector<8x128xf32>
    %cst_42 = arith.constant dense<0.000000e+00> : vector<8x384xf32>
    %212 = tpu.matmul %211, %7, %cst_42 {dimension_numbers = #tpu.dot_dimension_numbers<[1], [0], [0], [1], [0, 0, 1, 1], [], []>} : vector<8x128xf32>, vector<128x384xf32>, vector<8x384xf32> -> vector<8x384xf32>
    %213 = vector.extract_strided_slice %5 {offsets = [32, 0], sizes = [8, 384], strides = [1, 1]} : vector<64x384xf32> to vector<8x384xf32>
    %214 = vector.extract_strided_slice %213 {offsets = [0, 0], sizes = [8, 256], strides = [1, 1]} : vector<8x384xf32> to vector<8x256xf32>
    %215 = vector.extract_strided_slice %190 {offsets = [0, 0], sizes = [8, 256], strides = [1, 1]} : vector<8x384xf32> to vector<8x256xf32>
    %216 = arith.addf %214, %215 : vector<8x256xf32>
    %217 = arith.negf %216 : vector<8x256xf32>
    %218 = math.exp %217 : vector<8x256xf32>
    %cst_43 = arith.constant 1.000000e+00 : f32
    %219 = vector.broadcast %cst_43 : f32 to vector<8x256xf32>
    %220 = arith.addf %219, %218 : vector<8x256xf32>
    %221 = arith.divf %219, %220 : vector<8x256xf32>
    %222 = vector.extract_strided_slice %221 {offsets = [0, 0], sizes = [8, 128], strides = [1, 1]} : vector<8x256xf32> to vector<8x128xf32>
    %223 = vector.extract_strided_slice %221 {offsets = [0, 128], sizes = [8, 128], strides = [1, 1]} : vector<8x256xf32> to vector<8x128xf32>
    %224 = vector.extract_strided_slice %213 {offsets = [0, 256], sizes = [8, 128], strides = [1, 1]} : vector<8x384xf32> to vector<8x128xf32>
    %225 = vector.extract_strided_slice %190 {offsets = [0, 256], sizes = [8, 128], strides = [1, 1]} : vector<8x384xf32> to vector<8x128xf32>
    %226 = arith.addf %225, %13 : vector<8x128xf32>
    %227 = arith.mulf %222, %226 : vector<8x128xf32>
    %228 = arith.addf %224, %227 : vector<8x128xf32>
    %229 = math.tanh %228 : vector<8x128xf32>
    %cst_44 = arith.constant 1.000000e+00 : f32
    %230 = vector.broadcast %cst_44 : f32 to vector<8x128xf32>
    %231 = arith.subf %230, %223 : vector<8x128xf32>
    %232 = arith.mulf %231, %229 : vector<8x128xf32>
    %233 = arith.mulf %223, %186 : vector<8x128xf32>
    %234 = arith.addf %232, %233 : vector<8x128xf32>
    %cst_45 = arith.constant dense<0.000000e+00> : vector<8x768xf32>
    %235 = tpu.matmul %234, %6, %cst_45 {dimension_numbers = #tpu.dot_dimension_numbers<[1], [0], [0], [1], [0, 0, 1, 1], [], []>} : vector<8x128xf32>, vector<128x768xf32>, vector<8x768xf32> -> vector<8x768xf32>
    %236 = vector.extract_strided_slice %235 {offsets = [0, 0], sizes = [8, 384], strides = [1, 1]} : vector<8x768xf32> to vector<8x384xf32>
    %237 = arith.addf %236, %10 : vector<8x384xf32>
    %238 = vector.extract_strided_slice %235 {offsets = [0, 384], sizes = [8, 384], strides = [1, 1]} : vector<8x768xf32> to vector<8x384xf32>
    %239 = vector.extract_strided_slice %237 {offsets = [0, 0], sizes = [8, 256], strides = [1, 1]} : vector<8x384xf32> to vector<8x256xf32>
    %240 = vector.extract_strided_slice %212 {offsets = [0, 0], sizes = [8, 256], strides = [1, 1]} : vector<8x384xf32> to vector<8x256xf32>
    %241 = arith.addf %239, %240 : vector<8x256xf32>
    %242 = arith.negf %241 : vector<8x256xf32>
    %243 = math.exp %242 : vector<8x256xf32>
    %cst_46 = arith.constant 1.000000e+00 : f32
    %244 = vector.broadcast %cst_46 : f32 to vector<8x256xf32>
    %245 = arith.addf %244, %243 : vector<8x256xf32>
    %246 = arith.divf %244, %245 : vector<8x256xf32>
    %247 = vector.extract_strided_slice %246 {offsets = [0, 0], sizes = [8, 128], strides = [1, 1]} : vector<8x256xf32> to vector<8x128xf32>
    %248 = vector.extract_strided_slice %246 {offsets = [0, 128], sizes = [8, 128], strides = [1, 1]} : vector<8x256xf32> to vector<8x128xf32>
    %249 = vector.extract_strided_slice %237 {offsets = [0, 256], sizes = [8, 128], strides = [1, 1]} : vector<8x384xf32> to vector<8x128xf32>
    %250 = vector.extract_strided_slice %212 {offsets = [0, 256], sizes = [8, 128], strides = [1, 1]} : vector<8x384xf32> to vector<8x128xf32>
    %251 = arith.addf %250, %16 : vector<8x128xf32>
    %252 = arith.mulf %247, %251 : vector<8x128xf32>
    %253 = arith.addf %249, %252 : vector<8x128xf32>
    %254 = math.tanh %253 : vector<8x128xf32>
    %cst_47 = arith.constant 1.000000e+00 : f32
    %255 = vector.broadcast %cst_47 : f32 to vector<8x128xf32>
    %256 = arith.subf %255, %248 : vector<8x128xf32>
    %257 = arith.mulf %256, %254 : vector<8x128xf32>
    %258 = arith.mulf %248, %211 : vector<8x128xf32>
    %259 = arith.addf %257, %258 : vector<8x128xf32>
    %cst_48 = arith.constant dense<0.000000e+00> : vector<8x384xf32>
    %260 = tpu.matmul %259, %7, %cst_48 {dimension_numbers = #tpu.dot_dimension_numbers<[1], [0], [0], [1], [0, 0, 1, 1], [], []>} : vector<8x128xf32>, vector<128x384xf32>, vector<8x384xf32> -> vector<8x384xf32>
    %261 = vector.extract_strided_slice %5 {offsets = [40, 0], sizes = [8, 384], strides = [1, 1]} : vector<64x384xf32> to vector<8x384xf32>
    %262 = vector.extract_strided_slice %261 {offsets = [0, 0], sizes = [8, 256], strides = [1, 1]} : vector<8x384xf32> to vector<8x256xf32>
    %263 = vector.extract_strided_slice %238 {offsets = [0, 0], sizes = [8, 256], strides = [1, 1]} : vector<8x384xf32> to vector<8x256xf32>
    %264 = arith.addf %262, %263 : vector<8x256xf32>
    %265 = arith.negf %264 : vector<8x256xf32>
    %266 = math.exp %265 : vector<8x256xf32>
    %cst_49 = arith.constant 1.000000e+00 : f32
    %267 = vector.broadcast %cst_49 : f32 to vector<8x256xf32>
    %268 = arith.addf %267, %266 : vector<8x256xf32>
    %269 = arith.divf %267, %268 : vector<8x256xf32>
    %270 = vector.extract_strided_slice %269 {offsets = [0, 0], sizes = [8, 128], strides = [1, 1]} : vector<8x256xf32> to vector<8x128xf32>
    %271 = vector.extract_strided_slice %269 {offsets = [0, 128], sizes = [8, 128], strides = [1, 1]} : vector<8x256xf32> to vector<8x128xf32>
    %272 = vector.extract_strided_slice %261 {offsets = [0, 256], sizes = [8, 128], strides = [1, 1]} : vector<8x384xf32> to vector<8x128xf32>
    %273 = vector.extract_strided_slice %238 {offsets = [0, 256], sizes = [8, 128], strides = [1, 1]} : vector<8x384xf32> to vector<8x128xf32>
    %274 = arith.addf %273, %13 : vector<8x128xf32>
    %275 = arith.mulf %270, %274 : vector<8x128xf32>
    %276 = arith.addf %272, %275 : vector<8x128xf32>
    %277 = math.tanh %276 : vector<8x128xf32>
    %cst_50 = arith.constant 1.000000e+00 : f32
    %278 = vector.broadcast %cst_50 : f32 to vector<8x128xf32>
    %279 = arith.subf %278, %271 : vector<8x128xf32>
    %280 = arith.mulf %279, %277 : vector<8x128xf32>
    %281 = arith.mulf %271, %234 : vector<8x128xf32>
    %282 = arith.addf %280, %281 : vector<8x128xf32>
    %cst_51 = arith.constant dense<0.000000e+00> : vector<8x768xf32>
    %283 = tpu.matmul %282, %6, %cst_51 {dimension_numbers = #tpu.dot_dimension_numbers<[1], [0], [0], [1], [0, 0, 1, 1], [], []>} : vector<8x128xf32>, vector<128x768xf32>, vector<8x768xf32> -> vector<8x768xf32>
    %284 = vector.extract_strided_slice %283 {offsets = [0, 0], sizes = [8, 384], strides = [1, 1]} : vector<8x768xf32> to vector<8x384xf32>
    %285 = arith.addf %284, %10 : vector<8x384xf32>
    %286 = vector.extract_strided_slice %283 {offsets = [0, 384], sizes = [8, 384], strides = [1, 1]} : vector<8x768xf32> to vector<8x384xf32>
    %287 = vector.extract_strided_slice %285 {offsets = [0, 0], sizes = [8, 256], strides = [1, 1]} : vector<8x384xf32> to vector<8x256xf32>
    %288 = vector.extract_strided_slice %260 {offsets = [0, 0], sizes = [8, 256], strides = [1, 1]} : vector<8x384xf32> to vector<8x256xf32>
    %289 = arith.addf %287, %288 : vector<8x256xf32>
    %290 = arith.negf %289 : vector<8x256xf32>
    %291 = math.exp %290 : vector<8x256xf32>
    %cst_52 = arith.constant 1.000000e+00 : f32
    %292 = vector.broadcast %cst_52 : f32 to vector<8x256xf32>
    %293 = arith.addf %292, %291 : vector<8x256xf32>
    %294 = arith.divf %292, %293 : vector<8x256xf32>
    %295 = vector.extract_strided_slice %294 {offsets = [0, 0], sizes = [8, 128], strides = [1, 1]} : vector<8x256xf32> to vector<8x128xf32>
    %296 = vector.extract_strided_slice %294 {offsets = [0, 128], sizes = [8, 128], strides = [1, 1]} : vector<8x256xf32> to vector<8x128xf32>
    %297 = vector.extract_strided_slice %285 {offsets = [0, 256], sizes = [8, 128], strides = [1, 1]} : vector<8x384xf32> to vector<8x128xf32>
    %298 = vector.extract_strided_slice %260 {offsets = [0, 256], sizes = [8, 128], strides = [1, 1]} : vector<8x384xf32> to vector<8x128xf32>
    %299 = arith.addf %298, %16 : vector<8x128xf32>
    %300 = arith.mulf %295, %299 : vector<8x128xf32>
    %301 = arith.addf %297, %300 : vector<8x128xf32>
    %302 = math.tanh %301 : vector<8x128xf32>
    %cst_53 = arith.constant 1.000000e+00 : f32
    %303 = vector.broadcast %cst_53 : f32 to vector<8x128xf32>
    %304 = arith.subf %303, %296 : vector<8x128xf32>
    %305 = arith.mulf %304, %302 : vector<8x128xf32>
    %306 = arith.mulf %296, %259 : vector<8x128xf32>
    %307 = arith.addf %305, %306 : vector<8x128xf32>
    %cst_54 = arith.constant dense<0.000000e+00> : vector<8x384xf32>
    %308 = tpu.matmul %307, %7, %cst_54 {dimension_numbers = #tpu.dot_dimension_numbers<[1], [0], [0], [1], [0, 0, 1, 1], [], []>} : vector<8x128xf32>, vector<128x384xf32>, vector<8x384xf32> -> vector<8x384xf32>
    %309 = vector.extract_strided_slice %5 {offsets = [48, 0], sizes = [8, 384], strides = [1, 1]} : vector<64x384xf32> to vector<8x384xf32>
    %310 = vector.extract_strided_slice %309 {offsets = [0, 0], sizes = [8, 256], strides = [1, 1]} : vector<8x384xf32> to vector<8x256xf32>
    %311 = vector.extract_strided_slice %286 {offsets = [0, 0], sizes = [8, 256], strides = [1, 1]} : vector<8x384xf32> to vector<8x256xf32>
    %312 = arith.addf %310, %311 : vector<8x256xf32>
    %313 = arith.negf %312 : vector<8x256xf32>
    %314 = math.exp %313 : vector<8x256xf32>
    %cst_55 = arith.constant 1.000000e+00 : f32
    %315 = vector.broadcast %cst_55 : f32 to vector<8x256xf32>
    %316 = arith.addf %315, %314 : vector<8x256xf32>
    %317 = arith.divf %315, %316 : vector<8x256xf32>
    %318 = vector.extract_strided_slice %317 {offsets = [0, 0], sizes = [8, 128], strides = [1, 1]} : vector<8x256xf32> to vector<8x128xf32>
    %319 = vector.extract_strided_slice %317 {offsets = [0, 128], sizes = [8, 128], strides = [1, 1]} : vector<8x256xf32> to vector<8x128xf32>
    %320 = vector.extract_strided_slice %309 {offsets = [0, 256], sizes = [8, 128], strides = [1, 1]} : vector<8x384xf32> to vector<8x128xf32>
    %321 = vector.extract_strided_slice %286 {offsets = [0, 256], sizes = [8, 128], strides = [1, 1]} : vector<8x384xf32> to vector<8x128xf32>
    %322 = arith.addf %321, %13 : vector<8x128xf32>
    %323 = arith.mulf %318, %322 : vector<8x128xf32>
    %324 = arith.addf %320, %323 : vector<8x128xf32>
    %325 = math.tanh %324 : vector<8x128xf32>
    %cst_56 = arith.constant 1.000000e+00 : f32
    %326 = vector.broadcast %cst_56 : f32 to vector<8x128xf32>
    %327 = arith.subf %326, %319 : vector<8x128xf32>
    %328 = arith.mulf %327, %325 : vector<8x128xf32>
    %329 = arith.mulf %319, %282 : vector<8x128xf32>
    %330 = arith.addf %328, %329 : vector<8x128xf32>
    %cst_57 = arith.constant dense<0.000000e+00> : vector<8x768xf32>
    %331 = tpu.matmul %330, %6, %cst_57 {dimension_numbers = #tpu.dot_dimension_numbers<[1], [0], [0], [1], [0, 0, 1, 1], [], []>} : vector<8x128xf32>, vector<128x768xf32>, vector<8x768xf32> -> vector<8x768xf32>
    %332 = vector.extract_strided_slice %331 {offsets = [0, 0], sizes = [8, 384], strides = [1, 1]} : vector<8x768xf32> to vector<8x384xf32>
    %333 = arith.addf %332, %10 : vector<8x384xf32>
    %334 = vector.extract_strided_slice %331 {offsets = [0, 384], sizes = [8, 384], strides = [1, 1]} : vector<8x768xf32> to vector<8x384xf32>
    %335 = vector.extract_strided_slice %333 {offsets = [0, 0], sizes = [8, 256], strides = [1, 1]} : vector<8x384xf32> to vector<8x256xf32>
    %336 = vector.extract_strided_slice %308 {offsets = [0, 0], sizes = [8, 256], strides = [1, 1]} : vector<8x384xf32> to vector<8x256xf32>
    %337 = arith.addf %335, %336 : vector<8x256xf32>
    %338 = arith.negf %337 : vector<8x256xf32>
    %339 = math.exp %338 : vector<8x256xf32>
    %cst_58 = arith.constant 1.000000e+00 : f32
    %340 = vector.broadcast %cst_58 : f32 to vector<8x256xf32>
    %341 = arith.addf %340, %339 : vector<8x256xf32>
    %342 = arith.divf %340, %341 : vector<8x256xf32>
    %343 = vector.extract_strided_slice %342 {offsets = [0, 0], sizes = [8, 128], strides = [1, 1]} : vector<8x256xf32> to vector<8x128xf32>
    %344 = vector.extract_strided_slice %342 {offsets = [0, 128], sizes = [8, 128], strides = [1, 1]} : vector<8x256xf32> to vector<8x128xf32>
    %345 = vector.extract_strided_slice %333 {offsets = [0, 256], sizes = [8, 128], strides = [1, 1]} : vector<8x384xf32> to vector<8x128xf32>
    %346 = vector.extract_strided_slice %308 {offsets = [0, 256], sizes = [8, 128], strides = [1, 1]} : vector<8x384xf32> to vector<8x128xf32>
    %347 = arith.addf %346, %16 : vector<8x128xf32>
    %348 = arith.mulf %343, %347 : vector<8x128xf32>
    %349 = arith.addf %345, %348 : vector<8x128xf32>
    %350 = math.tanh %349 : vector<8x128xf32>
    %cst_59 = arith.constant 1.000000e+00 : f32
    %351 = vector.broadcast %cst_59 : f32 to vector<8x128xf32>
    %352 = arith.subf %351, %344 : vector<8x128xf32>
    %353 = arith.mulf %352, %350 : vector<8x128xf32>
    %354 = arith.mulf %344, %307 : vector<8x128xf32>
    %355 = arith.addf %353, %354 : vector<8x128xf32>
    %cst_60 = arith.constant dense<0.000000e+00> : vector<8x384xf32>
    %356 = tpu.matmul %355, %7, %cst_60 {dimension_numbers = #tpu.dot_dimension_numbers<[1], [0], [0], [1], [0, 0, 1, 1], [], []>} : vector<8x128xf32>, vector<128x384xf32>, vector<8x384xf32> -> vector<8x384xf32>
    %357 = vector.extract_strided_slice %5 {offsets = [56, 0], sizes = [8, 384], strides = [1, 1]} : vector<64x384xf32> to vector<8x384xf32>
    %358 = vector.extract_strided_slice %357 {offsets = [0, 0], sizes = [8, 256], strides = [1, 1]} : vector<8x384xf32> to vector<8x256xf32>
    %359 = vector.extract_strided_slice %334 {offsets = [0, 0], sizes = [8, 256], strides = [1, 1]} : vector<8x384xf32> to vector<8x256xf32>
    %360 = arith.addf %358, %359 : vector<8x256xf32>
    %361 = arith.negf %360 : vector<8x256xf32>
    %362 = math.exp %361 : vector<8x256xf32>
    %cst_61 = arith.constant 1.000000e+00 : f32
    %363 = vector.broadcast %cst_61 : f32 to vector<8x256xf32>
    %364 = arith.addf %363, %362 : vector<8x256xf32>
    %365 = arith.divf %363, %364 : vector<8x256xf32>
    %366 = vector.extract_strided_slice %365 {offsets = [0, 0], sizes = [8, 128], strides = [1, 1]} : vector<8x256xf32> to vector<8x128xf32>
    %367 = vector.extract_strided_slice %365 {offsets = [0, 128], sizes = [8, 128], strides = [1, 1]} : vector<8x256xf32> to vector<8x128xf32>
    %368 = vector.extract_strided_slice %357 {offsets = [0, 256], sizes = [8, 128], strides = [1, 1]} : vector<8x384xf32> to vector<8x128xf32>
    %369 = vector.extract_strided_slice %334 {offsets = [0, 256], sizes = [8, 128], strides = [1, 1]} : vector<8x384xf32> to vector<8x128xf32>
    %370 = arith.addf %369, %13 : vector<8x128xf32>
    %371 = arith.mulf %366, %370 : vector<8x128xf32>
    %372 = arith.addf %368, %371 : vector<8x128xf32>
    %373 = math.tanh %372 : vector<8x128xf32>
    %cst_62 = arith.constant 1.000000e+00 : f32
    %374 = vector.broadcast %cst_62 : f32 to vector<8x128xf32>
    %375 = arith.subf %374, %367 : vector<8x128xf32>
    %376 = arith.mulf %375, %373 : vector<8x128xf32>
    %377 = arith.mulf %367, %330 : vector<8x128xf32>
    %378 = arith.addf %376, %377 : vector<8x128xf32>
    %cst_63 = arith.constant dense<0.000000e+00> : vector<8x768xf32>
    %379 = tpu.matmul %378, %6, %cst_63 {dimension_numbers = #tpu.dot_dimension_numbers<[1], [0], [0], [1], [0, 0, 1, 1], [], []>} : vector<8x128xf32>, vector<128x768xf32>, vector<8x768xf32> -> vector<8x768xf32>
    %380 = vector.extract_strided_slice %379 {offsets = [0, 0], sizes = [8, 384], strides = [1, 1]} : vector<8x768xf32> to vector<8x384xf32>
    %381 = arith.addf %380, %10 : vector<8x384xf32>
    %382 = vector.extract_strided_slice %381 {offsets = [0, 0], sizes = [8, 256], strides = [1, 1]} : vector<8x384xf32> to vector<8x256xf32>
    %383 = vector.extract_strided_slice %356 {offsets = [0, 0], sizes = [8, 256], strides = [1, 1]} : vector<8x384xf32> to vector<8x256xf32>
    %384 = arith.addf %382, %383 : vector<8x256xf32>
    %385 = arith.negf %384 : vector<8x256xf32>
    %386 = math.exp %385 : vector<8x256xf32>
    %cst_64 = arith.constant 1.000000e+00 : f32
    %387 = vector.broadcast %cst_64 : f32 to vector<8x256xf32>
    %388 = arith.addf %387, %386 : vector<8x256xf32>
    %389 = arith.divf %387, %388 : vector<8x256xf32>
    %390 = vector.extract_strided_slice %389 {offsets = [0, 0], sizes = [8, 128], strides = [1, 1]} : vector<8x256xf32> to vector<8x128xf32>
    %391 = vector.extract_strided_slice %389 {offsets = [0, 128], sizes = [8, 128], strides = [1, 1]} : vector<8x256xf32> to vector<8x128xf32>
    %392 = vector.extract_strided_slice %381 {offsets = [0, 256], sizes = [8, 128], strides = [1, 1]} : vector<8x384xf32> to vector<8x128xf32>
    %393 = vector.extract_strided_slice %356 {offsets = [0, 256], sizes = [8, 128], strides = [1, 1]} : vector<8x384xf32> to vector<8x128xf32>
    %394 = arith.addf %393, %16 : vector<8x128xf32>
    %395 = arith.mulf %390, %394 : vector<8x128xf32>
    %396 = arith.addf %392, %395 : vector<8x128xf32>
    %397 = math.tanh %396 : vector<8x128xf32>
    %cst_65 = arith.constant 1.000000e+00 : f32
    %398 = vector.broadcast %cst_65 : f32 to vector<8x128xf32>
    %399 = arith.subf %398, %391 : vector<8x128xf32>
    %400 = arith.mulf %399, %397 : vector<8x128xf32>
    %401 = arith.mulf %391, %355 : vector<8x128xf32>
    %402 = arith.addf %400, %401 : vector<8x128xf32>
    %c0_66 = arith.constant 0 : index
    %c0_67 = arith.constant 0 : index
    %403 = vector.load %arg8[%c0_66, %c0_67] : memref<128x128xf32, #tpu.memory_space<vmem>>, vector<128x128xf32>
    %cst_68 = arith.constant dense<0.000000e+00> : vector<8x128xf32>
    %404 = tpu.matmul %402, %403, %cst_68 {dimension_numbers = #tpu.dot_dimension_numbers<[1], [0], [0], [1], [0, 0, 1, 1], [], []>} : vector<8x128xf32>, vector<128x128xf32>, vector<8x128xf32> -> vector<8x128xf32>
    %c0_69 = arith.constant 0 : index
    %c0_70 = arith.constant 0 : index
    %405 = vector.load %arg9[%c0_69, %c0_70] : memref<1x128xf32, #tpu.memory_space<vmem>>, vector<1x128xf32>
    %406 = vector.broadcast %405 : vector<1x128xf32> to vector<8x128xf32>
    %407 = arith.addf %404, %406 : vector<8x128xf32>
    %cst_71 = arith.constant dense<0xFF800000> : vector<8xf32>
    %408 = vector.multi_reduction <maximumf>, %407, %cst_71 [1] : vector<8x128xf32> to vector<8xf32>
    %409 = vector.shape_cast %408 : vector<8xf32> to vector<8x1xf32>
    %410 = vector.broadcast %409 : vector<8x1xf32> to vector<8x128xf32>
    %411 = arith.subf %407, %410 : vector<8x128xf32>
    %412 = math.exp %411 : vector<8x128xf32>
    %413 = vector.broadcast %409 : vector<8x1xf32> to vector<8x128xf32>
    %414 = arith.subf %407, %413 : vector<8x128xf32>
    %cst_72 = arith.constant dense<0.000000e+00> : vector<8xf32>
    %415 = vector.multi_reduction <add>, %412, %cst_72 [1] : vector<8x128xf32> to vector<8xf32>
    %416 = vector.shape_cast %415 : vector<8xf32> to vector<8x1xf32>
    %417 = math.log %416 : vector<8x1xf32>
    %418 = vector.broadcast %417 : vector<8x1xf32> to vector<8x128xf32>
    %419 = arith.subf %414, %418 : vector<8x128xf32>
    %c0_73 = arith.constant 0 : index
    %c0_74 = arith.constant 0 : index
    %420 = vector.load %arg10[%c0_73, %c0_74] : memref<8x128xf32, #tpu.memory_space<vmem>>, vector<8x128xf32>
    tpu.vector_store %arg10[%c0_73, %c0_74], %419 {strides = array<i32>} : memref<8x128xf32, #tpu.memory_space<vmem>>, vector<8x128xf32>,
    return
  }
}

</mosaic_0001>

<bundles_post_ra>
// kernel: tpu_custom_call.1
= control target key start
LH: loop header
LB: loop body
LE: loop exit
PB: predicated region body
PF: predicated region fallthrough
CT: control target
= control target key end

     0   :  { %15 = vsyncpa [#allocation3], 0  ;;  %s7453_s0 = inlined_call_operand.vmem [shape: f32[64,32], index: 0, kind: input, shape index: {}]   ;;  %s7454_s1 = inlined_call_operand.vmem [shape: f32[32,384], index: 1, kind: input, shape index: {}]   ;;  %s7455_s2 = inlined_call_operand.vmem [shape: f32[1,384], index: 2, kind: input, shape index: {}]   ;;  %s7456_s3 = inlined_call_operand.vmem [shape: f32[1,128], index: 3, kind: input, shape index: {}]   ;;  %s7457_s4 = inlined_call_operand.hbm [shape: f32[128,768], index: 4, kind: input, shape index: {}]   ;;  %s7458_s5 = inlined_call_operand.hbm [shape: f32[128,384], index: 5, kind: input, shape index: {}]   ;;  %s7459_s6 = inlined_call_operand.vmem [shape: f32[1,384], index: 6, kind: input, shape index: {}]   ;;  %s7460_s7 = inlined_call_operand.vmem [shape: f32[1,128], index: 7, kind: input, shape index: {}]   ;;  %s7461_s8 = inlined_call_operand.hbm [shape: f32[128,128], index: 8, kind: input, shape index: {}]   ;;  %s7462_s9 = inlined_call_operand.vmem [shape: f32[1,128], index: 9, kind: input, shape index: {}]   ;;  %s7463_s10 = inlined_call_operand.hbm [shape: f32[8,128], index: 10, kind: output, shape index: {}]  }
   0x1   :  { %16 = vsyncpa [#allocation6], 0 }
   0x2   :  { %17 = vsyncpa [#allocation4], 0  ;;  %s4893_s13 = smov [#allocation5]  }
   0x3   :  { %s43_s14 = sshll.u32 %s4893_s13, 4  ;;  %s44_s14 = int_to_ptr.vmem [resolvable:$true] %s43_s14 }
   0x4   :  { %s4815_s15 = scalar_lea.vmem %s44_s14, 6144  ;;  %p4820_p1 = scmp.lt.s32.totalorder %s44_s14, %s44_s14 }
   0x5   :  { %p4816_p0 = scmp.ne.s32.totalorder %s44_s14, %s4815_s15  ;;  %p4821_p2 = scmp.lt.s32.totalorder %s4815_s15, %s4815_s15 }
   0x7   :  { %p4822_p3 = por %p4821_p2, %p4820_p1 }
   0x9   :  { %p4823_p4 = pnand %p4822_p3, %p4816_p0 }
   0xb   :  { %4826 = shalt.err (!%p4823_p4)
}
   0xc   :  { %s4894_s16 = smov 384   ;;  %s4895_s17 = smov 24  }
   0xd   :  { %49 = dma.hbm_to_vmem [thread:$0]  %s7458_s5, 6144, %s44_s14, [#allocation6], %s4894_s16, %s4894_s16, %s4895_s17  }
   0xe   :  { %s4896_s20 = smov [#allocation2]  }
   0xf   :  { %s31_s21 = sshll.u32 %s4896_s20, 4  ;;  %s32_s21 = int_to_ptr.vmem [resolvable:$true] %s31_s21 }
  0x10   :  { %s4835_s22 = scalar_lea.vmem %s32_s21, 12288  ;;  %p4840_p6 = scmp.lt.s32.totalorder %s32_s21, %s32_s21 }
  0x11   :  { %p4836_p5 = scmp.ne.s32.totalorder %s32_s21, %s4835_s22  ;;  %p4841_p7 = scmp.lt.s32.totalorder %s4835_s22, %s4835_s22 }
  0x13   :  { %p4842_p8 = por %p4841_p7, %p4840_p6 }
  0x15   :  { %p4843_p9 = pnand %p4842_p8, %p4836_p5 }
  0x17   :  { %4846 = shalt.err (!%p4843_p9)
}
  0x18   :  { %s4897_s23 = smov 768   ;;  %s4898_s24 = smov 48  }
  0x19   :  { %37 = dma.hbm_to_vmem [thread:$0]  %s7457_s4, 12288, %s32_s21, [#allocation3], %s4897_s23, %s4897_s23, %s4898_s24  }
  0x1a   :  { %s4899_s27 = smov [#allocation7]  }
  0x1b   :  { %s59_s28 = sshll.u32 %s4899_s27, 4  ;;  %s60_s28 = int_to_ptr.vmem [resolvable:$true] %s59_s28 }
  0x1c   :  { %s4855_s5 = scalar_lea.vmem %s60_s28, 2048  ;;  %p4860_p11 = scmp.lt.s32.totalorder %s60_s28, %s60_s28 }
  0x1d   :  { %p4856_p10 = scmp.ne.s32.totalorder %s60_s28, %s4855_s5  ;;  %p4861_p12 = scmp.lt.s32.totalorder %s4855_s5, %s4855_s5 }
  0x1f   :  { %p4862_p13 = por %p4861_p12, %p4860_p11 }
  0x21   :  { %p4863_p0 = pnand %p4862_p13, %p4856_p10 }
  0x23   :  { %4866 = shalt.err (!%p4863_p0)
}
  0x24   :  { %s4900_s29 = smov 128   ;;  %s4901_s30 = smov 8  }
  0x25   :  { %65 = dma.hbm_to_vmem [thread:$0]  %s7461_s8, 2048, %s60_s28, [#allocation6], %s4900_s29, %s4900_s29, %s4901_s30  }
  0x26   :  { %4887 = dma.done.wait [#allocation3], 12288  }
  0x27   :  { %4888 = vsyncadd [#allocation3], 4294955008 }
  0x28   :  { %4889 = dma.done.wait [#allocation6], 8192  }
  0x29   :  { %4890 = vsyncadd [#allocation6], 4294959104  ;;  %v7464_v0 = vmov 0.0   ;;  %v95_v1 = vld [vmem:[%s7454_s1 + $0x50] sm:$0xff]  ;;  %v94_v2 = vld [vmem:[%s7454_s1 + $0x48] sm:$0xff]  ;;  %vm114_vm0 = vcmask 261120  }
  0x2a   :  { %203 = vmatprep.mubr.f32.mxu0 %v7464_v0  ;;  %v92_v3 = vld [vmem:[%s7454_s1 + $0x38] sm:$0xff]  ;;  %163 = vmatprep.subr.mxu0 %v95_v1  ;;  %v91_v4 = vld [vmem:[%s7454_s1 + $0x30] sm:$0xff]  ;;  %v89_v5 = vld [vmem:[%s7454_s1 + $0x20] sm:$0xff]  ;;  %vm4903_vm1 = vmmov 0   ;;  %s4904_s17 = smov [#allocation8]  }
  0x2b   :  { %164 = vmatpush1.msra.mxu0 %v94_v2  ;;  %v77_v6 = vld [vmem:[%s7453_s0] sm:$0xff]  ;;  %v88_v7 = vld [vmem:[%s7454_s1 + $0x18] sm:$0xff]  ;;  %v86_v10 = vld [vmem:[%s7454_s1 + $0x8] sm:$0xff]  ;;  %s3778_s8 = sshll.u32 %s4904_s17, 4  ;;  %s3779_s8 = int_to_ptr.vmem [resolvable:$true] %s3778_s8 }
  0x2c   :  { %165 = vmatprep.subr.mxu0 %v92_v3  ;;  %v96_v8 = vld [vmem:[%s7454_s1 + $0x58] sm:$0xff]  ;;  %v93_v9 = vld [vmem:[%s7454_s1 + $0x40] sm:$0xff]  ;;  %4012 = vmatprep.mubr.msk.f32.mxu1 %vm114_vm0, %v77_v6  ;;  %v90_v12 = vld [vmem:[%s7454_s1 + $0x28] sm:$0xff]  ;;  %p4872_p2 = scmp.lt.s32.totalorder %s3779_s8, %s3779_s8 }
  0x2d   :  { %166 = vmatpush1.msra.mxu0 %v91_v4  ;;  %4004 = vmatprep.subr.mxu1 %v96_v8  ;;  %v85_v11 = vld [vmem:[%s7454_s1] sm:$0xff]  ;;  %v87_v13 = vld [vmem:[%s7454_s1 + $0x10] sm:$0xff]  ;;  %v5012_v15 = vld [vmem:[#allocation5 + $0x168] sm:$0xff] }
  0x2e   :  { %167 = vmatprep.subr.mxu0 %v89_v5  ;;  %4005 = vmatpush3.msra.mxu1 %v96_v8  ;;  %v5010_v14 = vld [vmem:[#allocation5 + $0x170] sm:$0xff]  ;;  %v78_v16 = vld [vmem:[%s7453_s0 + $0x8] sm:$0xff]  ;;  %v5019_v17 = vld [vmem:[#allocation5 + $0x158] sm:$0xff] }
  0x2f   :  { %168 = vmatpush1.msra.mxu0 %v88_v7  ;;  %4006 = vmatprep.subr.mxu1 %v93_v9  ;;  %v5021_v18 = vld [vmem:[#allocation5 + $0x178] sm:$0xff]  ;;  %v5024_v19 = vld [vmem:[#allocation5 + $0x150] sm:$0xff]  ;;  %v5030_v20 = vld [vmem:[#allocation5 + $0x140] sm:$0xff] }
  0x30   :  { %169 = vmatprep.subr.mxu0 %v86_v10  ;;  %4007 = vmatpush3.msra.mxu1 %v93_v9  ;;  %v5032_v21 = vld [vmem:[#allocation5 + $0x160] sm:$0xff]  ;;  %v5036_v22 = vld [vmem:[#allocation5 + $0x138] sm:$0xff]  ;;  %v5040_v23 = vld [vmem:[#allocation5 + $0x128] sm:$0xff] }
  0x31   :  { %170 = vmatpush1.msra.mxu0 %v85_v11  ;;  %4008 = vmatprep.subr.mxu1 %v90_v12  ;;  %v5042_v24 = vld [vmem:[#allocation5 + $0x148] sm:$0xff]  ;;  %v5046_v25 = vld [vmem:[#allocation5 + $0x120] sm:$0xff]  ;;  %v79_v26 = vld [vmem:[%s7453_s0 + $0x10] sm:$0xff] }
  0x32   :  { %3788 = vmatmul.mubr.msk.f32.vlgmr.msra.gmra.mxu0 %vm114_vm0, %v77_v6  ;;  %4009 = vmatpush3.msra.mxu1 %v90_v12  ;;  %v5058_v27 = vld [vmem:[#allocation5 + $0x110] sm:$0xff]  ;;  %v5064_v29 = vld [vmem:[#allocation5 + $0x108] sm:$0xff]  ;;  %v5068_v30 = vld [vmem:[#allocation5 + $0xf8] sm:$0xff] }
  0x33   :  { %4010 = vmatprep.subr.mxu1 %v87_v13  ;;  %532 = vmatprep.subr.mxu0 %v5010_v14  ;;  %v5060_v28 = vld [vmem:[#allocation5 + $0x130] sm:$0xff]  ;;  %v5070_v31 = vld [vmem:[#allocation5 + $0x118] sm:$0xff]  ;;  %v5081_v34 = vld [vmem:[#allocation5 + $0xe0] sm:$0xff] }
  0x34   :  { %4011 = vmatpush3.msra.mxu1 %v87_v13  ;;  %533 = vmatpush1.msra.mxu0 %v5012_v15  ;;  %v5074_v32 = vld [vmem:[#allocation5 + $0xf0] sm:$0xff]  ;;  %v80_v33 = vld [vmem:[%s7453_s0 + $0x18] sm:$0xff]  ;;  %v5083_v35 = vld [vmem:[#allocation5 + $0x100] sm:$0xff] }
  0x35   :  { %4013 = vmatmul.mubr.msk.f32.vlgmr.msra.gmra.mxu1 %vm114_vm0, %v78_v16  ;;  %4024 = vmatprep.subr.mxu1 %v7464_v0  ;;  %v5087_v36 = vld [vmem:[#allocation5 + $0xd8] sm:$0xff]  ;;  %v5091_v37 = vld [vmem:[#allocation5 + $0xc8] sm:$0xff]  ;;  %v5097_v39 = vld [vmem:[#allocation5 + $0xc0] sm:$0xff] }
  0x36   :  { %534 = vmatprep.subr.mxu0 %v5019_v17  ;;  %4025 = vmatpush3.msra.mxu1 %v5021_v18  ;;  %v5093_v38 = vld [vmem:[#allocation5 + $0xe8] sm:$0xff]  ;;  %v81_v40 = vld [vmem:[%s7453_s0 + $0x20] sm:$0xff]  ;;  %v5104_v41 = vld [vmem:[#allocation5 + $0xb0] sm:$0xff] }
  0x37   :  { %209 = vmatprep.mubr.f32.mxu0 %v7464_v0  ;;  %535 = vmatpush1.msra.mxu0 %v5024_v19  ;;  %v5108_v42 = vld [vmem:[#allocation5 + $0xd0] sm:$0xff]  ;;  %v5110_v43 = vld [vmem:[#allocation5 + $0xa8] sm:$0xff]  ;;  %v5114_v44 = vld [vmem:[#allocation5 + $0x98] sm:$0xff] }
  0x38   :  { %4026 = vmatprep.subr.mxu1 %v7464_v0  ;;  %3789 = vmatmul.mubr.msk.f32.gmra.mxu0 %vm114_vm0, %v78_v16  ;;  %v5118_v45 = vld [vmem:[#allocation5 + $0xb8] sm:$0xff]  ;;  %v5122_v46 = vld [vmem:[#allocation5 + $0x90] sm:$0xff]  ;;  %v82_v47 = vld [vmem:[%s7453_s0 + $0x28] sm:$0xff] }
  0x39   :  { %536 = vmatprep.subr.mxu0 %v5030_v20  ;;  %4027 = vmatpush3.msra.mxu1 %v5032_v21  ;;  %v5129_v48 = vld [vmem:[#allocation5 + $0x80] sm:$0xff]  ;;  %v5137_v50 = vld [vmem:[#allocation5 + $0x78] sm:$0xff]  ;;  %v5141_v51 = vld [vmem:[#allocation5 + $0x68] sm:$0xff] }
  0x3a   :  { %537 = vmatpush1.msra.mxu0 %v5036_v22  ;;  %4028 = vmatprep.subr.mxu1 %v7464_v0  ;;  %v5133_v49 = vld [vmem:[#allocation5 + $0xa0] sm:$0xff]  ;;  %v5145_v52 = vld [vmem:[#allocation5 + $0x88] sm:$0xff]  ;;  %v83_v54 = vld [vmem:[%s7453_s0 + $0x30] sm:$0xff] }
  0x3b   :  { %538 = vmatprep.subr.mxu0 %v5040_v23  ;;  %4029 = vmatpush3.msra.mxu1 %v5042_v24  ;;  %v5149_v53 = vld [vmem:[#allocation5 + $0x60] sm:$0xff]  ;;  %v5156_v55 = vld [vmem:[#allocation5 + $0x50] sm:$0xff]  ;;  %v5164_v57 = vld [vmem:[#allocation5 + $0x48] sm:$0xff] }
  0x3c   :  { %215 = vmatprep.mubr.f32.mxu0 %v7464_v0  ;;  %539 = vmatpush1.msra.mxu0 %v5046_v25  ;;  %v5160_v56 = vld [vmem:[#allocation5 + $0x70] sm:$0xff]  ;;  %v5168_v58 = vld [vmem:[#allocation5 + $0x38] sm:$0xff]  ;;  %v5183_v62 = vld [vmem:[#allocation5 + $0x20] sm:$0xff] }
  0x3d   :  { %4030 = vmatprep.subr.mxu1 %v7464_v0  ;;  %3790 = vmatmul.mubr.msk.f32.gmra.mxu0 %vm114_vm0, %v79_v26  ;;  %v5172_v59 = vld [vmem:[#allocation5 + $0x58] sm:$0xff]  ;;  %v5176_v60 = vld [vmem:[#allocation5 + $0x30] sm:$0xff]  ;;  %v5187_v63 = vld [vmem:[#allocation5 + $0x40] sm:$0xff] }
  0x3e   :  { %540 = vmatprep.subr.mxu0 %v5058_v27  ;;  %4031 = vmatpush3.msra.mxu1 %v5060_v28  ;;  %v84_v61 = vld [vmem:[%s7453_s0 + $0x38] sm:$0xff]  ;;  %v5195_v2 = vld [vmem:[#allocation5 + $0x8] sm:$0xff]  ;;  %v5201_v4 = vld [vmem:[#allocation5] sm:$0xff] }
  0x3f   :  { %541 = vmatpush1.msra.mxu0 %v5064_v29  ;;  %4032 = vmatprep.subr.mxu1 %v7464_v0  ;;  %v5191_v1 = vld [vmem:[#allocation5 + $0x18] sm:$0xff]  ;;  %v5199_v3 = vld [vmem:[#allocation5 + $0x28] sm:$0xff]  ;;  %v5207_v5 = vld [vmem:[#allocation5 + $0x10] sm:$0xff] }
  0x40   :  { %542 = vmatprep.subr.mxu0 %v5068_v30  ;;  %4033 = vmatpush3.msra.mxu1 %v5070_v31  ;;  %7933 = vst [vmem:[#allocation12_spill] sm:$0xff] %v5207_v5  ;;  %v5211_v6 = vld [vmem:[#allocation2 + $0x2d8] sm:$0xff]  ;;  %v5215_v7 = vld [vmem:[#allocation2 + $0x2d0] sm:$0xff]  ;;  %v5217_v8 = vld [vmem:[#allocation2 + $0x2e8] sm:$0xff] }
  0x41   :  { %221 = vmatprep.mubr.f32.mxu0 %v7464_v0  ;;  %543 = vmatpush1.msra.mxu0 %v5074_v32  ;;  %7934 = vst [vmem:[#allocation13_spill] sm:$0xff] %v5215_v7  ;;  %7935 = vst [vmem:[#allocation14_spill] sm:$0xff] %v5217_v8  ;;  %v5221_v9 = vld [vmem:[#allocation2 + $0x2a8] sm:$0xff]  ;;  %v5226_v10 = vld [vmem:[#allocation2 + $0x2e0] sm:$0xff] }
  0x42   :  { %4034 = vmatprep.subr.mxu1 %v7464_v0  ;;  %3791 = vmatmul.mubr.msk.f32.gmra.mxu0 %vm114_vm0, %v80_v33  ;;  %7936 = vst [vmem:[#allocation15_spill] sm:$0xff] %v5221_v9  ;;  %7937 = vst [vmem:[#allocation16_spill] sm:$0xff] %v5226_v10  ;;  %v5228_v11 = vld [vmem:[#allocation2 + $0x2a0] sm:$0xff]  ;;  %v5232_v12 = vld [vmem:[#allocation2 + $0x2b8] sm:$0xff] }
  0x43   :  { %544 = vmatprep.subr.mxu0 %v5081_v34  ;;  %4035 = vmatpush3.msra.mxu1 %v5083_v35  ;;  %7938 = vst [vmem:[#allocation17_spill] sm:$0xff] %v5228_v11  ;;  %7939 = vst [vmem:[#allocation18_spill] sm:$0xff] %v5232_v12  ;;  %v5234_v13 = vld [vmem:[#allocation2 + $0x278] sm:$0xff]  ;;  %v5238_v16 = vld [vmem:[#allocation2 + $0x2b0] sm:$0xff] }
  0x44   :  { %545 = vmatpush1.msra.mxu0 %v5087_v36  ;;  %4036 = vmatprep.subr.mxu1 %v7464_v0  ;;  %7940 = vst [vmem:[#allocation19_spill] sm:$0xff] %v5234_v13  ;;  %7941 = vst [vmem:[#allocation20_spill] sm:$0xff] %v5238_v16 }
  0x45   :  { %546 = vmatprep.subr.mxu0 %v5091_v37  ;;  %4037 = vmatpush3.msra.mxu1 %v5093_v38 }
  0x46   :  { %227 = vmatprep.mubr.f32.mxu0 %v7464_v0  ;;  %547 = vmatpush1.msra.mxu0 %v5097_v39 }
  0x47   :  { %4038 = vmatprep.subr.mxu1 %v7464_v0  ;;  %3792 = vmatmul.mubr.msk.f32.gmra.mxu0 %vm114_vm0, %v81_v40 }
  0x48   :  { %548 = vmatprep.subr.mxu0 %v5104_v41  ;;  %4039 = vmatpush3.msra.mxu1 %v5108_v42 }
  0x49   :  { %549 = vmatpush1.msra.mxu0 %v5110_v43  ;;  %4040 = vmatprep.subr.mxu1 %v7464_v0 }
  0x4a   :  { %550 = vmatprep.subr.mxu0 %v5114_v44  ;;  %4041 = vmatpush3.msra.mxu1 %v5118_v45 }
  0x4b   :  { %233 = vmatprep.mubr.f32.mxu0 %v7464_v0  ;;  %551 = vmatpush1.msra.mxu0 %v5122_v46 }
  0x4c   :  { %4042 = vmatprep.subr.mxu1 %v7464_v0  ;;  %3793 = vmatmul.mubr.msk.f32.gmra.mxu0 %vm114_vm0, %v82_v47 }
  0x4d   :  { %552 = vmatprep.subr.mxu0 %v5129_v48  ;;  %4043 = vmatpush3.msra.mxu1 %v5133_v49 }
  0x4e   :  { %4015 = vmatprep.mubr.msk.f32.mxu1 %vm114_vm0, %v79_v26  ;;  %553 = vmatpush1.msra.mxu0 %v5137_v50  ;;  %v5240_v26 = vld [vmem:[#allocation2 + $0x270] sm:$0xff] }
  0x4f   :  { %4044 = vmatprep.subr.mxu1 %v7464_v0  ;;  %4016 = vmatmul.mubr.msk.f32.gmra.mxu1 %vm114_vm0, %v80_v33  ;;  %7942 = vst [vmem:[#allocation21_spill] sm:$0xff] %v5240_v26  ;;  %v5244_v33 = vld [vmem:[#allocation2 + $0x288] sm:$0xff] }
  0x50   :  { %554 = vmatprep.subr.mxu0 %v5141_v51  ;;  %4045 = vmatpush3.msra.mxu1 %v5145_v52  ;;  %7943 = vst [vmem:[#allocation22_spill] sm:$0xff] %v5244_v33 }
  0x51   :  { %239 = vmatprep.mubr.f32.mxu0 %v7464_v0  ;;  %555 = vmatpush1.msra.mxu0 %v5149_v53 }
  0x52   :  { %4046 = vmatprep.subr.mxu1 %v7464_v0  ;;  %3794 = vmatmul.mubr.msk.f32.gmra.mxu0 %vm114_vm0, %v83_v54 }
  0x53   :  { %556 = vmatprep.subr.mxu0 %v5156_v55  ;;  %4047 = vmatpush3.msra.mxu1 %v5160_v56 }
  0x54   :  { %4018 = vmatprep.mubr.msk.f32.mxu1 %vm114_vm0, %v81_v40  ;;  %557 = vmatpush1.msra.mxu0 %v5164_v57  ;;  %v5246_v40 = vld [vmem:[#allocation2 + $0x248] sm:$0xff] }
  0x55   :  { %4048 = vmatprep.subr.mxu1 %v7464_v0  ;;  %4019 = vmatmul.mubr.msk.f32.gmra.mxu1 %vm114_vm0, %v82_v47  ;;  %7944 = vst [vmem:[#allocation23_spill] sm:$0xff] %v5246_v40  ;;  %v5250_v47 = vld [vmem:[#allocation2 + $0x280] sm:$0xff] }
  0x56   :  { %558 = vmatprep.subr.mxu0 %v5168_v58  ;;  %4049 = vmatpush3.msra.mxu1 %v5172_v59  ;;  %7945 = vst [vmem:[#allocation24_spill] sm:$0xff] %v5250_v47 }
  0x57   :  { %245 = vmatprep.mubr.f32.mxu0 %v7464_v0  ;;  %559 = vmatpush1.msra.mxu0 %v5176_v60 }
  0x58   :  { %4050 = vmatprep.subr.mxu1 %v7464_v0  ;;  %3795 = vmatmul.mubr.msk.f32.gmra.mxu0 %vm114_vm0, %v84_v61 }
  0x59   :  { %560 = vmatprep.subr.mxu0 %v5183_v62  ;;  %4051 = vmatpush3.msra.mxu1 %v5187_v63 }
  0x5a   :  { %4021 = vmatprep.mubr.msk.f32.mxu1 %vm114_vm0, %v83_v54  ;;  %561 = vmatpush1.msra.mxu0 %v5191_v1  ;;  %v5252_v54 = vld [vmem:[#allocation2 + $0x240] sm:$0xff] }
  0x5b   :  { %4052 = vmatprep.subr.mxu1 %v7464_v0  ;;  %4022 = vmatmul.mubr.msk.f32.gmra.mxu1 %vm114_vm0, %v84_v61  ;;  %7946 = vst [vmem:[#allocation25_spill] sm:$0xff] %v5252_v54  ;;  %v5256_v61 = vld [vmem:[#allocation2 + $0x258] sm:$0xff] }
  0x5c   :  { %562 = vmatprep.subr.mxu0 %v5195_v2  ;;  %4053 = vmatpush3.msra.mxu1 %v5199_v3  ;;  %7947 = vst [vmem:[#allocation26_spill] sm:$0xff] %v5256_v61 }
  0x5d   :  { %563 = vmatpush1.msra.mxu0 %v5201_v4  ;;  %596 = vmatprep.mubr.f32.mxu0 %v7464_v0 }
  0x5e   :  { %4054 = vmatprep.subr.mxu1 %v7464_v0  ;;  %597 = vmatmul.mubr.f32.vlgmr.msra.gmra.mxu0 %v7464_v0 }
  0x5f   :  { %4055 = vmatpush3.msra.mxu1 %v5207_v5  ;;  %695 = vmatprep.subr.mxu0 %v5211_v6 }
  0x60   :  { %4056 = vmatprep.mubr.msk.f32.mxu1 %vm4903_vm1, %v7464_v0  ;;  %696 = vmatpush1.msra.mxu0 %v5215_v7 }
  0x61   :  { %766 = vmatprep.subr.mxu1 %v5217_v8  ;;  %4057 = vmatmul.mubr.f32.vlgmr.msra.gmra.mxu1 %v7464_v0  ;;  %v5258_v0 = vld [vmem:[#allocation2 + $0x218] sm:$0xff] }
  0x62   :  { %697 = vmatprep.subr.mxu0 %v5221_v9  ;;  %767 = vmatpush1.msra.mxu1 %v5226_v10  ;;  %7948 = vst [vmem:[#allocation27_spill] sm:$0xff] %v5258_v0 }
  0x63   :  { %698 = vmatpush1.msra.mxu0 %v5228_v11  ;;  %768 = vmatprep.subr.mxu1 %v5232_v12  ;;  %v5262_v11 = vld [vmem:[#allocation2 + $0x250] sm:$0xff] }
  0x64   :  { %699 = vmatprep.subr.mxu0 %v5234_v13  ;;  %769 = vmatpush1.msra.mxu1 %v5238_v16  ;;  %7949 = vst [vmem:[#allocation28_spill] sm:$0xff] %v5262_v11  ;;  %v5264_v12 = vld [vmem:[#allocation2 + $0x210] sm:$0xff]  ;;  %v5268_v13 = vld [vmem:[#allocation2 + $0x228] sm:$0xff] }
  0x65   :  { %700 = vmatpush1.msra.mxu0 %v5240_v26  ;;  %770 = vmatprep.subr.mxu1 %v5244_v33  ;;  %7950 = vst [vmem:[#allocation29_spill] sm:$0xff] %v5264_v12  ;;  %7951 = vst [vmem:[#allocation30_spill] sm:$0xff] %v5268_v13  ;;  %v5270_v16 = vld [vmem:[#allocation2 + $0x1e8] sm:$0xff]  ;;  %v5274_v26 = vld [vmem:[#allocation2 + $0x220] sm:$0xff] }
  0x66   :  { %701 = vmatprep.subr.mxu0 %v5246_v40  ;;  %771 = vmatpush1.msra.mxu1 %v5250_v47  ;;  %7952 = vst [vmem:[#allocation31_spill] sm:$0xff] %v5270_v16  ;;  %7953 = vst [vmem:[#allocation32_spill] sm:$0xff] %v5274_v26  ;;  %v5276_v33 = vld [vmem:[#allocation2 + $0x1e0] sm:$0xff]  ;;  %v5280_v40 = vld [vmem:[#allocation2 + $0x1f8] sm:$0xff] }
  0x67   :  { %702 = vmatpush1.msra.mxu0 %v5252_v54  ;;  %772 = vmatprep.subr.mxu1 %v5256_v61  ;;  %7954 = vst [vmem:[#allocation33_spill] sm:$0xff] %v5276_v33  ;;  %7955 = vst [vmem:[#allocation34_spill] sm:$0xff] %v5280_v40  ;;  %v5282_v47 = vld [vmem:[#allocation2 + $0x1b8] sm:$0xff]  ;;  %v5286_v54 = vld [vmem:[#allocation2 + $0x1f0] sm:$0xff] }
  0x68   :  { %703 = vmatprep.subr.mxu0 %v5258_v0  ;;  %773 = vmatpush1.msra.mxu1 %v5262_v11  ;;  %7956 = vst [vmem:[#allocation35_spill] sm:$0xff] %v5282_v47  ;;  %7957 = vst [vmem:[#allocation36_spill] sm:$0xff] %v5286_v54  ;;  %v5288_v61 = vld [vmem:[#allocation2 + $0x1b0] sm:$0xff]  ;;  %v5292_v0 = vld [vmem:[#allocation2 + $0x1c8] sm:$0xff] }
  0x69   :  { %704 = vmatpush1.msra.mxu0 %v5264_v12  ;;  %774 = vmatprep.subr.mxu1 %v5268_v13  ;;  %7958 = vst [vmem:[#allocation37_spill] sm:$0xff] %v5288_v61  ;;  %7959 = vst [vmem:[#allocation38_spill] sm:$0xff] %v5292_v0  ;;  %v5294_v11 = vld [vmem:[#allocation2 + $0x188] sm:$0xff]  ;;  %v5298_v12 = vld [vmem:[#allocation2 + $0x1c0] sm:$0xff] }
  0x6a   :  { %705 = vmatprep.subr.mxu0 %v5270_v16  ;;  %775 = vmatpush1.msra.mxu1 %v5274_v26  ;;  %7960 = vst [vmem:[#allocation39_spill] sm:$0xff] %v5294_v11  ;;  %7961 = vst [vmem:[#allocation40_spill] sm:$0xff] %v5298_v12  ;;  %v5300_v13 = vld [vmem:[#allocation2 + $0x180] sm:$0xff]  ;;  %v5304_v16 = vld [vmem:[#allocation2 + $0x198] sm:$0xff] }
  0x6b   :  { %706 = vmatpush1.msra.mxu0 %v5276_v33  ;;  %776 = vmatprep.subr.mxu1 %v5280_v40  ;;  %7962 = vst [vmem:[#allocation41_spill] sm:$0xff] %v5300_v13  ;;  %7963 = vst [vmem:[#allocation42_spill] sm:$0xff] %v5304_v16  ;;  %v5306_v26 = vld [vmem:[#allocation2 + $0x158] sm:$0xff]  ;;  %v5310_v33 = vld [vmem:[#allocation2 + $0x190] sm:$0xff] }
  0x6c   :  { %707 = vmatprep.subr.mxu0 %v5282_v47  ;;  %777 = vmatpush1.msra.mxu1 %v5286_v54  ;;  %7964 = vst [vmem:[#allocation43_spill] sm:$0xff] %v5306_v26  ;;  %7965 = vst [vmem:[#allocation44_spill] sm:$0xff] %v5310_v33  ;;  %v5312_v40 = vld [vmem:[#allocation2 + $0x150] sm:$0xff]  ;;  %v5316_v47 = vld [vmem:[#allocation2 + $0x168] sm:$0xff] }
  0x6d   :  { %708 = vmatpush1.msra.mxu0 %v5288_v61  ;;  %778 = vmatprep.subr.mxu1 %v5292_v0  ;;  %7966 = vst [vmem:[#allocation45_spill] sm:$0xff] %v5312_v40  ;;  %7967 = vst [vmem:[#allocation46_spill] sm:$0xff] %v5316_v47  ;;  %v5318_v54 = vld [vmem:[#allocation2 + $0x128] sm:$0xff]  ;;  %v5322_v61 = vld [vmem:[#allocation2 + $0x160] sm:$0xff] }
  0x6e   :  { %709 = vmatprep.subr.mxu0 %v5294_v11  ;;  %779 = vmatpush1.msra.mxu1 %v5298_v12  ;;  %7968 = vst [vmem:[#allocation47_spill] sm:$0xff] %v5318_v54  ;;  %7969 = vst [vmem:[#allocation48_spill] sm:$0xff] %v5322_v61  ;;  %v5324_v0 = vld [vmem:[#allocation2 + $0x120] sm:$0xff]  ;;  %v5328_v11 = vld [vmem:[#allocation2 + $0x138] sm:$0xff] }
  0x6f   :  { %710 = vmatpush1.msra.mxu0 %v5300_v13  ;;  %780 = vmatprep.subr.mxu1 %v5304_v16  ;;  %7970 = vst [vmem:[#allocation49_spill] sm:$0xff] %v5324_v0  ;;  %7971 = vst [vmem:[#allocation50_spill] sm:$0xff] %v5328_v11  ;;  %v5330_v12 = vld [vmem:[#allocation2 + $0xf8] sm:$0xff]  ;;  %v5334_v13 = vld [vmem:[#allocation2 + $0x130] sm:$0xff] }
  0x70   :  { %711 = vmatprep.subr.mxu0 %v5306_v26  ;;  %781 = vmatpush1.msra.mxu1 %v5310_v33  ;;  %7972 = vst [vmem:[#allocation51_spill] sm:$0xff] %v5330_v12  ;;  %7973 = vst [vmem:[#allocation52_spill] sm:$0xff] %v5334_v13  ;;  %v5336_v16 = vld [vmem:[#allocation2 + $0xf0] sm:$0xff]  ;;  %v5340_v26 = vld [vmem:[#allocation2 + $0x108] sm:$0xff] }
  0x71   :  { %712 = vmatpush1.msra.mxu0 %v5312_v40  ;;  %782 = vmatprep.subr.mxu1 %v5316_v47  ;;  %7974 = vst [vmem:[#allocation53_spill] sm:$0xff] %v5336_v16  ;;  %7975 = vst [vmem:[#allocation54_spill] sm:$0xff] %v5340_v26  ;;  %v5342_v33 = vld [vmem:[#allocation2 + $0xc8] sm:$0xff]  ;;  %v5346_v40 = vld [vmem:[#allocation2 + $0x100] sm:$0xff] }
  0x72   :  { %713 = vmatprep.subr.mxu0 %v5318_v54  ;;  %783 = vmatpush1.msra.mxu1 %v5322_v61  ;;  %7976 = vst [vmem:[#allocation55_spill] sm:$0xff] %v5342_v33  ;;  %7977 = vst [vmem:[#allocation56_spill] sm:$0xff] %v5346_v40  ;;  %v5348_v47 = vld [vmem:[#allocation2 + $0xc0] sm:$0xff]  ;;  %v5352_v54 = vld [vmem:[#allocation2 + $0xd8] sm:$0xff] }
  0x73   :  { %714 = vmatpush1.msra.mxu0 %v5324_v0  ;;  %784 = vmatprep.subr.mxu1 %v5328_v11  ;;  %7978 = vst [vmem:[#allocation57_spill] sm:$0xff] %v5348_v47  ;;  %7979 = vst [vmem:[#allocation58_spill] sm:$0xff] %v5352_v54  ;;  %v5354_v61 = vld [vmem:[#allocation2 + $0x98] sm:$0xff]  ;;  %v5358_v0 = vld [vmem:[#allocation2 + $0xd0] sm:$0xff] }
  0x74   :  { %715 = vmatprep.subr.mxu0 %v5330_v12  ;;  %785 = vmatpush1.msra.mxu1 %v5334_v13  ;;  %7980 = vst [vmem:[#allocation59_spill] sm:$0xff] %v5354_v61  ;;  %7981 = vst [vmem:[#allocation60_spill] sm:$0xff] %v5358_v0  ;;  %v5360_v11 = vld [vmem:[#allocation2 + $0x90] sm:$0xff]  ;;  %v5364_v12 = vld [vmem:[#allocation2 + $0xa8] sm:$0xff] }
  0x75   :  { %716 = vmatpush1.msra.mxu0 %v5336_v16  ;;  %786 = vmatprep.subr.mxu1 %v5340_v26  ;;  %7982 = vst [vmem:[#allocation61_spill] sm:$0xff] %v5360_v11  ;;  %7983 = vst [vmem:[#allocation62_spill] sm:$0xff] %v5364_v12  ;;  %v5366_v13 = vld [vmem:[#allocation2 + $0x68] sm:$0xff]  ;;  %v5370_v16 = vld [vmem:[#allocation2 + $0xa0] sm:$0xff] }
  0x76   :  { %717 = vmatprep.subr.mxu0 %v5342_v33  ;;  %787 = vmatpush1.msra.mxu1 %v5346_v40  ;;  %7984 = vst [vmem:[#allocation63_spill] sm:$0xff] %v5366_v13  ;;  %7985 = vst [vmem:[#allocation64_spill] sm:$0xff] %v5370_v16  ;;  %v5372_v26 = vld [vmem:[#allocation2 + $0x60] sm:$0xff]  ;;  %v5376_v33 = vld [vmem:[#allocation2 + $0x78] sm:$0xff] }
  0x77   :  { %718 = vmatpush1.msra.mxu0 %v5348_v47  ;;  %788 = vmatprep.subr.mxu1 %v5352_v54  ;;  %7986 = vst [vmem:[#allocation65_spill] sm:$0xff] %v5372_v26  ;;  %7987 = vst [vmem:[#allocation66_spill] sm:$0xff] %v5376_v33  ;;  %v5378_v40 = vld [vmem:[#allocation2 + $0x38] sm:$0xff]  ;;  %v5382_v47 = vld [vmem:[#allocation2 + $0x70] sm:$0xff] }
  0x78   :  { %719 = vmatprep.subr.mxu0 %v5354_v61  ;;  %789 = vmatpush1.msra.mxu1 %v5358_v0  ;;  %7988 = vst [vmem:[#allocation67_spill] sm:$0xff] %v5378_v40  ;;  %7989 = vst [vmem:[#allocation68_spill] sm:$0xff] %v5382_v47  ;;  %v5384_v54 = vld [vmem:[#allocation2 + $0x30] sm:$0xff]  ;;  %v5388_v61 = vld [vmem:[#allocation2 + $0x48] sm:$0xff] }
  0x79   :  { %720 = vmatpush1.msra.mxu0 %v5360_v11  ;;  %790 = vmatprep.subr.mxu1 %v5364_v12  ;;  %7990 = vst [vmem:[#allocation69_spill] sm:$0xff] %v5384_v54  ;;  %7991 = vst [vmem:[#allocation70_spill] sm:$0xff] %v5388_v61  ;;  %v5390_v0 = vld [vmem:[#allocation2 + $0x8] sm:$0xff]  ;;  %v5394_v11 = vld [vmem:[#allocation2 + $0x40] sm:$0xff] }
  0x7a   :  { %721 = vmatprep.subr.mxu0 %v5366_v13  ;;  %791 = vmatpush1.msra.mxu1 %v5370_v16  ;;  %7992 = vst [vmem:[#allocation71_spill] sm:$0xff] %v5390_v0  ;;  %7993 = vst [vmem:[#allocation72_spill] sm:$0xff] %v5394_v11  ;;  %v5396_v12 = vld [vmem:[#allocation2] sm:$0xff]  ;;  %v5400_v13 = vld [vmem:[#allocation2 + $0x18] sm:$0xff] }
  0x7b   :  { %722 = vmatpush1.msra.mxu0 %v5372_v26  ;;  %792 = vmatprep.subr.mxu1 %v5376_v33  ;;  %7994 = vst [vmem:[#allocation73_spill] sm:$0xff] %v5396_v12  ;;  %7995 = vst [vmem:[#allocation74_spill] sm:$0xff] %v5400_v13  ;;  %v5404_v26 = vld [vmem:[#allocation2 + $0x10] sm:$0xff]  ;;  %v7998_v33 = vmov 0.0  }
  0x7c   :  { %723 = vmatprep.subr.mxu0 %v5378_v40  ;;  %793 = vmatpush1.msra.mxu1 %v5382_v47  ;;  %7996 = vst [vmem:[#allocation75_spill] sm:$0xff] %v5404_v26  ;;  %v5408_v40 = vld [vmem:[#allocation2 + $0x2f8] sm:$0xff] }
  0x7d   :  { %724 = vmatpush1.msra.mxu0 %v5384_v54  ;;  %794 = vmatprep.subr.mxu1 %v5388_v61  ;;  %7997 = vst [vmem:[#allocation76_spill] sm:$0xff] %v5408_v40 }
  0x7e   :  { %725 = vmatprep.subr.mxu0 %v5390_v0  ;;  %795 = vmatpush1.msra.mxu1 %v5394_v11  ;;  %v99_v0 = vlaneseq }
  0x7f   :  { %726 = vmatpush1.msra.mxu0 %v5396_v12  ;;  %796 = vmatprep.subr.mxu1 %v5400_v13  ;;  %v97_v12 = vld [vmem:[%s7455_s2] sm:$0x7] }
  0x80   :  { %759 = vmatprep.mubr.f32.mxu0 %v7998_v33  ;;  %797 = vmatpush1.msra.mxu1 %v5404_v26  ;;  %v5416_v54 = vshrl.u32 %v99_v0, 7 }
  0x81   :  { %830 = vmatprep.mubr.f32.mxu1 %v7998_v33  ;;  %837 = vmatprep.subr.mxu0 %v5408_v40 }
  0x82   :  { %933 = vmatprep.subr.mxu1 %v5010_v14  ;;  %7999 = vst [vmem:[#allocation77_spill] sm:$0xff] %v5416_v54  ;;  %v7529_v11 = vsub.s32 0, %v5416_v54  ;;  %v7532_v26 = vsub.s32 1, %v5416_v54 }
  0x84   :  { %v5424_v13 = vrot.slane %v97_v12, %v7529_v11  ;;  %v5430_v0 = vrot.slane %v97_v12, %v7532_v26  ;;  %v7535_v11 = vsub.s32 2, %v5416_v54  ;;  %v5451_v54 = vld [vmem:[#allocation2 + $0x2c8] sm:$0xff] }
  0x86   :  { %8000 = vst [vmem:[#allocation78_spill] sm:$0xff] %v5424_v13  ;;  %8001 = vst [vmem:[#allocation79_spill] sm:$0xff] %v5430_v0 }
  0xf2   :  { %v205_v61 = vpop.f32.mrf.mxu0 }
  0xf3   :  { %v206_v40 = vadd.f32 %v205_v61, %v5424_v13  ;;  %v5449_v13 = vld [vmem:[#allocation2 + $0x2f0] sm:$0xff] }
  0xf4   :  { %v207_v14 = vpop.f32.mrf.mxu0 }
  0xf5   :  { %v3806_v47 = vmul.f32 -1.442695, %v206_v40  ;;  %v208_v16 = vadd.f32 %v207_v14, %v5430_v0  ;;  %v5434_v5 = vpop.f32.mrf.mxu1  ;;  %v5438_v40 = vrot.slane %v97_v12, %v7535_v11 }
  0xf6   :  { %8002 = vst [vmem:[#allocation80_spill] sm:$0xff] %v5434_v5 }
  0xf7   :  { %4351 = vpow2.f32 %v3806_v47  ;;  %v3807_v9 = vmul.f32 -1.442695, %v208_v16  ;;  %v318_v26 = vpop.f32.mrf.mxu1  ;;  %v5443_v47 = vld [vmem:[%s7456_s3] ss:$0 sm:$0xff] }
  0xf9   :  { %4353 = vpow2.f32 %v3807_v9 }
 0x104   :  { %v4352_v10 = vpop.eup %4351 }
 0x105   :  { %v681_v7 = vadd.f32 1.0, %v4352_v10 }
 0x106   :  { %v4354_v8 = vpop.eup %4353 }
 0x107   :  { %4355 = vrcp.f32 %v681_v7  ;;  %v682_v61 = vadd.f32 1.0, %v4354_v8  ;;  %v319_v7 = vadd.f32 %v318_v26, %v5438_v40  ;;  %v5455_v26 = vld [vmem:[#allocation2 + $0x2c0] sm:$0xff] }
 0x109   :  { %4357 = vrcp.f32 %v682_v61  ;;  %v5458_v61 = vld [vmem:[#allocation2 + $0x298] sm:$0xff] }
 0x114   :  { %v4356_v9 = vpop.eup %4355 }
 0x115   :  { %v688_v10 = vmul.f32 %v4356_v9, %v5443_v47  ;;  %v5470_v9 = vld [vmem:[#allocation2 + $0x260] sm:$0xff] }
 0x116   :  { %v4358_v14 = vpop.eup %4357 }
 0x117   :  { %v689_v16 = vadd.f32 %v688_v10, %v319_v7  ;;  %v691_v8 = vsub.f32 1.0, %v4358_v14  ;;  %v693_v12 = vmul.f32 0.0, %v4358_v14  ;;  %v5474_v7 = vld [vmem:[#allocation2 + $0x238] sm:$0xff]  ;;  %v5556_v10 = vpop.f32.mrf.mxu1  ;;  %v8030_v14 = vld [vmem:[#allocation77_spill] sm:$0xff] }
 0x118   :  { %8008 = vst [vmem:[#allocation86_spill] sm:$0xff] %v5556_v10 }
 0x119   :  { %4359 = vtanh.f32 %v689_v16  ;;  %v5566_v16 = vpop.f32.mrf.mxu1 }
 0x11a   :  { %8011 = vst [vmem:[#allocation89_spill] sm:$0xff] %v5566_v16 }
 0x126   :  { %v4360_v5 = vpop.eup %4359 }
 0x127   :  { %v692_v0 = vmul.f32 %v4360_v5, %v691_v8  ;;  %v5462_v5 = vld [vmem:[#allocation2 + $0x290] sm:$0xff]  ;;  %v8031_v8 = vsub.s32 0, %v8030_v14 }
 0x129   :  { %v5447_v11 = vadd.f32 %v693_v12, %v692_v0  ;;  %v5466_v0 = vld [vmem:[#allocation2 + $0x268] sm:$0xff] }
 0x12b   :  { %760 = vmatmul.mubr.f32.vlgmr.msra.gmra.mxu0 %v5447_v11  ;;  %831 = vmatmul.mubr.f32.vlgmr.msra.gmra.mxu1 %v5447_v11 }
 0x12c   :  { %838 = vmatpush1.msra.mxu0 %v5449_v13  ;;  %901 = vmatprep.mubr.f32.mxu0 %v7998_v33 }
 0x12d   :  { %839 = vmatprep.subr.mxu0 %v5451_v54  ;;  %934 = vmatpush1.msra.mxu1 %v5012_v15  ;;  %v5478_v15 = vld [vmem:[#allocation2 + $0x230] sm:$0xff] }
 0x12e   :  { %840 = vmatpush1.msra.mxu0 %v5455_v26  ;;  %935 = vmatprep.subr.mxu1 %v5019_v17  ;;  %v5482_v17 = vld [vmem:[#allocation2 + $0x208] sm:$0xff] }
 0x12f   :  { %841 = vmatprep.subr.mxu0 %v5458_v61  ;;  %936 = vmatpush1.msra.mxu1 %v5024_v19  ;;  %v5486_v19 = vld [vmem:[#allocation2 + $0x200] sm:$0xff] }
 0x130   :  { %842 = vmatpush1.msra.mxu0 %v5462_v5  ;;  %937 = vmatprep.subr.mxu1 %v5030_v20  ;;  %v5490_v20 = vld [vmem:[#allocation2 + $0x1d8] sm:$0xff] }
 0x131   :  { %843 = vmatprep.subr.mxu0 %v5466_v0  ;;  %938 = vmatpush1.msra.mxu1 %v5036_v22  ;;  %v5494_v22 = vld [vmem:[#allocation2 + $0x1d0] sm:$0xff] }
 0x132   :  { %844 = vmatpush1.msra.mxu0 %v5470_v9  ;;  %939 = vmatprep.subr.mxu1 %v5040_v23  ;;  %v5498_v23 = vld [vmem:[#allocation2 + $0x1a8] sm:$0xff] }
 0x133   :  { %845 = vmatprep.subr.mxu0 %v5474_v7  ;;  %940 = vmatpush1.msra.mxu1 %v5046_v25  ;;  %v5502_v25 = vld [vmem:[#allocation2 + $0x1a0] sm:$0xff] }
 0x134   :  { %846 = vmatpush1.msra.mxu0 %v5478_v15  ;;  %941 = vmatprep.subr.mxu1 %v5058_v27  ;;  %v5506_v27 = vld [vmem:[#allocation2 + $0x178] sm:$0xff] }
 0x135   :  { %847 = vmatprep.subr.mxu0 %v5482_v17  ;;  %942 = vmatpush1.msra.mxu1 %v5064_v29  ;;  %v5510_v29 = vld [vmem:[#allocation2 + $0x170] sm:$0xff] }
 0x136   :  { %848 = vmatpush1.msra.mxu0 %v5486_v19  ;;  %943 = vmatprep.subr.mxu1 %v5068_v30  ;;  %v5514_v30 = vld [vmem:[#allocation2 + $0x148] sm:$0xff] }
 0x137   :  { %849 = vmatprep.subr.mxu0 %v5490_v20  ;;  %944 = vmatpush1.msra.mxu1 %v5074_v32  ;;  %v5518_v32 = vld [vmem:[#allocation2 + $0x140] sm:$0xff] }
 0x138   :  { %850 = vmatpush1.msra.mxu0 %v5494_v22  ;;  %945 = vmatprep.subr.mxu1 %v5081_v34  ;;  %v5522_v34 = vld [vmem:[#allocation2 + $0x118] sm:$0xff] }
 0x139   :  { %851 = vmatprep.subr.mxu0 %v5498_v23  ;;  %946 = vmatpush1.msra.mxu1 %v5087_v36  ;;  %v5526_v36 = vld [vmem:[#allocation2 + $0x110] sm:$0xff] }
 0x13a   :  { %852 = vmatpush1.msra.mxu0 %v5502_v25  ;;  %947 = vmatprep.subr.mxu1 %v5091_v37  ;;  %v5530_v37 = vld [vmem:[#allocation2 + $0xe8] sm:$0xff] }
 0x13b   :  { %853 = vmatprep.subr.mxu0 %v5506_v27  ;;  %948 = vmatpush1.msra.mxu1 %v5097_v39  ;;  %v5534_v39 = vld [vmem:[#allocation2 + $0xe0] sm:$0xff] }
 0x13c   :  { %854 = vmatpush1.msra.mxu0 %v5510_v29  ;;  %949 = vmatprep.subr.mxu1 %v5104_v41  ;;  %v5538_v41 = vld [vmem:[#allocation2 + $0xb8] sm:$0xff] }
 0x13d   :  { %855 = vmatprep.subr.mxu0 %v5514_v30  ;;  %950 = vmatpush1.msra.mxu1 %v5110_v43  ;;  %8003 = vst [vmem:[#allocation81_spill] sm:$0xff] %v5538_v41  ;;  %v5542_v43 = vld [vmem:[#allocation2 + $0xb0] sm:$0xff] }
 0x13e   :  { %856 = vmatpush1.msra.mxu0 %v5518_v32  ;;  %951 = vmatprep.subr.mxu1 %v5114_v44  ;;  %8004 = vst [vmem:[#allocation82_spill] sm:$0xff] %v5542_v43  ;;  %v5546_v44 = vld [vmem:[#allocation2 + $0x88] sm:$0xff] }
 0x13f   :  { %857 = vmatprep.subr.mxu0 %v5522_v34  ;;  %952 = vmatpush1.msra.mxu1 %v5122_v46  ;;  %8005 = vst [vmem:[#allocation83_spill] sm:$0xff] %v5546_v44  ;;  %v5550_v46 = vld [vmem:[#allocation2 + $0x80] sm:$0xff] }
 0x140   :  { %858 = vmatpush1.msra.mxu0 %v5526_v36  ;;  %953 = vmatprep.subr.mxu1 %v5129_v48  ;;  %8006 = vst [vmem:[#allocation84_spill] sm:$0xff] %v5550_v46  ;;  %v5554_v48 = vld [vmem:[#allocation2 + $0x58] sm:$0xff] }
 0x141   :  { %859 = vmatprep.subr.mxu0 %v5530_v37  ;;  %954 = vmatpush1.msra.mxu1 %v5137_v50  ;;  %8007 = vst [vmem:[#allocation85_spill] sm:$0xff] %v5554_v48  ;;  %v5560_v50 = vld [vmem:[#allocation2 + $0x50] sm:$0xff] }
 0x142   :  { %860 = vmatpush1.msra.mxu0 %v5534_v39  ;;  %955 = vmatprep.subr.mxu1 %v5141_v51  ;;  %8009 = vst [vmem:[#allocation87_spill] sm:$0xff] %v5560_v50  ;;  %v5564_v51 = vld [vmem:[#allocation2 + $0x28] sm:$0xff] }
 0x143   :  { %861 = vmatprep.subr.mxu0 %v5538_v41  ;;  %956 = vmatpush1.msra.mxu1 %v5149_v53  ;;  %8010 = vst [vmem:[#allocation88_spill] sm:$0xff] %v5564_v51  ;;  %v5570_v53 = vld [vmem:[#allocation2 + $0x20] sm:$0xff] }
 0x144   :  { %862 = vmatpush1.msra.mxu0 %v5542_v43  ;;  %957 = vmatprep.subr.mxu1 %v5156_v55  ;;  %8012 = vst [vmem:[#allocation90_spill] sm:$0xff] %v5570_v53  ;;  %v5578_v55 = vpop.f32.mrf.mxu1 }
 0x145   :  { %863 = vmatprep.subr.mxu0 %v5546_v44  ;;  %958 = vmatpush1.msra.mxu1 %v5164_v57  ;;  %8013 = vst [vmem:[#allocation91_spill] sm:$0xff] %v5578_v55 }
 0x146   :  { %864 = vmatpush1.msra.mxu0 %v5550_v46  ;;  %959 = vmatprep.subr.mxu1 %v5168_v58  ;;  %v5583_v57 = vpop.f32.mrf.mxu1 }
 0x147   :  { %865 = vmatprep.subr.mxu0 %v5554_v48  ;;  %960 = vmatpush1.msra.mxu1 %v5176_v60  ;;  %8014 = vst [vmem:[#allocation92_spill] sm:$0xff] %v5583_v57 }
 0x148   :  { %866 = vmatpush1.msra.mxu0 %v5560_v50  ;;  %961 = vmatprep.subr.mxu1 %v5183_v62  ;;  %v5594_v58 = vpop.f32.mrf.mxu1 }
 0x149   :  { %867 = vmatprep.subr.mxu0 %v5564_v51  ;;  %962 = vmatpush1.msra.mxu1 %v5191_v1  ;;  %8015 = vst [vmem:[#allocation93_spill] sm:$0xff] %v5594_v58  ;;  %v8032_v58 = vsub.s32 1, %v8030_v14 }
 0x14a   :  { %868 = vmatpush1.msra.mxu0 %v5570_v53  ;;  %963 = vmatprep.subr.mxu1 %v5195_v2 }
 0x14b   :  { %902 = vmatmul.mubr.f32.vlgmr.msra.gmra.mxu0 %v5447_v11  ;;  %4059 = vmatprep.subr.mxu0 %v7998_v33 }
 0x14c   :  { %4060 = vmatpush3.msra.mxu0 %v5021_v18  ;;  %964 = vmatpush1.msra.mxu1 %v5201_v4  ;;  %v5598_v18 = vpop.f32.mrf.mxu1 }
 0x14d   :  { %4061 = vmatprep.subr.mxu0 %v7998_v33  ;;  %997 = vmatprep.mubr.f32.mxu1 %v7998_v33  ;;  %8016 = vst [vmem:[#allocation94_spill] sm:$0xff] %v5598_v18 }
 0x14e   :  { %4062 = vmatpush3.msra.mxu0 %v5032_v21  ;;  %4091 = vmatprep.mubr.msk.f32.mxu0 %vm4903_vm1, %v7998_v33  ;;  %v5604_v21 = vpop.f32.mrf.mxu1 }
 0x14f   :  { %4063 = vmatprep.subr.mxu0 %v7998_v33  ;;  %1096 = vmatprep.subr.mxu1 %v5211_v6  ;;  %v501_v6 = vld [vmem:[%s7459_s6] sm:$0x7] }
 0x150   :  { %4064 = vmatpush3.msra.mxu0 %v5042_v24  ;;  %v4058_v60 = vpop.f32.mrf.mxu1  ;;  %v8017_v24 = vld [vmem:[#allocation12_spill] sm:$0xff]  ;;  %v5657_v12 = vrot.slane %v501_v6, %v8031_v8  ;;  %v5661_v18 = vrot.slane %v501_v6, %v8032_v58 }
 0x151   :  { %4065 = vmatprep.subr.mxu0 %v7998_v33 }
 0x152   :  { %4066 = vmatpush3.msra.mxu0 %v5060_v28  ;;  %v8018_v28 = vld [vmem:[#allocation14_spill] sm:$0xff] }
 0x153   :  { %4067 = vmatprep.subr.mxu0 %v7998_v33 }
 0x154   :  { %4068 = vmatpush3.msra.mxu0 %v5070_v31  ;;  %v211_v31 = vpop.f32.mrf.mxu0 }
 0x155   :  { %4069 = vmatprep.subr.mxu0 %v7998_v33 }
 0x156   :  { %4070 = vmatpush3.msra.mxu0 %v5083_v35  ;;  %v213_v35 = vpop.f32.mrf.mxu0 }
 0x157   :  { %4071 = vmatprep.subr.mxu0 %v7998_v33 }
 0x158   :  { %4072 = vmatpush3.msra.mxu0 %v5093_v38  ;;  %v5628_v38 = vpop.f32.mrf.mxu0 }
 0x159   :  { %4073 = vmatprep.subr.mxu0 %v7998_v33 }
 0x15a   :  { %4074 = vmatpush3.msra.mxu0 %v5108_v42  ;;  %v5630_v42 = vpop.f32.mrf.mxu0 }
 0x15b   :  { %4075 = vmatprep.subr.mxu0 %v7998_v33  ;;  %8019 = vst [vmem:[#allocation12_spill] sm:$0xff] %v5630_v42 }
 0x15c   :  { %4076 = vmatpush3.msra.mxu0 %v5118_v45  ;;  %v5632_v45 = vpop.f32.mrf.mxu0 }
 0x15d   :  { %4077 = vmatprep.subr.mxu0 %v7998_v33  ;;  %8020 = vst [vmem:[#allocation14_spill] sm:$0xff] %v5632_v45 }
 0x15e   :  { %4078 = vmatpush3.msra.mxu0 %v5133_v49  ;;  %v5634_v49 = vpop.f32.mrf.mxu0 }
 0x15f   :  { %4079 = vmatprep.subr.mxu0 %v7998_v33  ;;  %8021 = vst [vmem:[#allocation95_spill] sm:$0xff] %v5634_v49 }
 0x160   :  { %4080 = vmatpush3.msra.mxu0 %v5145_v52  ;;  %v5636_v52 = vpop.f32.mrf.mxu0 }
 0x161   :  { %4081 = vmatprep.subr.mxu0 %v7998_v33  ;;  %8022 = vst [vmem:[#allocation96_spill] sm:$0xff] %v5636_v52 }
 0x162   :  { %4082 = vmatpush3.msra.mxu0 %v5160_v56  ;;  %v5638_v56 = vpop.f32.mrf.mxu0 }
 0x163   :  { %4083 = vmatprep.subr.mxu0 %v7998_v33  ;;  %8023 = vst [vmem:[#allocation97_spill] sm:$0xff] %v5638_v56 }
 0x164   :  { %4084 = vmatpush3.msra.mxu0 %v5172_v59  ;;  %v5640_v59 = vpop.f32.mrf.mxu0 }
 0x165   :  { %4085 = vmatprep.subr.mxu0 %v7998_v33  ;;  %8024 = vst [vmem:[#allocation98_spill] sm:$0xff] %v5640_v59 }
 0x166   :  { %4086 = vmatpush3.msra.mxu0 %v5187_v63  ;;  %v5642_v62 = vpop.f32.mrf.mxu0 }
 0x167   :  { %4087 = vmatprep.subr.mxu0 %v7998_v33  ;;  %8025 = vst [vmem:[#allocation99_spill] sm:$0xff] %v5642_v62 }
 0x168   :  { %4088 = vmatpush3.msra.mxu0 %v5199_v3  ;;  %v5644_v63 = vpop.f32.mrf.mxu0 }
 0x169   :  { %4089 = vmatprep.subr.mxu0 %v7998_v33  ;;  %8026 = vst [vmem:[#allocation100_spill] sm:$0xff] %v5644_v63 }
 0x16a   :  { %4090 = vmatpush3.msra.mxu0 %v8017_v24  ;;  %v5646_v1 = vpop.f32.mrf.mxu0 }
 0x16b   :  { %1167 = vmatprep.subr.mxu0 %v8018_v28  ;;  %8027 = vst [vmem:[#allocation101_spill] sm:$0xff] %v5646_v1  ;;  %v8033_v1 = vld [vmem:[#allocation78_spill] sm:$0xff] }
 0x16c   :  { %v5648_v2 = vpop.f32.mrf.mxu0 }
 0x16d   :  { %8028 = vst [vmem:[#allocation102_spill] sm:$0xff] %v5648_v2  ;;  %v212_v2 = vadd.f32 %v211_v31, %v8033_v1 }
 0x16e   :  { %v5650_v3 = vpop.f32.mrf.mxu0 }
 0x16f   :  { %8029 = vst [vmem:[#allocation103_spill] sm:$0xff] %v5650_v3 }
 0x170   :  { %v598_v4 = vpop.f32.mrf.mxu0 }
 0x172   :  { %v600_v60 = vpop.f32.mrf.mxu0 }
 0x1eb   :  { %v761_v24 = vpop.f32.mrf.mxu0  ;;  %v832_v28 = vpop.f32.mrf.mxu1 }
 0x1ec   :  { %v908_v3 = vadd.f32 %v761_v24, %v5657_v12  ;;  %v8034_v24 = vld [vmem:[#allocation79_spill] sm:$0xff] }
 0x1ed   :  { %v763_v63 = vpop.f32.mrf.mxu0  ;;  %v834_v55 = vpop.f32.mrf.mxu1  ;;  %v214_v42 = vadd.f32 %v213_v35, %v8034_v24 }
 0x1ee   :  { %v911_v62 = vadd.f32 %v908_v3, %v598_v4  ;;  %v1074_v59 = vadd.f32 %v834_v55, %v212_v2  ;;  %v909_v57 = vadd.f32 %v763_v63, %v5661_v18  ;;  %v5670_v55 = vld [vmem:[%s7460_s7] ss:$0 sm:$0xff]  ;;  %v8036_v4 = vld [vmem:[#allocation80_spill] sm:$0xff] }
 0x1f0   :  { %v3808_v56 = vmul.f32 -1.442695, %v911_v62  ;;  %v3810_v8 = vmul.f32 -1.442695, %v1074_v59  ;;  %v912_v52 = vadd.f32 %v909_v57, %v600_v60  ;;  %v8035_v57 = vsub.s32 2, %v8030_v14 }
 0x1f1   :  { %v324_v14 = vadd.f32 %v8036_v4, %v5438_v40  ;;  %v8046_v4 = vld [vmem:[#allocation24_spill] sm:$0xff] }
 0x1f2   :  { %4361 = vpow2.f32 %v3808_v56  ;;  %v3809_v10 = vmul.f32 -1.442695, %v912_v52  ;;  %v5674_v52 = vrot.slane %v501_v6, %v8035_v57 }
 0x1f3   :  { %4363 = vpow2.f32 %v3810_v8 }
 0x1f4   :  { %4365 = vpow2.f32 %v3809_v10  ;;  %v910_v2 = vadd.f32 %v832_v28, %v5674_v52  ;;  %v8037_v28 = vld [vmem:[#allocation13_spill] sm:$0xff] }
 0x1ff   :  { %v4362_v49 = vpop.eup %4361 }
 0x200   :  { %v4364_v58 = vpop.eup %4363  ;;  %v919_v45 = vadd.f32 1.0, %v4362_v49 }
 0x201   :  { %v1082_v16 = vadd.f32 1.0, %v4364_v58  ;;  %v4366_v31 = vpop.eup %4365 }
 0x202   :  { %4367 = vrcp.f32 %v919_v45  ;;  %v920_v59 = vadd.f32 1.0, %v4366_v31  ;;  %v925_v45 = vadd.f32 %v5670_v55, %v5604_v21 }
 0x203   :  { %4369 = vrcp.f32 %v1082_v16 }
 0x204   :  { %4371 = vrcp.f32 %v920_v59 }
 0x20b   :  { %v903_v56 = vpop.f32.mrf.mxu0 }
 0x20c   :  { %v1075_v10 = vadd.f32 %v903_v56, %v214_v42 }
 0x20d   :  { %v905_v62 = vpop.f32.mrf.mxu0 }
 0x20e   :  { %v3811_v16 = vmul.f32 -1.442695, %v1075_v10  ;;  %v1088_v49 = vadd.f32 %v5443_v47, %v905_v62  ;;  %v8038_v62 = vld [vmem:[#allocation16_spill] sm:$0xff] }
 0x20f   :  { %v4368_v35 = vpop.eup %4367 }
 0x210   :  { %v4370_v63 = vpop.eup %4369  ;;  %v926_v3 = vmul.f32 %v4368_v35, %v925_v45  ;;  %4373 = vpow2.f32 %v3811_v16  ;;  %v8039_v45 = vld [vmem:[#allocation15_spill] sm:$0xff]  ;;  %v8040_v16 = vld [vmem:[#allocation18_spill] sm:$0xff]  ;;  %v8042_v35 = vld [vmem:[#allocation20_spill] sm:$0xff] }
 0x211   :  { %v1089_v6 = vmul.f32 %v4370_v63, %v1088_v49  ;;  %v4372_v8 = vpop.eup %4371  ;;  %v8041_v49 = vld [vmem:[#allocation17_spill] sm:$0xff]  ;;  %v8043_v63 = vld [vmem:[#allocation19_spill] sm:$0xff] }
 0x212   :  { %v927_v60 = vadd.f32 %v926_v3, %v910_v2  ;;  %v929_v31 = vsub.f32 1.0, %v4372_v8  ;;  %v931_v57 = vmul.f32 0.0, %v4372_v8  ;;  %v8044_v2 = vld [vmem:[#allocation22_spill] sm:$0xff]  ;;  %v8045_v3 = vld [vmem:[#allocation21_spill] sm:$0xff]  ;;  %v8050_v8 = vld [vmem:[#allocation28_spill] sm:$0xff] }
 0x213   :  { %v1090_v42 = vadd.f32 %v1089_v6, %v324_v14  ;;  %v8047_v14 = vld [vmem:[#allocation23_spill] sm:$0xff]  ;;  %v8048_v6 = vld [vmem:[#allocation26_spill] sm:$0xff] }
 0x214   :  { %4375 = vtanh.f32 %v927_v60 }
 0x21d   :  { %v4374_v58 = vpop.eup %4373 }
 0x21e   :  { %v1083_v21 = vadd.f32 1.0, %v4374_v58  ;;  %v8051_v58 = vld [vmem:[#allocation27_spill] sm:$0xff] }
 0x220   :  { %4377 = vrcp.f32 %v1083_v21  ;;  %v8052_v21 = vld [vmem:[#allocation30_spill] sm:$0xff] }
 0x221   :  { %v4376_v56 = vpop.eup %4375  ;;  %4379 = vtanh.f32 %v1090_v42  ;;  %v8049_v42 = vld [vmem:[#allocation25_spill] sm:$0xff] }
 0x222   :  { %v930_v59 = vmul.f32 %v4376_v56, %v929_v31 }
 0x224   :  { %v5682_v10 = vadd.f32 %v931_v57, %v930_v59  ;;  %v8053_v59 = vld [vmem:[#allocation29_spill] sm:$0xff]  ;;  %v8054_v57 = vld [vmem:[#allocation32_spill] sm:$0xff] }
 0x226   :  { %998 = vmatmul.mubr.f32.vlgmr.msra.gmra.mxu1 %v5682_v10  ;;  %4092 = vmatmul.mubr.f32.vlgmr.msra.gmra.mxu0 %v5682_v10 }
 0x227   :  { %1097 = vmatpush1.msra.mxu1 %v8037_v28  ;;  %1168 = vmatpush1.msra.mxu0 %v8038_v62  ;;  %v8055_v28 = vld [vmem:[#allocation31_spill] sm:$0xff]  ;;  %v8056_v62 = vld [vmem:[#allocation34_spill] sm:$0xff] }
 0x228   :  { %1098 = vmatprep.subr.mxu1 %v8039_v45  ;;  %1169 = vmatprep.subr.mxu0 %v8040_v16 }
 0x229   :  { %1099 = vmatpush1.msra.mxu1 %v8041_v49  ;;  %1170 = vmatpush1.msra.mxu0 %v8042_v35  ;;  %v8057_v49 = vld [vmem:[#allocation33_spill] sm:$0xff]  ;;  %v8058_v35 = vld [vmem:[#allocation36_spill] sm:$0xff] }
 0x22a   :  { %1100 = vmatprep.subr.mxu1 %v8043_v63  ;;  %1171 = vmatprep.subr.mxu0 %v8044_v2  ;;  %v8059_v63 = vld [vmem:[#allocation35_spill] sm:$0xff]  ;;  %v8060_v2 = vld [vmem:[#allocation38_spill] sm:$0xff] }
 0x22b   :  { %1101 = vmatpush1.msra.mxu1 %v8045_v3  ;;  %1172 = vmatpush1.msra.mxu0 %v8046_v4  ;;  %v8061_v4 = vld [vmem:[#allocation37_spill] sm:$0xff] }
 0x22c   :  { %1102 = vmatprep.subr.mxu1 %v8047_v14  ;;  %1173 = vmatprep.subr.mxu0 %v8048_v6  ;;  %v8062_v14 = vld [vmem:[#allocation40_spill] sm:$0xff]  ;;  %v8063_v6 = vld [vmem:[#allocation39_spill] sm:$0xff] }
 0x22d   :  { %v4378_v60 = vpop.eup %4377  ;;  %1103 = vmatpush1.msra.mxu1 %v8049_v42  ;;  %1174 = vmatpush1.msra.mxu0 %v8050_v8  ;;  %v8064_v42 = vld [vmem:[#allocation42_spill] sm:$0xff]  ;;  %v8065_v8 = vld [vmem:[#allocation41_spill] sm:$0xff] }
 0x22e   :  { %1104 = vmatprep.subr.mxu1 %v8051_v58  ;;  %1175 = vmatprep.subr.mxu0 %v8052_v21  ;;  %v1092_v31 = vsub.f32 1.0, %v4378_v60  ;;  %v4380_v56 = vpop.eup %4379  ;;  %v1094_v16 = vmul.f32 %v4378_v60, %v5447_v11  ;;  %v8066_v11 = vld [vmem:[#allocation44_spill] sm:$0xff]  ;;  %v8067_v60 = vld [vmem:[#allocation43_spill] sm:$0xff]  ;;  %v8068_v58 = vld [vmem:[#allocation46_spill] sm:$0xff] }
 0x22f   :  { %1105 = vmatpush1.msra.mxu1 %v8053_v59  ;;  %1176 = vmatpush1.msra.mxu0 %v8054_v57  ;;  %v8069_v21 = vld [vmem:[#allocation45_spill] sm:$0xff]  ;;  %v8072_v59 = vld [vmem:[#allocation50_spill] sm:$0xff] }
 0x230   :  { %1106 = vmatprep.subr.mxu1 %v8055_v28  ;;  %1177 = vmatprep.subr.mxu0 %v8056_v62  ;;  %v1093_v45 = vmul.f32 %v4380_v56, %v1092_v31  ;;  %v8070_v31 = vld [vmem:[#allocation48_spill] sm:$0xff]  ;;  %v8071_v56 = vld [vmem:[#allocation47_spill] sm:$0xff]  ;;  %v8073_v57 = vld [vmem:[#allocation49_spill] sm:$0xff] }
 0x231   :  { %1107 = vmatpush1.msra.mxu1 %v8057_v49  ;;  %1178 = vmatpush1.msra.mxu0 %v8058_v35  ;;  %v8074_v28 = vld [vmem:[#allocation52_spill] sm:$0xff]  ;;  %v8075_v62 = vld [vmem:[#allocation51_spill] sm:$0xff] }
 0x232   :  { %1108 = vmatprep.subr.mxu1 %v8059_v63  ;;  %1179 = vmatprep.subr.mxu0 %v8060_v2  ;;  %v5711_v3 = vadd.f32 %v1094_v16, %v1093_v45  ;;  %v8076_v45 = vld [vmem:[#allocation54_spill] sm:$0xff]  ;;  %v8077_v16 = vld [vmem:[#allocation53_spill] sm:$0xff]  ;;  %v8078_v49 = vld [vmem:[#allocation56_spill] sm:$0xff] }
 0x233   :  { %1109 = vmatpush1.msra.mxu1 %v8061_v4  ;;  %1180 = vmatpush1.msra.mxu0 %v8062_v14  ;;  %v8079_v35 = vld [vmem:[#allocation55_spill] sm:$0xff]  ;;  %v8080_v63 = vld [vmem:[#allocation58_spill] sm:$0xff]  ;;  %v8081_v2 = vld [vmem:[#allocation57_spill] sm:$0xff] }
 0x234   :  { %1110 = vmatprep.subr.mxu1 %v8063_v6  ;;  %1181 = vmatprep.subr.mxu0 %v8064_v42  ;;  %v8082_v4 = vld [vmem:[#allocation60_spill] sm:$0xff]  ;;  %v8083_v14 = vld [vmem:[#allocation59_spill] sm:$0xff]  ;;  %v8084_v6 = vld [vmem:[#allocation62_spill] sm:$0xff] }
 0x235   :  { %1111 = vmatpush1.msra.mxu1 %v8065_v8  ;;  %1182 = vmatpush1.msra.mxu0 %v8066_v11  ;;  %v8085_v42 = vld [vmem:[#allocation61_spill] sm:$0xff]  ;;  %v8086_v8 = vld [vmem:[#allocation64_spill] sm:$0xff]  ;;  %v8087_v11 = vld [vmem:[#allocation63_spill] sm:$0xff] }
 0x236   :  { %1112 = vmatprep.subr.mxu1 %v8067_v60  ;;  %1183 = vmatprep.subr.mxu0 %v8068_v58  ;;  %v8088_v60 = vld [vmem:[#allocation66_spill] sm:$0xff]  ;;  %v8089_v58 = vld [vmem:[#allocation65_spill] sm:$0xff] }
 0x237   :  { %1113 = vmatpush1.msra.mxu1 %v8069_v21  ;;  %1184 = vmatpush1.msra.mxu0 %v8070_v31  ;;  %v8090_v21 = vld [vmem:[#allocation68_spill] sm:$0xff]  ;;  %v8091_v31 = vld [vmem:[#allocation67_spill] sm:$0xff] }
 0x238   :  { %1114 = vmatprep.subr.mxu1 %v8071_v56  ;;  %1185 = vmatprep.subr.mxu0 %v8072_v59  ;;  %v8092_v56 = vld [vmem:[#allocation70_spill] sm:$0xff]  ;;  %v8093_v59 = vld [vmem:[#allocation69_spill] sm:$0xff] }
 0x239   :  { %1115 = vmatpush1.msra.mxu1 %v8073_v57  ;;  %1186 = vmatpush1.msra.mxu0 %v8074_v28  ;;  %v8094_v57 = vld [vmem:[#allocation72_spill] sm:$0xff]  ;;  %v8095_v28 = vld [vmem:[#allocation71_spill] sm:$0xff] }
 0x23a   :  { %1116 = vmatprep.subr.mxu1 %v8075_v62  ;;  %1187 = vmatprep.subr.mxu0 %v8076_v45  ;;  %v8096_v62 = vld [vmem:[#allocation74_spill] sm:$0xff]  ;;  %v8097_v45 = vld [vmem:[#allocation73_spill] sm:$0xff] }
 0x23b   :  { %1117 = vmatpush1.msra.mxu1 %v8077_v16  ;;  %1188 = vmatpush1.msra.mxu0 %v8078_v49  ;;  %v8098_v16 = vld [vmem:[#allocation75_spill] sm:$0xff]  ;;  %v8099_v49 = vld [vmem:[#allocation76_spill] sm:$0xff] }
 0x23c   :  { %1118 = vmatprep.subr.mxu1 %v8079_v35  ;;  %1189 = vmatprep.subr.mxu0 %v8080_v63  ;;  %v5758_v35 = vld [vmem:[#allocation5 + $0x170] sm:$0xff]  ;;  %v5762_v63 = vld [vmem:[#allocation5 + $0x168] sm:$0xff] }
 0x23d   :  { %1119 = vmatpush1.msra.mxu1 %v8081_v2  ;;  %1190 = vmatpush1.msra.mxu0 %v8082_v4  ;;  %v5766_v2 = vld [vmem:[#allocation5 + $0x158] sm:$0xff]  ;;  %v5770_v4 = vld [vmem:[#allocation5 + $0x150] sm:$0xff] }
 0x23e   :  { %1120 = vmatprep.subr.mxu1 %v8083_v14  ;;  %1191 = vmatprep.subr.mxu0 %v8084_v6  ;;  %v5830_v14 = vld [vmem:[#allocation5 + $0x98] sm:$0xff]  ;;  %v5834_v6 = vld [vmem:[#allocation5 + $0x90] sm:$0xff] }
 0x23f   :  { %1121 = vmatpush1.msra.mxu1 %v8085_v42  ;;  %1192 = vmatpush1.msra.mxu0 %v8086_v8  ;;  %8106 = vst [vmem:[#allocation15_spill] sm:$0xff] %v5830_v14  ;;  %8107 = vst [vmem:[#allocation18_spill] sm:$0xff] %v5834_v6  ;;  %v5838_v42 = vld [vmem:[#allocation5 + $0x80] sm:$0xff]  ;;  %v5842_v8 = vld [vmem:[#allocation5 + $0x78] sm:$0xff] }
 0x240   :  { %1122 = vmatprep.subr.mxu1 %v8087_v11  ;;  %1193 = vmatprep.subr.mxu0 %v8088_v60  ;;  %8108 = vst [vmem:[#allocation17_spill] sm:$0xff] %v5838_v42  ;;  %8109 = vst [vmem:[#allocation20_spill] sm:$0xff] %v5842_v8  ;;  %v5846_v11 = vld [vmem:[#allocation5 + $0x68] sm:$0xff]  ;;  %v5850_v60 = vld [vmem:[#allocation5 + $0x60] sm:$0xff] }
 0x241   :  { %1123 = vmatpush1.msra.mxu1 %v8089_v58  ;;  %1194 = vmatpush1.msra.mxu0 %v8090_v21  ;;  %8110 = vst [vmem:[#allocation19_spill] sm:$0xff] %v5846_v11  ;;  %8111 = vst [vmem:[#allocation22_spill] sm:$0xff] %v5850_v60  ;;  %v5854_v58 = vld [vmem:[#allocation5 + $0x50] sm:$0xff]  ;;  %v5858_v21 = vld [vmem:[#allocation5 + $0x48] sm:$0xff] }
 0x242   :  { %1124 = vmatprep.subr.mxu1 %v8091_v31  ;;  %1195 = vmatprep.subr.mxu0 %v8092_v56  ;;  %8112 = vst [vmem:[#allocation21_spill] sm:$0xff] %v5854_v58  ;;  %8113 = vst [vmem:[#allocation24_spill] sm:$0xff] %v5858_v21  ;;  %v5862_v31 = vld [vmem:[#allocation5 + $0x38] sm:$0xff]  ;;  %v5866_v56 = vld [vmem:[#allocation5 + $0x30] sm:$0xff] }
 0x243   :  { %1125 = vmatpush1.msra.mxu1 %v8093_v59  ;;  %1196 = vmatpush1.msra.mxu0 %v8094_v57  ;;  %8114 = vst [vmem:[#allocation23_spill] sm:$0xff] %v5862_v31  ;;  %8115 = vst [vmem:[#allocation26_spill] sm:$0xff] %v5866_v56  ;;  %v5870_v59 = vld [vmem:[#allocation5 + $0x20] sm:$0xff]  ;;  %v5874_v57 = vld [vmem:[#allocation5 + $0x18] sm:$0xff] }
 0x244   :  { %1126 = vmatprep.subr.mxu1 %v8095_v28  ;;  %1197 = vmatprep.subr.mxu0 %v8096_v62  ;;  %8116 = vst [vmem:[#allocation25_spill] sm:$0xff] %v5870_v59  ;;  %8117 = vst [vmem:[#allocation28_spill] sm:$0xff] %v5874_v57  ;;  %v5878_v28 = vld [vmem:[#allocation5 + $0x8] sm:$0xff]  ;;  %v5883_v62 = vld [vmem:[#allocation5 + $0x178] sm:$0xff] }
 0x245   :  { %1127 = vmatpush1.msra.mxu1 %v8097_v45  ;;  %1160 = vmatprep.mubr.f32.mxu1 %v7998_v33  ;;  %8118 = vst [vmem:[#allocation27_spill] sm:$0xff] %v5878_v28  ;;  %8119 = vst [vmem:[#allocation30_spill] sm:$0xff] %v5883_v62  ;;  %v5886_v45 = vld [vmem:[#allocation5] sm:$0xff] }
 0x246   :  { %1198 = vmatpush1.msra.mxu0 %v8098_v16  ;;  %1231 = vmatprep.mubr.f32.mxu0 %v7998_v33  ;;  %8120 = vst [vmem:[#allocation29_spill] sm:$0xff] %v5886_v45  ;;  %v5891_v16 = vld [vmem:[#allocation5 + $0x160] sm:$0xff] }
 0x247   :  { %1161 = vmatmul.mubr.f32.vlgmr.msra.gmra.mxu1 %v5711_v3  ;;  %1232 = vmatmul.mubr.f32.vlgmr.msra.gmra.mxu0 %v5711_v3  ;;  %8121 = vst [vmem:[#allocation32_spill] sm:$0xff] %v5891_v16 }
 0x248   :  { %1238 = vmatprep.subr.mxu1 %v8099_v49  ;;  %1302 = vmatprep.mubr.f32.mxu1 %v7998_v33  ;;  %v5897_v49 = vld [vmem:[#allocation2 + $0x2d8] sm:$0xff] }
 0x249   :  { %1239 = vmatpush1.msra.mxu1 %v5449_v13  ;;  %1334 = vmatprep.subr.mxu0 %v5758_v35  ;;  %v5774_v13 = vld [vmem:[#allocation5 + $0x140] sm:$0xff]  ;;  %8122 = vst [vmem:[#allocation31_spill] sm:$0xff] %v5897_v49 }
 0x24a   :  { %1240 = vmatprep.subr.mxu1 %v5451_v54  ;;  %1335 = vmatpush1.msra.mxu0 %v5762_v63  ;;  %v5778_v54 = vld [vmem:[#allocation5 + $0x138] sm:$0xff] }
 0x24b   :  { %1241 = vmatpush1.msra.mxu1 %v5455_v26  ;;  %1336 = vmatprep.subr.mxu0 %v5766_v2  ;;  %v5782_v26 = vld [vmem:[#allocation5 + $0x128] sm:$0xff] }
 0x24c   :  { %1242 = vmatprep.subr.mxu1 %v5458_v61  ;;  %1337 = vmatpush1.msra.mxu0 %v5770_v4  ;;  %v5786_v61 = vld [vmem:[#allocation5 + $0x120] sm:$0xff] }
 0x24d   :  { %1243 = vmatpush1.msra.mxu1 %v5462_v5  ;;  %1338 = vmatprep.subr.mxu0 %v5774_v13  ;;  %v5790_v5 = vld [vmem:[#allocation5 + $0x110] sm:$0xff] }
 0x24e   :  { %1244 = vmatprep.subr.mxu1 %v5466_v0  ;;  %1339 = vmatpush1.msra.mxu0 %v5778_v54  ;;  %v5794_v0 = vld [vmem:[#allocation5 + $0x108] sm:$0xff] }
 0x24f   :  { %1245 = vmatpush1.msra.mxu1 %v5470_v9  ;;  %1340 = vmatprep.subr.mxu0 %v5782_v26  ;;  %v5798_v9 = vld [vmem:[#allocation5 + $0xf8] sm:$0xff] }
 0x250   :  { %1246 = vmatprep.subr.mxu1 %v5474_v7  ;;  %1341 = vmatpush1.msra.mxu0 %v5786_v61  ;;  %v5802_v7 = vld [vmem:[#allocation5 + $0xf0] sm:$0xff] }
 0x251   :  { %1247 = vmatpush1.msra.mxu1 %v5478_v15  ;;  %1342 = vmatprep.subr.mxu0 %v5790_v5  ;;  %v5806_v15 = vld [vmem:[#allocation5 + $0xe0] sm:$0xff] }
 0x252   :  { %1248 = vmatprep.subr.mxu1 %v5482_v17  ;;  %1343 = vmatpush1.msra.mxu0 %v5794_v0  ;;  %8100 = vst [vmem:[#allocation77_spill] sm:$0xff] %v5806_v15  ;;  %v5810_v17 = vld [vmem:[#allocation5 + $0xd8] sm:$0xff] }
 0x253   :  { %1249 = vmatpush1.msra.mxu1 %v5486_v19  ;;  %1344 = vmatprep.subr.mxu0 %v5798_v9  ;;  %8101 = vst [vmem:[#allocation78_spill] sm:$0xff] %v5810_v17  ;;  %v5814_v19 = vld [vmem:[#allocation5 + $0xc8] sm:$0xff] }
 0x254   :  { %1250 = vmatprep.subr.mxu1 %v5490_v20  ;;  %1345 = vmatpush1.msra.mxu0 %v5802_v7  ;;  %8102 = vst [vmem:[#allocation79_spill] sm:$0xff] %v5814_v19  ;;  %v5818_v20 = vld [vmem:[#allocation5 + $0xc0] sm:$0xff] }
 0x255   :  { %1251 = vmatpush1.msra.mxu1 %v5494_v22  ;;  %1346 = vmatprep.subr.mxu0 %v5806_v15  ;;  %8103 = vst [vmem:[#allocation80_spill] sm:$0xff] %v5818_v20  ;;  %v5822_v22 = vld [vmem:[#allocation5 + $0xb0] sm:$0xff] }
 0x256   :  { %1252 = vmatprep.subr.mxu1 %v5498_v23  ;;  %1347 = vmatpush1.msra.mxu0 %v5810_v17  ;;  %8104 = vst [vmem:[#allocation13_spill] sm:$0xff] %v5822_v22  ;;  %v5826_v23 = vld [vmem:[#allocation5 + $0xa8] sm:$0xff] }
 0x257   :  { %1253 = vmatpush1.msra.mxu1 %v5502_v25  ;;  %1348 = vmatprep.subr.mxu0 %v5814_v19  ;;  %8105 = vst [vmem:[#allocation16_spill] sm:$0xff] %v5826_v23 }
 0x258   :  { %1254 = vmatprep.subr.mxu1 %v5506_v27  ;;  %1349 = vmatpush1.msra.mxu0 %v5818_v20 }
 0x259   :  { %1255 = vmatpush1.msra.mxu1 %v5510_v29  ;;  %1350 = vmatprep.subr.mxu0 %v5822_v22 }
 0x25a   :  { %1256 = vmatprep.subr.mxu1 %v5514_v30  ;;  %1351 = vmatpush1.msra.mxu0 %v5826_v23 }
 0x25b   :  { %1257 = vmatpush1.msra.mxu1 %v5518_v32  ;;  %1352 = vmatprep.subr.mxu0 %v5830_v14 }
 0x25c   :  { %1258 = vmatprep.subr.mxu1 %v5522_v34  ;;  %1353 = vmatpush1.msra.mxu0 %v5834_v6 }
 0x25d   :  { %1259 = vmatpush1.msra.mxu1 %v5526_v36  ;;  %1354 = vmatprep.subr.mxu0 %v5838_v42 }
 0x25e   :  { %1260 = vmatprep.subr.mxu1 %v5530_v37  ;;  %1355 = vmatpush1.msra.mxu0 %v5842_v8 }
 0x25f   :  { %1261 = vmatpush1.msra.mxu1 %v5534_v39  ;;  %1356 = vmatprep.subr.mxu0 %v5846_v11 }
 0x260   :  { %1262 = vmatprep.subr.mxu1 %v5538_v41  ;;  %1357 = vmatpush1.msra.mxu0 %v5850_v60 }
 0x261   :  { %1263 = vmatpush1.msra.mxu1 %v5542_v43  ;;  %1358 = vmatprep.subr.mxu0 %v5854_v58 }
 0x262   :  { %1264 = vmatprep.subr.mxu1 %v5546_v44  ;;  %1359 = vmatpush1.msra.mxu0 %v5858_v21 }
 0x263   :  { %1265 = vmatpush1.msra.mxu1 %v5550_v46  ;;  %1360 = vmatprep.subr.mxu0 %v5862_v31 }
 0x264   :  { %1266 = vmatprep.subr.mxu1 %v5554_v48  ;;  %1361 = vmatpush1.msra.mxu0 %v5866_v56 }
 0x265   :  { %1267 = vmatpush1.msra.mxu1 %v5560_v50  ;;  %1362 = vmatprep.subr.mxu0 %v5870_v59  ;;  %v218_v50 = vadd.f32 %v5628_v38, %v8033_v1  ;;  %v8138_v38 = vld [vmem:[#allocation12_spill] sm:$0xff] }
 0x266   :  { %1268 = vmatprep.subr.mxu1 %v5564_v51  ;;  %1363 = vmatpush1.msra.mxu0 %v5874_v57 }
 0x267   :  { %1269 = vmatpush1.msra.mxu1 %v5570_v53  ;;  %1364 = vmatprep.subr.mxu0 %v5878_v28  ;;  %v5912_v28 = vld [vmem:[#allocation5 + $0x100] sm:$0xff] }
 0x268   :  { %1303 = vmatmul.mubr.f32.vlgmr.msra.gmra.mxu1 %v5711_v3  ;;  %4094 = vmatprep.subr.mxu1 %v7998_v33  ;;  %8126 = vst [vmem:[#allocation35_spill] sm:$0xff] %v5912_v28 }
 0x269   :  { %4095 = vmatpush3.msra.mxu1 %v5883_v62  ;;  %1365 = vmatpush1.msra.mxu0 %v5886_v45  ;;  %v5900_v62 = vld [vmem:[#allocation5 + $0x148] sm:$0xff]  ;;  %v5904_v45 = vld [vmem:[#allocation5 + $0x130] sm:$0xff] }
 0x26a   :  { %4096 = vmatprep.subr.mxu1 %v7998_v33  ;;  %1398 = vmatprep.mubr.f32.mxu0 %v7998_v33  ;;  %8123 = vst [vmem:[#allocation34_spill] sm:$0xff] %v5900_v62  ;;  %8124 = vst [vmem:[#allocation33_spill] sm:$0xff] %v5904_v45 }
 0x26b   :  { %4097 = vmatpush3.msra.mxu1 %v5891_v16  ;;  %4126 = vmatprep.mubr.msk.f32.mxu1 %vm4903_vm1, %v7998_v33  ;;  %v5908_v16 = vld [vmem:[#allocation5 + $0x118] sm:$0xff] }
 0x26c   :  { %4098 = vmatprep.subr.mxu1 %v7998_v33  ;;  %1497 = vmatprep.subr.mxu0 %v5897_v49  ;;  %8125 = vst [vmem:[#allocation36_spill] sm:$0xff] %v5908_v16  ;;  %v5955_v49 = vld [vmem:[#allocation2 + $0x2e8] sm:$0xff] }
 0x26d   :  { %4099 = vmatpush3.msra.mxu1 %v5900_v62  ;;  %v5916_v62 = vld [vmem:[#allocation5 + $0xe8] sm:$0xff]  ;;  %8137 = vst [vmem:[#allocation48_spill] sm:$0xff] %v5955_v49 }
 0x26e   :  { %4100 = vmatprep.subr.mxu1 %v7998_v33  ;;  %8127 = vst [vmem:[#allocation38_spill] sm:$0xff] %v5916_v62 }
 0x26f   :  { %4101 = vmatpush3.msra.mxu1 %v5904_v45  ;;  %v5920_v45 = vld [vmem:[#allocation5 + $0xd0] sm:$0xff] }
 0x270   :  { %4102 = vmatprep.subr.mxu1 %v7998_v33  ;;  %8128 = vst [vmem:[#allocation37_spill] sm:$0xff] %v5920_v45 }
 0x271   :  { %4103 = vmatpush3.msra.mxu1 %v5908_v16  ;;  %v5924_v16 = vld [vmem:[#allocation5 + $0xb8] sm:$0xff] }
 0x272   :  { %4104 = vmatprep.subr.mxu1 %v7998_v33  ;;  %8129 = vst [vmem:[#allocation40_spill] sm:$0xff] %v5924_v16 }
 0x273   :  { %4105 = vmatpush3.msra.mxu1 %v5912_v28  ;;  %v5928_v28 = vld [vmem:[#allocation5 + $0xa0] sm:$0xff] }
 0x274   :  { %4106 = vmatprep.subr.mxu1 %v7998_v33  ;;  %8130 = vst [vmem:[#allocation39_spill] sm:$0xff] %v5928_v28 }
 0x275   :  { %4107 = vmatpush3.msra.mxu1 %v5916_v62  ;;  %v5932_v62 = vld [vmem:[#allocation5 + $0x88] sm:$0xff] }
 0x276   :  { %4108 = vmatprep.subr.mxu1 %v7998_v33  ;;  %8131 = vst [vmem:[#allocation42_spill] sm:$0xff] %v5932_v62 }
 0x277   :  { %4109 = vmatpush3.msra.mxu1 %v5920_v45  ;;  %v5936_v45 = vld [vmem:[#allocation5 + $0x70] sm:$0xff] }
 0x278   :  { %4110 = vmatprep.subr.mxu1 %v7998_v33  ;;  %8132 = vst [vmem:[#allocation41_spill] sm:$0xff] %v5936_v45 }
 0x279   :  { %4111 = vmatpush3.msra.mxu1 %v5924_v16  ;;  %v5940_v16 = vld [vmem:[#allocation5 + $0x58] sm:$0xff] }
 0x27a   :  { %4112 = vmatprep.subr.mxu1 %v7998_v33  ;;  %8133 = vst [vmem:[#allocation44_spill] sm:$0xff] %v5940_v16 }
 0x27b   :  { %4113 = vmatpush3.msra.mxu1 %v5928_v28  ;;  %v5944_v28 = vld [vmem:[#allocation5 + $0x40] sm:$0xff] }
 0x27c   :  { %4114 = vmatprep.subr.mxu1 %v7998_v33  ;;  %8134 = vst [vmem:[#allocation43_spill] sm:$0xff] %v5944_v28 }
 0x27d   :  { %4115 = vmatpush3.msra.mxu1 %v5932_v62  ;;  %v5948_v62 = vld [vmem:[#allocation5 + $0x28] sm:$0xff] }
 0x27e   :  { %4116 = vmatprep.subr.mxu1 %v7998_v33  ;;  %8135 = vst [vmem:[#allocation46_spill] sm:$0xff] %v5948_v62 }
 0x27f   :  { %4117 = vmatpush3.msra.mxu1 %v5936_v45  ;;  %v5952_v45 = vld [vmem:[#allocation5 + $0x10] sm:$0xff] }
 0x280   :  { %4118 = vmatprep.subr.mxu1 %v7998_v33  ;;  %8136 = vst [vmem:[#allocation45_spill] sm:$0xff] %v5952_v45 }
 0x281   :  { %4119 = vmatpush3.msra.mxu1 %v5940_v16 }
 0x282   :  { %4120 = vmatprep.subr.mxu1 %v7998_v33 }
 0x283   :  { %4121 = vmatpush3.msra.mxu1 %v5944_v28 }
 0x284   :  { %4122 = vmatprep.subr.mxu1 %v7998_v33 }
 0x285   :  { %4123 = vmatpush3.msra.mxu1 %v5948_v62 }
 0x286   :  { %4124 = vmatprep.subr.mxu1 %v7998_v33 }
 0x287   :  { %4125 = vmatpush3.msra.mxu1 %v5952_v45 }
 0x288   :  { %1568 = vmatprep.subr.mxu1 %v5955_v49 }
 0x2e6   :  { %v1070_v16 = vpop.f32.mrf.mxu0  ;;  %v999_v57 = vpop.f32.mrf.mxu1 }
 0x2e8   :  { %v4093_v53 = vpop.f32.mrf.mxu0  ;;  %v1001_v28 = vpop.f32.mrf.mxu1 }
 0x307   :  { %v1162_v51 = vpop.f32.mrf.mxu1  ;;  %v1233_v59 = vpop.f32.mrf.mxu0 }
 0x308   :  { %v1309_v62 = vadd.f32 %v1162_v51, %v5657_v12 }
 0x309   :  { %v1164_v56 = vpop.f32.mrf.mxu1  ;;  %v1235_v48 = vpop.f32.mrf.mxu0 }
 0x30a   :  { %v1312_v31 = vadd.f32 %v1309_v62, %v999_v57  ;;  %v1475_v46 = vadd.f32 %v1235_v48, %v218_v50  ;;  %v1310_v21 = vadd.f32 %v1164_v56, %v5661_v18  ;;  %v220_v57 = vadd.f32 %v8138_v38, %v8034_v24 }
 0x30c   :  { %v3812_v45 = vmul.f32 -1.442695, %v1312_v31  ;;  %v3814_v44 = vmul.f32 -1.442695, %v1475_v46  ;;  %v1313_v53 = vadd.f32 %v1310_v21, %v1001_v28  ;;  %v1326_v46 = vadd.f32 %v5670_v55, %v1070_v16 }
 0x30e   :  { %4381 = vpow2.f32 %v3812_v45  ;;  %v3813_v49 = vmul.f32 -1.442695, %v1313_v53 }
 0x30f   :  { %4383 = vpow2.f32 %v3814_v44 }
 0x310   :  { %4385 = vpow2.f32 %v3813_v49 }
 0x31b   :  { %v4382_v58 = vpop.eup %4381 }
 0x31c   :  { %v4384_v43 = vpop.eup %4383  ;;  %v1320_v60 = vadd.f32 1.0, %v4382_v58  ;;  %v1311_v58 = vadd.f32 %v1233_v59, %v5674_v52 }
 0x31d   :  { %v1483_v41 = vadd.f32 1.0, %v4384_v43  ;;  %v4386_v51 = vpop.eup %4385 }
 0x31e   :  { %4387 = vrcp.f32 %v1320_v60  ;;  %v1321_v48 = vadd.f32 1.0, %v4386_v51 }
 0x31f   :  { %4389 = vrcp.f32 %v1483_v41  ;;  %v8139_v41 = vld [vmem:[#allocation89_spill] sm:$0xff] }
 0x320   :  { %4391 = vrcp.f32 %v1321_v48  ;;  %v329_v60 = vadd.f32 %v8139_v41, %v5438_v40  ;;  %v5974_v48 = vld [vmem:[#allocation2 + $0x2d0] sm:$0xff]  ;;  %v6004_v41 = vld [vmem:[#allocation2 + $0x248] sm:$0xff] }
 0x328   :  { %v1304_v50 = vpop.f32.mrf.mxu1 }
 0x329   :  { %v1476_v31 = vadd.f32 %v1304_v50, %v220_v57 }
 0x32a   :  { %v1306_v56 = vpop.f32.mrf.mxu1 }
 0x32b   :  { %v4388_v44 = vpop.eup %4387  ;;  %v3815_v21 = vmul.f32 -1.442695, %v1476_v31  ;;  %v1489_v28 = vadd.f32 %v5443_v47, %v1306_v56  ;;  %v5980_v56 = vld [vmem:[#allocation2 + $0x2a8] sm:$0xff] }
 0x32c   :  { %v4390_v62 = vpop.eup %4389  ;;  %v1327_v43 = vmul.f32 %v4388_v44, %v1326_v46  ;;  %v5977_v46 = vld [vmem:[#allocation2 + $0x2e0] sm:$0xff] }
 0x32d   :  { %4393 = vpow2.f32 %v3815_v21  ;;  %v1490_v45 = vmul.f32 %v4390_v62, %v1489_v28  ;;  %v4392_v51 = vpop.eup %4391  ;;  %v5986_v44 = vld [vmem:[#allocation2 + $0x2a0] sm:$0xff]  ;;  %v5989_v21 = vld [vmem:[#allocation2 + $0x2b0] sm:$0xff]  ;;  %v5992_v28 = vld [vmem:[#allocation2 + $0x278] sm:$0xff] }
 0x32e   :  { %v1328_v49 = vadd.f32 %v1327_v43, %v1311_v58  ;;  %v1330_v57 = vsub.f32 1.0, %v4392_v51  ;;  %v1332_v31 = vmul.f32 %v4392_v51, %v5682_v10  ;;  %v5983_v10 = vld [vmem:[#allocation2 + $0x2b8] sm:$0xff]  ;;  %v5995_v62 = vld [vmem:[#allocation2 + $0x288] sm:$0xff]  ;;  %v5998_v58 = vld [vmem:[#allocation2 + $0x270] sm:$0xff] }
 0x32f   :  { %v1491_v53 = vadd.f32 %v1490_v45, %v329_v60  ;;  %v6001_v43 = vld [vmem:[#allocation2 + $0x280] sm:$0xff]  ;;  %v6007_v60 = vld [vmem:[#allocation2 + $0x258] sm:$0xff] }
 0x330   :  { %4395 = vtanh.f32 %v1328_v49  ;;  %v6010_v45 = vld [vmem:[#allocation2 + $0x240] sm:$0xff]  ;;  %v6013_v49 = vld [vmem:[#allocation2 + $0x250] sm:$0xff]  ;;  %v6016_v51 = vld [vmem:[#allocation2 + $0x218] sm:$0xff] }
 0x331   :  { %8140 = vst [vmem:[#allocation47_spill] sm:$0xff] %v6010_v45  ;;  %8141 = vst [vmem:[#allocation50_spill] sm:$0xff] %v6013_v49 }
 0x332   :  { %8142 = vst [vmem:[#allocation49_spill] sm:$0xff] %v6016_v51 }
 0x33a   :  { %v4394_v16 = vpop.eup %4393 }
 0x33b   :  { %v1484_v38 = vadd.f32 1.0, %v4394_v16  ;;  %v6019_v16 = vld [vmem:[#allocation2 + $0x228] sm:$0xff] }
 0x33c   :  { %8143 = vst [vmem:[#allocation52_spill] sm:$0xff] %v6019_v16 }
 0x33d   :  { %v4396_v50 = vpop.eup %4395  ;;  %4397 = vrcp.f32 %v1484_v38  ;;  %v6022_v38 = vld [vmem:[#allocation2 + $0x210] sm:$0xff] }
 0x33e   :  { %v1331_v47 = vmul.f32 %v4396_v50, %v1330_v57  ;;  %4399 = vtanh.f32 %v1491_v53  ;;  %8144 = vst [vmem:[#allocation51_spill] sm:$0xff] %v6022_v38  ;;  %v6025_v57 = vld [vmem:[#allocation2 + $0x220] sm:$0xff] }
 0x33f   :  { %8145 = vst [vmem:[#allocation54_spill] sm:$0xff] %v6025_v57 }
 0x340   :  { %v5970_v59 = vadd.f32 %v1332_v31, %v1331_v47  ;;  %v6028_v31 = vld [vmem:[#allocation2 + $0x1e8] sm:$0xff] }
 0x341   :  { %8146 = vst [vmem:[#allocation53_spill] sm:$0xff] %v6028_v31 }
 0x342   :  { %1399 = vmatmul.mubr.f32.vlgmr.msra.gmra.mxu0 %v5970_v59  ;;  %4127 = vmatmul.mubr.f32.vlgmr.msra.gmra.mxu1 %v5970_v59 }
 0x343   :  { %1498 = vmatpush1.msra.mxu0 %v5974_v48  ;;  %1569 = vmatpush1.msra.mxu1 %v5977_v46 }
 0x344   :  { %1499 = vmatprep.subr.mxu0 %v5980_v56  ;;  %1570 = vmatprep.subr.mxu1 %v5983_v10 }
 0x345   :  { %1500 = vmatpush1.msra.mxu0 %v5986_v44  ;;  %1571 = vmatpush1.msra.mxu1 %v5989_v21 }
 0x346   :  { %1501 = vmatprep.subr.mxu0 %v5992_v28  ;;  %1572 = vmatprep.subr.mxu1 %v5995_v62 }
 0x347   :  { %1502 = vmatpush1.msra.mxu0 %v5998_v58  ;;  %1573 = vmatpush1.msra.mxu1 %v6001_v43 }
 0x348   :  { %1503 = vmatprep.subr.mxu0 %v6004_v41  ;;  %1574 = vmatprep.subr.mxu1 %v6007_v60 }
 0x349   :  { %1504 = vmatpush1.msra.mxu0 %v6010_v45  ;;  %1575 = vmatpush1.msra.mxu1 %v6013_v49  ;;  %v6031_v49 = vld [vmem:[#allocation2 + $0x1f8] sm:$0xff] }
 0x34a   :  { %v4398_v53 = vpop.eup %4397  ;;  %1505 = vmatprep.subr.mxu0 %v6016_v51  ;;  %1576 = vmatprep.subr.mxu1 %v6019_v16  ;;  %8147 = vst [vmem:[#allocation56_spill] sm:$0xff] %v6031_v49  ;;  %v6034_v51 = vld [vmem:[#allocation2 + $0x1e0] sm:$0xff]  ;;  %v6037_v16 = vld [vmem:[#allocation2 + $0x1f0] sm:$0xff]  ;;  %v6041_v45 = vld [vmem:[#allocation2 + $0x1b8] sm:$0xff] }
 0x34b   :  { %1506 = vmatpush1.msra.mxu0 %v6022_v38  ;;  %1577 = vmatpush1.msra.mxu1 %v6025_v57  ;;  %v1493_v50 = vsub.f32 1.0, %v4398_v53  ;;  %v4400_v47 = vpop.eup %4399  ;;  %8148 = vst [vmem:[#allocation55_spill] sm:$0xff] %v6034_v51  ;;  %8149 = vst [vmem:[#allocation58_spill] sm:$0xff] %v6037_v16  ;;  %v1495_v57 = vmul.f32 %v4398_v53, %v5711_v3  ;;  %v6058_v3 = vld [vmem:[#allocation2 + $0x198] sm:$0xff]  ;;  %v6061_v53 = vld [vmem:[#allocation2 + $0x180] sm:$0xff] }
 0x34c   :  { %1507 = vmatprep.subr.mxu0 %v6028_v31  ;;  %1578 = vmatprep.subr.mxu1 %v6031_v49  ;;  %v6044_v31 = vld [vmem:[#allocation2 + $0x1c8] sm:$0xff]  ;;  %v6047_v49 = vld [vmem:[#allocation2 + $0x1b0] sm:$0xff]  ;;  %8152 = vst [vmem:[#allocation59_spill] sm:$0xff] %v6058_v3  ;;  %8153 = vst [vmem:[#allocation62_spill] sm:$0xff] %v6061_v53 }
 0x34d   :  { %1508 = vmatpush1.msra.mxu0 %v6034_v51  ;;  %1579 = vmatpush1.msra.mxu1 %v6037_v16  ;;  %v1494_v38 = vmul.f32 %v4400_v47, %v1493_v50  ;;  %8150 = vst [vmem:[#allocation57_spill] sm:$0xff] %v6047_v49  ;;  %v6050_v51 = vld [vmem:[#allocation2 + $0x1c0] sm:$0xff]  ;;  %v6055_v50 = vld [vmem:[#allocation2 + $0x188] sm:$0xff]  ;;  %v6064_v47 = vld [vmem:[#allocation2 + $0x190] sm:$0xff] }
 0x34e   :  { %1509 = vmatprep.subr.mxu0 %v6041_v45  ;;  %1580 = vmatprep.subr.mxu1 %v6044_v31  ;;  %8151 = vst [vmem:[#allocation60_spill] sm:$0xff] %v6055_v50  ;;  %8154 = vst [vmem:[#allocation61_spill] sm:$0xff] %v6064_v47 }
 0x34f   :  { %1510 = vmatpush1.msra.mxu0 %v6047_v49  ;;  %1581 = vmatpush1.msra.mxu1 %v6050_v51  ;;  %v6053_v16 = vadd.f32 %v1495_v57, %v1494_v38  ;;  %v6067_v49 = vld [vmem:[#allocation2 + $0x158] sm:$0xff]  ;;  %v6070_v38 = vld [vmem:[#allocation2 + $0x168] sm:$0xff]  ;;  %v6073_v57 = vld [vmem:[#allocation2 + $0x150] sm:$0xff] }
 0x350   :  { %1511 = vmatprep.subr.mxu0 %v6055_v50  ;;  %1582 = vmatprep.subr.mxu1 %v6058_v3  ;;  %8155 = vst [vmem:[#allocation64_spill] sm:$0xff] %v6067_v49  ;;  %8156 = vst [vmem:[#allocation63_spill] sm:$0xff] %v6070_v38  ;;  %v6076_v3 = vld [vmem:[#allocation2 + $0x160] sm:$0xff] }
 0x351   :  { %1512 = vmatpush1.msra.mxu0 %v6061_v53  ;;  %1583 = vmatpush1.msra.mxu1 %v6064_v47  ;;  %8157 = vst [vmem:[#allocation66_spill] sm:$0xff] %v6073_v57  ;;  %8158 = vst [vmem:[#allocation65_spill] sm:$0xff] %v6076_v3  ;;  %v6079_v53 = vld [vmem:[#allocation2 + $0x128] sm:$0xff]  ;;  %v6082_v47 = vld [vmem:[#allocation2 + $0x138] sm:$0xff] }
 0x352   :  { %1513 = vmatprep.subr.mxu0 %v6067_v49  ;;  %1584 = vmatprep.subr.mxu1 %v6070_v38  ;;  %8159 = vst [vmem:[#allocation68_spill] sm:$0xff] %v6079_v53  ;;  %8160 = vst [vmem:[#allocation67_spill] sm:$0xff] %v6082_v47  ;;  %v6085_v49 = vld [vmem:[#allocation2 + $0x120] sm:$0xff]  ;;  %v6088_v38 = vld [vmem:[#allocation2 + $0x130] sm:$0xff] }
 0x353   :  { %1514 = vmatpush1.msra.mxu0 %v6073_v57  ;;  %1585 = vmatpush1.msra.mxu1 %v6076_v3  ;;  %8161 = vst [vmem:[#allocation70_spill] sm:$0xff] %v6085_v49  ;;  %8162 = vst [vmem:[#allocation69_spill] sm:$0xff] %v6088_v38  ;;  %v6091_v57 = vld [vmem:[#allocation2 + $0xf8] sm:$0xff]  ;;  %v6094_v3 = vld [vmem:[#allocation2 + $0x108] sm:$0xff] }
 0x354   :  { %1515 = vmatprep.subr.mxu0 %v6079_v53  ;;  %1586 = vmatprep.subr.mxu1 %v6082_v47  ;;  %8163 = vst [vmem:[#allocation72_spill] sm:$0xff] %v6091_v57  ;;  %8164 = vst [vmem:[#allocation71_spill] sm:$0xff] %v6094_v3  ;;  %v6097_v53 = vld [vmem:[#allocation2 + $0xf0] sm:$0xff]  ;;  %v6100_v47 = vld [vmem:[#allocation2 + $0x100] sm:$0xff] }
 0x355   :  { %1516 = vmatpush1.msra.mxu0 %v6085_v49  ;;  %1587 = vmatpush1.msra.mxu1 %v6088_v38  ;;  %8165 = vst [vmem:[#allocation74_spill] sm:$0xff] %v6097_v53  ;;  %8166 = vst [vmem:[#allocation73_spill] sm:$0xff] %v6100_v47  ;;  %v6103_v49 = vld [vmem:[#allocation2 + $0xc8] sm:$0xff]  ;;  %v6106_v38 = vld [vmem:[#allocation2 + $0xd8] sm:$0xff] }
 0x356   :  { %1517 = vmatprep.subr.mxu0 %v6091_v57  ;;  %1588 = vmatprep.subr.mxu1 %v6094_v3  ;;  %8167 = vst [vmem:[#allocation75_spill] sm:$0xff] %v6103_v49  ;;  %8168 = vst [vmem:[#allocation76_spill] sm:$0xff] %v6106_v38  ;;  %v6109_v57 = vld [vmem:[#allocation2 + $0xc0] sm:$0xff]  ;;  %v6112_v3 = vld [vmem:[#allocation2 + $0xd0] sm:$0xff] }
 0x357   :  { %1518 = vmatpush1.msra.mxu0 %v6097_v53  ;;  %1589 = vmatpush1.msra.mxu1 %v6100_v47  ;;  %8169 = vst [vmem:[#allocation12_spill] sm:$0xff] %v6109_v57  ;;  %8170 = vst [vmem:[#allocation89_spill] sm:$0xff] %v6112_v3  ;;  %v6115_v53 = vld [vmem:[#allocation2 + $0x98] sm:$0xff]  ;;  %v6118_v47 = vld [vmem:[#allocation2 + $0xa8] sm:$0xff] }
 0x358   :  { %1519 = vmatprep.subr.mxu0 %v6103_v49  ;;  %1590 = vmatprep.subr.mxu1 %v6106_v38  ;;  %8171 = vst [vmem:[#allocation104_spill] sm:$0xff] %v6115_v53  ;;  %8172 = vst [vmem:[#allocation105_spill] sm:$0xff] %v6118_v47  ;;  %v6121_v49 = vld [vmem:[#allocation2 + $0x90] sm:$0xff]  ;;  %v6124_v38 = vld [vmem:[#allocation2 + $0xa0] sm:$0xff] }
 0x359   :  { %1520 = vmatpush1.msra.mxu0 %v6109_v57  ;;  %1591 = vmatpush1.msra.mxu1 %v6112_v3  ;;  %8173 = vst [vmem:[#allocation106_spill] sm:$0xff] %v6121_v49  ;;  %8174 = vst [vmem:[#allocation107_spill] sm:$0xff] %v6124_v38  ;;  %v6127_v57 = vld [vmem:[#allocation2 + $0x68] sm:$0xff]  ;;  %v6130_v3 = vld [vmem:[#allocation2 + $0x78] sm:$0xff] }
 0x35a   :  { %1521 = vmatprep.subr.mxu0 %v6115_v53  ;;  %1592 = vmatprep.subr.mxu1 %v6118_v47  ;;  %8175 = vst [vmem:[#allocation108_spill] sm:$0xff] %v6127_v57  ;;  %8176 = vst [vmem:[#allocation109_spill] sm:$0xff] %v6130_v3  ;;  %v6133_v53 = vld [vmem:[#allocation2 + $0x60] sm:$0xff]  ;;  %v6136_v47 = vld [vmem:[#allocation2 + $0x70] sm:$0xff] }
 0x35b   :  { %1522 = vmatpush1.msra.mxu0 %v6121_v49  ;;  %1593 = vmatpush1.msra.mxu1 %v6124_v38  ;;  %8177 = vst [vmem:[#allocation110_spill] sm:$0xff] %v6133_v53  ;;  %8178 = vst [vmem:[#allocation111_spill] sm:$0xff] %v6136_v47  ;;  %v6139_v49 = vld [vmem:[#allocation2 + $0x38] sm:$0xff]  ;;  %v6142_v38 = vld [vmem:[#allocation2 + $0x48] sm:$0xff] }
 0x35c   :  { %1523 = vmatprep.subr.mxu0 %v6127_v57  ;;  %1594 = vmatprep.subr.mxu1 %v6130_v3  ;;  %8179 = vst [vmem:[#allocation112_spill] sm:$0xff] %v6139_v49  ;;  %8180 = vst [vmem:[#allocation113_spill] sm:$0xff] %v6142_v38  ;;  %v6145_v57 = vld [vmem:[#allocation2 + $0x30] sm:$0xff]  ;;  %v6148_v3 = vld [vmem:[#allocation2 + $0x40] sm:$0xff] }
 0x35d   :  { %1524 = vmatpush1.msra.mxu0 %v6133_v53  ;;  %1595 = vmatpush1.msra.mxu1 %v6136_v47  ;;  %8181 = vst [vmem:[#allocation114_spill] sm:$0xff] %v6148_v3  ;;  %v6151_v53 = vld [vmem:[#allocation2 + $0x8] sm:$0xff]  ;;  %v6154_v47 = vld [vmem:[#allocation2 + $0x18] sm:$0xff] }
 0x35e   :  { %1525 = vmatprep.subr.mxu0 %v6139_v49  ;;  %1596 = vmatprep.subr.mxu1 %v6142_v38  ;;  %8182 = vst [vmem:[#allocation115_spill] sm:$0xff] %v6151_v53  ;;  %8183 = vst [vmem:[#allocation116_spill] sm:$0xff] %v6154_v47  ;;  %v6157_v49 = vld [vmem:[#allocation2] sm:$0xff]  ;;  %v6161_v38 = vld [vmem:[#allocation2 + $0x10] sm:$0xff] }
 0x35f   :  { %1526 = vmatpush1.msra.mxu0 %v6145_v57  ;;  %1597 = vmatpush1.msra.mxu1 %v6148_v3  ;;  %8184 = vst [vmem:[#allocation117_spill] sm:$0xff] %v6157_v49  ;;  %8185 = vst [vmem:[#allocation118_spill] sm:$0xff] %v6161_v38 }
 0x360   :  { %1527 = vmatprep.subr.mxu0 %v6151_v53  ;;  %1598 = vmatprep.subr.mxu1 %v6154_v47  ;;  %v6167_v53 = vld [vmem:[#allocation2 + $0x2f8] sm:$0xff]  ;;  %v6171_v47 = vld [vmem:[#allocation2 + $0x2f0] sm:$0xff] }
 0x361   :  { %1528 = vmatpush1.msra.mxu0 %v6157_v49  ;;  %1561 = vmatprep.mubr.f32.mxu0 %v7998_v33  ;;  %8186 = vst [vmem:[#allocation119_spill] sm:$0xff] %v6167_v53  ;;  %8187 = vst [vmem:[#allocation120_spill] sm:$0xff] %v6171_v47  ;;  %v6175_v49 = vld [vmem:[#allocation2 + $0x2c8] sm:$0xff] }
 0x362   :  { %1599 = vmatpush1.msra.mxu1 %v6161_v38  ;;  %1632 = vmatprep.mubr.f32.mxu1 %v7998_v33  ;;  %8188 = vst [vmem:[#allocation121_spill] sm:$0xff] %v6175_v49  ;;  %v6179_v38 = vld [vmem:[#allocation2 + $0x2c0] sm:$0xff] }
 0x363   :  { %1562 = vmatmul.mubr.f32.vlgmr.msra.gmra.mxu0 %v6053_v16  ;;  %1633 = vmatmul.mubr.f32.vlgmr.msra.gmra.mxu1 %v6053_v16  ;;  %8189 = vst [vmem:[#allocation122_spill] sm:$0xff] %v6179_v38 }
 0x364   :  { %1639 = vmatprep.subr.mxu0 %v6167_v53  ;;  %1703 = vmatprep.mubr.f32.mxu0 %v7998_v33  ;;  %v6183_v53 = vld [vmem:[#allocation2 + $0x298] sm:$0xff] }
 0x365   :  { %1640 = vmatpush1.msra.mxu0 %v6171_v47  ;;  %1735 = vmatprep.subr.mxu1 %v5758_v35  ;;  %8190 = vst [vmem:[#allocation123_spill] sm:$0xff] %v6183_v53  ;;  %v6187_v47 = vld [vmem:[#allocation2 + $0x290] sm:$0xff] }
 0x366   :  { %1641 = vmatprep.subr.mxu0 %v6175_v49  ;;  %1736 = vmatpush1.msra.mxu1 %v5762_v63  ;;  %8191 = vst [vmem:[#allocation124_spill] sm:$0xff] %v6187_v47  ;;  %v6191_v49 = vld [vmem:[#allocation2 + $0x268] sm:$0xff] }
 0x367   :  { %1642 = vmatpush1.msra.mxu0 %v6179_v38  ;;  %1737 = vmatprep.subr.mxu1 %v5766_v2  ;;  %8192 = vst [vmem:[#allocation125_spill] sm:$0xff] %v6191_v49  ;;  %v6195_v38 = vld [vmem:[#allocation2 + $0x260] sm:$0xff] }
 0x368   :  { %1643 = vmatprep.subr.mxu0 %v6183_v53  ;;  %1738 = vmatpush1.msra.mxu1 %v5770_v4  ;;  %8193 = vst [vmem:[#allocation126_spill] sm:$0xff] %v6195_v38  ;;  %v6199_v53 = vld [vmem:[#allocation2 + $0x238] sm:$0xff] }
 0x369   :  { %1644 = vmatpush1.msra.mxu0 %v6187_v47  ;;  %1739 = vmatprep.subr.mxu1 %v5774_v13  ;;  %8194 = vst [vmem:[#allocation127_spill] sm:$0xff] %v6199_v53  ;;  %v6203_v47 = vld [vmem:[#allocation2 + $0x230] sm:$0xff] }
 0x36a   :  { %1645 = vmatprep.subr.mxu0 %v6191_v49  ;;  %1740 = vmatpush1.msra.mxu1 %v5778_v54  ;;  %8195 = vst [vmem:[#allocation128_spill] sm:$0xff] %v6203_v47  ;;  %v6207_v49 = vld [vmem:[#allocation2 + $0x208] sm:$0xff] }
 0x36b   :  { %1646 = vmatpush1.msra.mxu0 %v6195_v38  ;;  %1741 = vmatprep.subr.mxu1 %v5782_v26  ;;  %8196 = vst [vmem:[#allocation129_spill] sm:$0xff] %v6207_v49  ;;  %v6211_v38 = vld [vmem:[#allocation2 + $0x200] sm:$0xff] }
 0x36c   :  { %1647 = vmatprep.subr.mxu0 %v6199_v53  ;;  %1742 = vmatpush1.msra.mxu1 %v5786_v61  ;;  %8197 = vst [vmem:[#allocation130_spill] sm:$0xff] %v6211_v38  ;;  %v6215_v53 = vld [vmem:[#allocation2 + $0x1d8] sm:$0xff] }
 0x36d   :  { %1648 = vmatpush1.msra.mxu0 %v6203_v47  ;;  %1743 = vmatprep.subr.mxu1 %v5790_v5  ;;  %8198 = vst [vmem:[#allocation131_spill] sm:$0xff] %v6215_v53  ;;  %v6219_v47 = vld [vmem:[#allocation2 + $0x1d0] sm:$0xff] }
 0x36e   :  { %1649 = vmatprep.subr.mxu0 %v6207_v49  ;;  %1744 = vmatpush1.msra.mxu1 %v5794_v0  ;;  %8199 = vst [vmem:[#allocation132_spill] sm:$0xff] %v6219_v47  ;;  %v6223_v49 = vld [vmem:[#allocation2 + $0x1a8] sm:$0xff] }
 0x36f   :  { %1650 = vmatpush1.msra.mxu0 %v6211_v38  ;;  %1745 = vmatprep.subr.mxu1 %v5798_v9  ;;  %8200 = vst [vmem:[#allocation133_spill] sm:$0xff] %v6223_v49 }
 0x370   :  { %1651 = vmatprep.subr.mxu0 %v6215_v53  ;;  %1746 = vmatpush1.msra.mxu1 %v5802_v7 }
 0x371   :  { %1652 = vmatpush1.msra.mxu0 %v6219_v47  ;;  %1747 = vmatprep.subr.mxu1 %v5806_v15 }
 0x372   :  { %1653 = vmatprep.subr.mxu0 %v6223_v49  ;;  %1748 = vmatpush1.msra.mxu1 %v5810_v17 }
 0x373   :  { %1654 = vmatpush1.msra.mxu0 %v5502_v25  ;;  %1749 = vmatprep.subr.mxu1 %v5814_v19  ;;  %v8201_v25 = vld [vmem:[#allocation81_spill] sm:$0xff] }
 0x374   :  { %1655 = vmatprep.subr.mxu0 %v5506_v27  ;;  %1750 = vmatpush1.msra.mxu1 %v5818_v20  ;;  %v8202_v27 = vld [vmem:[#allocation22_spill] sm:$0xff] }
 0x375   :  { %1656 = vmatpush1.msra.mxu0 %v5510_v29  ;;  %1751 = vmatprep.subr.mxu1 %v5822_v22  ;;  %v8203_v29 = vld [vmem:[#allocation82_spill] sm:$0xff] }
 0x376   :  { %1657 = vmatprep.subr.mxu0 %v5514_v30  ;;  %1752 = vmatpush1.msra.mxu1 %v5826_v23  ;;  %v8204_v30 = vld [vmem:[#allocation21_spill] sm:$0xff] }
 0x377   :  { %1658 = vmatpush1.msra.mxu0 %v5518_v32  ;;  %1753 = vmatprep.subr.mxu1 %v5830_v14  ;;  %v8205_v32 = vld [vmem:[#allocation83_spill] sm:$0xff] }
 0x378   :  { %1659 = vmatprep.subr.mxu0 %v5522_v34  ;;  %1754 = vmatpush1.msra.mxu1 %v5834_v6  ;;  %v8206_v34 = vld [vmem:[#allocation24_spill] sm:$0xff] }
 0x379   :  { %1660 = vmatpush1.msra.mxu0 %v5526_v36  ;;  %1755 = vmatprep.subr.mxu1 %v5838_v42  ;;  %v8207_v36 = vld [vmem:[#allocation84_spill] sm:$0xff] }
 0x37a   :  { %1661 = vmatprep.subr.mxu0 %v5530_v37  ;;  %1756 = vmatpush1.msra.mxu1 %v5842_v8  ;;  %v8208_v37 = vld [vmem:[#allocation23_spill] sm:$0xff]  ;;  %v8209_v8 = vld [vmem:[#allocation85_spill] sm:$0xff] }
 0x37b   :  { %1662 = vmatpush1.msra.mxu0 %v5534_v39  ;;  %1757 = vmatprep.subr.mxu1 %v5846_v11  ;;  %v8210_v39 = vld [vmem:[#allocation26_spill] sm:$0xff]  ;;  %v8211_v11 = vld [vmem:[#allocation87_spill] sm:$0xff] }
 0x37c   :  { %1663 = vmatprep.subr.mxu0 %v8201_v25  ;;  %1758 = vmatpush1.msra.mxu1 %v8202_v27  ;;  %v8212_v25 = vld [vmem:[#allocation25_spill] sm:$0xff]  ;;  %v8213_v27 = vld [vmem:[#allocation88_spill] sm:$0xff] }
 0x37d   :  { %1664 = vmatpush1.msra.mxu0 %v8203_v29  ;;  %1759 = vmatprep.subr.mxu1 %v8204_v30  ;;  %v8214_v29 = vld [vmem:[#allocation28_spill] sm:$0xff]  ;;  %v8215_v30 = vld [vmem:[#allocation90_spill] sm:$0xff] }
 0x37e   :  { %1665 = vmatprep.subr.mxu0 %v8205_v32  ;;  %1760 = vmatpush1.msra.mxu1 %v8206_v34  ;;  %v8216_v32 = vld [vmem:[#allocation27_spill] sm:$0xff]  ;;  %v8236_v34 = vld [vmem:[#allocation14_spill] sm:$0xff] }
 0x37f   :  { %1666 = vmatpush1.msra.mxu0 %v8207_v36  ;;  %1761 = vmatprep.subr.mxu1 %v8208_v37  ;;  %v8217_v36 = vld [vmem:[#allocation30_spill] sm:$0xff]  ;;  %v224_v42 = vadd.f32 %v8236_v34, %v8033_v1 }
 0x380   :  { %1667 = vmatprep.subr.mxu0 %v8209_v8  ;;  %1762 = vmatpush1.msra.mxu1 %v8210_v39  ;;  %v8218_v8 = vld [vmem:[#allocation29_spill] sm:$0xff] }
 0x381   :  { %1668 = vmatpush1.msra.mxu0 %v8211_v11  ;;  %1763 = vmatprep.subr.mxu1 %v8212_v25  ;;  %v8219_v11 = vld [vmem:[#allocation32_spill] sm:$0xff] }
 0x382   :  { %1669 = vmatprep.subr.mxu0 %v8213_v27  ;;  %1764 = vmatpush1.msra.mxu1 %v8214_v29  ;;  %v8220_v27 = vld [vmem:[#allocation31_spill] sm:$0xff] }
 0x383   :  { %1670 = vmatpush1.msra.mxu0 %v8215_v30  ;;  %1765 = vmatprep.subr.mxu1 %v8216_v32  ;;  %v8221_v30 = vld [vmem:[#allocation34_spill] sm:$0xff] }
 0x384   :  { %1704 = vmatmul.mubr.f32.vlgmr.msra.gmra.mxu0 %v6053_v16  ;;  %4129 = vmatprep.subr.mxu0 %v7998_v33  ;;  %v8225_v32 = vld [vmem:[#allocation38_spill] sm:$0xff] }
 0x385   :  { %4130 = vmatpush3.msra.mxu0 %v8217_v36  ;;  %1766 = vmatpush1.msra.mxu1 %v8218_v8  ;;  %v8222_v36 = vld [vmem:[#allocation33_spill] sm:$0xff]  ;;  %v8223_v8 = vld [vmem:[#allocation36_spill] sm:$0xff] }
 0x386   :  { %4131 = vmatprep.subr.mxu0 %v7998_v33  ;;  %1799 = vmatprep.mubr.f32.mxu1 %v7998_v33 }
 0x387   :  { %4132 = vmatpush3.msra.mxu0 %v8219_v11  ;;  %4161 = vmatprep.mubr.msk.f32.mxu0 %vm4903_vm1, %v7998_v33  ;;  %v8224_v11 = vld [vmem:[#allocation35_spill] sm:$0xff] }
 0x388   :  { %4133 = vmatprep.subr.mxu0 %v7998_v33  ;;  %1898 = vmatprep.subr.mxu1 %v8220_v27  ;;  %v8226_v27 = vld [vmem:[#allocation37_spill] sm:$0xff] }
 0x389   :  { %4134 = vmatpush3.msra.mxu0 %v8221_v30  ;;  %v8227_v30 = vld [vmem:[#allocation40_spill] sm:$0xff] }
 0x38a   :  { %4135 = vmatprep.subr.mxu0 %v7998_v33 }
 0x38b   :  { %4136 = vmatpush3.msra.mxu0 %v8222_v36  ;;  %v8228_v36 = vld [vmem:[#allocation39_spill] sm:$0xff] }
 0x38c   :  { %4137 = vmatprep.subr.mxu0 %v7998_v33 }
 0x38d   :  { %4138 = vmatpush3.msra.mxu0 %v8223_v8  ;;  %v8229_v8 = vld [vmem:[#allocation42_spill] sm:$0xff] }
 0x38e   :  { %4139 = vmatprep.subr.mxu0 %v7998_v33 }
 0x38f   :  { %4140 = vmatpush3.msra.mxu0 %v8224_v11  ;;  %v8230_v11 = vld [vmem:[#allocation41_spill] sm:$0xff] }
 0x390   :  { %4141 = vmatprep.subr.mxu0 %v7998_v33 }
 0x391   :  { %4142 = vmatpush3.msra.mxu0 %v8225_v32  ;;  %v8231_v32 = vld [vmem:[#allocation44_spill] sm:$0xff] }
 0x392   :  { %4143 = vmatprep.subr.mxu0 %v7998_v33 }
 0x393   :  { %4144 = vmatpush3.msra.mxu0 %v8226_v27  ;;  %v8232_v27 = vld [vmem:[#allocation43_spill] sm:$0xff] }
 0x394   :  { %4145 = vmatprep.subr.mxu0 %v7998_v33 }
 0x395   :  { %4146 = vmatpush3.msra.mxu0 %v8227_v30  ;;  %v8233_v30 = vld [vmem:[#allocation46_spill] sm:$0xff] }
 0x396   :  { %4147 = vmatprep.subr.mxu0 %v7998_v33 }
 0x397   :  { %4148 = vmatpush3.msra.mxu0 %v8228_v36  ;;  %v8234_v36 = vld [vmem:[#allocation45_spill] sm:$0xff] }
 0x398   :  { %4149 = vmatprep.subr.mxu0 %v7998_v33 }
 0x399   :  { %4150 = vmatpush3.msra.mxu0 %v8229_v8  ;;  %v8235_v8 = vld [vmem:[#allocation48_spill] sm:$0xff] }
 0x39a   :  { %4151 = vmatprep.subr.mxu0 %v7998_v33 }
 0x39b   :  { %4152 = vmatpush3.msra.mxu0 %v8230_v11 }
 0x39c   :  { %4153 = vmatprep.subr.mxu0 %v7998_v33 }
 0x39d   :  { %4154 = vmatpush3.msra.mxu0 %v8231_v32 }
 0x39e   :  { %4155 = vmatprep.subr.mxu0 %v7998_v33 }
 0x39f   :  { %4156 = vmatpush3.msra.mxu0 %v8232_v27 }
 0x3a0   :  { %4157 = vmatprep.subr.mxu0 %v7998_v33 }
 0x3a1   :  { %4158 = vmatpush3.msra.mxu0 %v8233_v30 }
 0x3a2   :  { %4159 = vmatprep.subr.mxu0 %v7998_v33 }
 0x3a3   :  { %4160 = vmatpush3.msra.mxu0 %v8234_v36 }
 0x3a4   :  { %1969 = vmatprep.subr.mxu0 %v8235_v8 }
 0x402   :  { %v1471_v29 = vpop.f32.mrf.mxu1  ;;  %v1400_v25 = vpop.f32.mrf.mxu0 }
 0x404   :  { %v4128_v11 = vpop.f32.mrf.mxu1  ;;  %v1402_v39 = vpop.f32.mrf.mxu0 }
 0x423   :  { %v1563_v37 = vpop.f32.mrf.mxu0  ;;  %v1634_v32 = vpop.f32.mrf.mxu1 }
 0x424   :  { %v1710_v27 = vadd.f32 %v1563_v37, %v5657_v12  ;;  %v8237_v37 = vld [vmem:[#allocation95_spill] sm:$0xff] }
 0x425   :  { %v1565_v6 = vpop.f32.mrf.mxu0  ;;  %v1636_v14 = vpop.f32.mrf.mxu1 }
 0x426   :  { %v1713_v30 = vadd.f32 %v1710_v27, %v1400_v25  ;;  %v1876_v23 = vadd.f32 %v1636_v14, %v224_v42  ;;  %v1711_v36 = vadd.f32 %v1565_v6, %v5661_v18  ;;  %v226_v25 = vadd.f32 %v8237_v37, %v8034_v24 }
 0x428   :  { %v3816_v22 = vmul.f32 -1.442695, %v1713_v30  ;;  %v3818_v20 = vmul.f32 -1.442695, %v1876_v23  ;;  %v1714_v11 = vadd.f32 %v1711_v36, %v1402_v39  ;;  %v1727_v23 = vadd.f32 %v5670_v55, %v1471_v29  ;;  %v6310_v39 = vld [vmem:[%s7456_s3] ss:$0 sm:$0xff] }
 0x429   :  { %8238 = vst [vmem:[#allocation81_spill] sm:$0xff] %v6310_v39  ;;  %v8239_v36 = vld [vmem:[#allocation86_spill] sm:$0xff] }
 0x42a   :  { %4401 = vpow2.f32 %v3816_v22  ;;  %v3817_v8 = vmul.f32 -1.442695, %v1714_v11 }
 0x42b   :  { %4403 = vpow2.f32 %v3818_v20 }
 0x42c   :  { %4405 = vpow2.f32 %v3817_v8  ;;  %v334_v8 = vadd.f32 %v8239_v36, %v5438_v40  ;;  %v8246_v36 = vld [vmem:[#allocation53_spill] sm:$0xff] }
 0x437   :  { %v4402_v19 = vpop.eup %4401 }
 0x438   :  { %v4404_v17 = vpop.eup %4403  ;;  %v1721_v49 = vadd.f32 1.0, %v4402_v19  ;;  %v1712_v19 = vadd.f32 %v1634_v32, %v5674_v52 }
 0x439   :  { %v1884_v15 = vadd.f32 1.0, %v4404_v17  ;;  %v4406_v34 = vpop.eup %4405 }
 0x43a   :  { %4407 = vrcp.f32 %v1721_v49  ;;  %v1722_v14 = vadd.f32 1.0, %v4406_v34 }
 0x43b   :  { %4409 = vrcp.f32 %v1884_v15 }
 0x43c   :  { %4411 = vrcp.f32 %v1722_v14  ;;  %v8241_v14 = vld [vmem:[#allocation50_spill] sm:$0xff] }
 0x444   :  { %v1705_v42 = vpop.f32.mrf.mxu0 }
 0x445   :  { %v1877_v27 = vadd.f32 %v1705_v42, %v226_v25 }
 0x446   :  { %v1707_v22 = vpop.f32.mrf.mxu0 }
 0x447   :  { %v4408_v20 = vpop.eup %4407  ;;  %v3819_v6 = vmul.f32 -1.442695, %v1877_v27  ;;  %v1890_v17 = vadd.f32 %v6310_v39, %v1707_v22 }
 0x448   :  { %v4410_v15 = vpop.eup %4409  ;;  %v1728_v49 = vmul.f32 %v4408_v20, %v1727_v23  ;;  %v8242_v20 = vld [vmem:[#allocation49_spill] sm:$0xff] }
 0x449   :  { %4413 = vpow2.f32 %v3819_v6  ;;  %v1891_v55 = vmul.f32 %v4410_v15, %v1890_v17  ;;  %v4412_v11 = vpop.eup %4411  ;;  %v8243_v6 = vld [vmem:[#allocation52_spill] sm:$0xff]  ;;  %v8244_v17 = vld [vmem:[#allocation51_spill] sm:$0xff]  ;;  %v8245_v15 = vld [vmem:[#allocation54_spill] sm:$0xff] }
 0x44a   :  { %v1729_v29 = vadd.f32 %v1728_v49, %v1712_v19  ;;  %v1731_v25 = vsub.f32 1.0, %v4412_v11  ;;  %v1733_v22 = vmul.f32 %v4412_v11, %v5970_v59  ;;  %v8240_v59 = vld [vmem:[#allocation47_spill] sm:$0xff] }
 0x44b   :  { %v1892_v30 = vadd.f32 %v1891_v55, %v334_v8  ;;  %v8247_v8 = vld [vmem:[#allocation56_spill] sm:$0xff]  ;;  %v8248_v55 = vld [vmem:[#allocation55_spill] sm:$0xff] }
 0x44c   :  { %4415 = vtanh.f32 %v1729_v29  ;;  %v8249_v29 = vld [vmem:[#allocation58_spill] sm:$0xff] }
 0x456   :  { %v4414_v34 = vpop.eup %4413 }
 0x457   :  { %v1885_v37 = vadd.f32 1.0, %v4414_v34  ;;  %v8250_v34 = vld [vmem:[#allocation57_spill] sm:$0xff] }
 0x459   :  { %v4416_v42 = vpop.eup %4415  ;;  %4417 = vrcp.f32 %v1885_v37 }
 0x45a   :  { %v1732_v27 = vmul.f32 %v4416_v42, %v1731_v25  ;;  %4419 = vtanh.f32 %v1892_v30  ;;  %v8251_v25 = vld [vmem:[#allocation59_spill] sm:$0xff]  ;;  %v8252_v42 = vld [vmem:[#allocation62_spill] sm:$0xff] }
 0x45c   :  { %v6317_v32 = vadd.f32 %v1733_v22, %v1732_v27  ;;  %v8253_v27 = vld [vmem:[#allocation61_spill] sm:$0xff]  ;;  %v8254_v22 = vld [vmem:[#allocation64_spill] sm:$0xff] }
 0x45e   :  { %1800 = vmatmul.mubr.f32.vlgmr.msra.gmra.mxu1 %v6317_v32  ;;  %4162 = vmatmul.mubr.f32.vlgmr.msra.gmra.mxu0 %v6317_v32 }
 0x45f   :  { %1899 = vmatpush1.msra.mxu1 %v5974_v48  ;;  %1970 = vmatpush1.msra.mxu0 %v5977_v46 }
 0x460   :  { %1900 = vmatprep.subr.mxu1 %v5980_v56  ;;  %1971 = vmatprep.subr.mxu0 %v5983_v10 }
 0x461   :  { %1901 = vmatpush1.msra.mxu1 %v5986_v44  ;;  %1972 = vmatpush1.msra.mxu0 %v5989_v21 }
 0x462   :  { %1902 = vmatprep.subr.mxu1 %v5992_v28  ;;  %1973 = vmatprep.subr.mxu0 %v5995_v62 }
 0x463   :  { %1903 = vmatpush1.msra.mxu1 %v5998_v58  ;;  %1974 = vmatpush1.msra.mxu0 %v6001_v43 }
 0x464   :  { %1904 = vmatprep.subr.mxu1 %v6004_v41  ;;  %1975 = vmatprep.subr.mxu0 %v6007_v60 }
 0x465   :  { %1905 = vmatpush1.msra.mxu1 %v8240_v59  ;;  %1976 = vmatpush1.msra.mxu0 %v8241_v14 }
 0x466   :  { %v4418_v23 = vpop.eup %4417  ;;  %1906 = vmatprep.subr.mxu1 %v8242_v20  ;;  %1977 = vmatprep.subr.mxu0 %v8243_v6 }
 0x467   :  { %1907 = vmatpush1.msra.mxu1 %v8244_v17  ;;  %1978 = vmatpush1.msra.mxu0 %v8245_v15  ;;  %v1894_v19 = vsub.f32 1.0, %v4418_v23  ;;  %v4420_v49 = vpop.eup %4419  ;;  %v1896_v11 = vmul.f32 %v4418_v23, %v6053_v16  ;;  %v8255_v16 = vld [vmem:[#allocation63_spill] sm:$0xff]  ;;  %v8256_v23 = vld [vmem:[#allocation66_spill] sm:$0xff] }
 0x468   :  { %1908 = vmatprep.subr.mxu1 %v8246_v36  ;;  %1979 = vmatprep.subr.mxu0 %v8247_v8 }
 0x469   :  { %1909 = vmatpush1.msra.mxu1 %v8248_v55  ;;  %1980 = vmatpush1.msra.mxu0 %v8249_v29  ;;  %v1895_v30 = vmul.f32 %v4420_v49, %v1894_v19  ;;  %v8257_v19 = vld [vmem:[#allocation65_spill] sm:$0xff]  ;;  %v8258_v49 = vld [vmem:[#allocation68_spill] sm:$0xff] }
 0x46a   :  { %1910 = vmatprep.subr.mxu1 %v6041_v45  ;;  %1981 = vmatprep.subr.mxu0 %v6044_v31 }
 0x46b   :  { %1911 = vmatpush1.msra.mxu1 %v8250_v34  ;;  %1982 = vmatpush1.msra.mxu0 %v6050_v51  ;;  %v6348_v37 = vadd.f32 %v1896_v11, %v1895_v30  ;;  %v8259_v30 = vld [vmem:[#allocation67_spill] sm:$0xff]  ;;  %v8260_v11 = vld [vmem:[#allocation70_spill] sm:$0xff] }
 0x46c   :  { %1912 = vmatprep.subr.mxu1 %v6055_v50  ;;  %1983 = vmatprep.subr.mxu0 %v8251_v25  ;;  %v8261_v50 = vld [vmem:[#allocation69_spill] sm:$0xff]  ;;  %v8262_v25 = vld [vmem:[#allocation72_spill] sm:$0xff] }
 0x46d   :  { %1913 = vmatpush1.msra.mxu1 %v8252_v42  ;;  %1984 = vmatpush1.msra.mxu0 %v8253_v27  ;;  %v8263_v42 = vld [vmem:[#allocation71_spill] sm:$0xff]  ;;  %v8264_v27 = vld [vmem:[#allocation74_spill] sm:$0xff] }
 0x46e   :  { %1914 = vmatprep.subr.mxu1 %v8254_v22  ;;  %1985 = vmatprep.subr.mxu0 %v8255_v16  ;;  %v8265_v22 = vld [vmem:[#allocation73_spill] sm:$0xff]  ;;  %v8266_v16 = vld [vmem:[#allocation75_spill] sm:$0xff] }
 0x46f   :  { %1915 = vmatpush1.msra.mxu1 %v8256_v23  ;;  %1986 = vmatpush1.msra.mxu0 %v8257_v19  ;;  %v8267_v23 = vld [vmem:[#allocation76_spill] sm:$0xff] }
 0x470   :  { %1916 = vmatprep.subr.mxu1 %v8258_v49  ;;  %1987 = vmatprep.subr.mxu0 %v8259_v30  ;;  %v8268_v19 = vld [vmem:[#allocation12_spill] sm:$0xff]  ;;  %v8269_v49 = vld [vmem:[#allocation89_spill] sm:$0xff] }
 0x471   :  { %1917 = vmatpush1.msra.mxu1 %v8260_v11  ;;  %1988 = vmatpush1.msra.mxu0 %v8261_v50  ;;  %v8270_v30 = vld [vmem:[#allocation104_spill] sm:$0xff]  ;;  %v8271_v11 = vld [vmem:[#allocation105_spill] sm:$0xff]  ;;  %v8272_v50 = vld [vmem:[#allocation106_spill] sm:$0xff] }
 0x472   :  { %1918 = vmatprep.subr.mxu1 %v8262_v25  ;;  %1989 = vmatprep.subr.mxu0 %v8263_v42  ;;  %v8273_v25 = vld [vmem:[#allocation107_spill] sm:$0xff]  ;;  %v8274_v42 = vld [vmem:[#allocation108_spill] sm:$0xff] }
 0x473   :  { %1919 = vmatpush1.msra.mxu1 %v8264_v27  ;;  %1990 = vmatpush1.msra.mxu0 %v8265_v22  ;;  %v8275_v27 = vld [vmem:[#allocation109_spill] sm:$0xff]  ;;  %v8276_v22 = vld [vmem:[#allocation110_spill] sm:$0xff] }
 0x474   :  { %1920 = vmatprep.subr.mxu1 %v8266_v16  ;;  %1991 = vmatprep.subr.mxu0 %v8267_v23  ;;  %v8277_v16 = vld [vmem:[#allocation111_spill] sm:$0xff]  ;;  %v8278_v23 = vld [vmem:[#allocation112_spill] sm:$0xff] }
 0x475   :  { %1921 = vmatpush1.msra.mxu1 %v8268_v19  ;;  %1992 = vmatpush1.msra.mxu0 %v8269_v49  ;;  %v8279_v19 = vld [vmem:[#allocation113_spill] sm:$0xff] }
 0x476   :  { %1922 = vmatprep.subr.mxu1 %v8270_v30  ;;  %1993 = vmatprep.subr.mxu0 %v8271_v11  ;;  %v8280_v11 = vld [vmem:[#allocation115_spill] sm:$0xff] }
 0x477   :  { %1923 = vmatpush1.msra.mxu1 %v8272_v50  ;;  %1994 = vmatpush1.msra.mxu0 %v8273_v25  ;;  %v8281_v50 = vld [vmem:[#allocation116_spill] sm:$0xff]  ;;  %v8282_v25 = vld [vmem:[#allocation117_spill] sm:$0xff] }
 0x478   :  { %1924 = vmatprep.subr.mxu1 %v8274_v42  ;;  %1995 = vmatprep.subr.mxu0 %v8275_v27  ;;  %v8283_v27 = vld [vmem:[#allocation118_spill] sm:$0xff] }
 0x479   :  { %1925 = vmatpush1.msra.mxu1 %v8276_v22  ;;  %1996 = vmatpush1.msra.mxu0 %v8277_v16 }
 0x47a   :  { %1926 = vmatprep.subr.mxu1 %v8278_v23  ;;  %1997 = vmatprep.subr.mxu0 %v8279_v19  ;;  %v8284_v19 = vld [vmem:[#allocation119_spill] sm:$0xff] }
 0x47b   :  { %1927 = vmatpush1.msra.mxu1 %v6145_v57  ;;  %1998 = vmatpush1.msra.mxu0 %v6148_v3  ;;  %v8285_v3 = vld [vmem:[#allocation120_spill] sm:$0xff] }
 0x47c   :  { %1928 = vmatprep.subr.mxu1 %v8280_v11  ;;  %1999 = vmatprep.subr.mxu0 %v8281_v50  ;;  %v8286_v50 = vld [vmem:[#allocation121_spill] sm:$0xff]  ;;  %v8289_v11 = vld [vmem:[#allocation124_spill] sm:$0xff] }
 0x47d   :  { %1929 = vmatpush1.msra.mxu1 %v8282_v25  ;;  %1962 = vmatprep.mubr.f32.mxu1 %v7998_v33  ;;  %v8287_v25 = vld [vmem:[#allocation122_spill] sm:$0xff] }
 0x47e   :  { %2000 = vmatpush1.msra.mxu0 %v8283_v27  ;;  %2033 = vmatprep.mubr.f32.mxu0 %v7998_v33  ;;  %v8288_v27 = vld [vmem:[#allocation123_spill] sm:$0xff] }
 0x47f   :  { %1963 = vmatmul.mubr.f32.vlgmr.msra.gmra.mxu1 %v6348_v37  ;;  %2034 = vmatmul.mubr.f32.vlgmr.msra.gmra.mxu0 %v6348_v37 }
 0x480   :  { %2040 = vmatprep.subr.mxu1 %v8284_v19  ;;  %2104 = vmatprep.mubr.f32.mxu1 %v7998_v33  ;;  %v8290_v19 = vld [vmem:[#allocation125_spill] sm:$0xff] }
 0x481   :  { %2041 = vmatpush1.msra.mxu1 %v8285_v3  ;;  %2136 = vmatprep.subr.mxu0 %v5758_v35  ;;  %v8291_v35 = vld [vmem:[#allocation126_spill] sm:$0xff] }
 0x482   :  { %2042 = vmatprep.subr.mxu1 %v8286_v50  ;;  %2137 = vmatpush1.msra.mxu0 %v5762_v63  ;;  %v8292_v63 = vld [vmem:[#allocation127_spill] sm:$0xff] }
 0x483   :  { %2043 = vmatpush1.msra.mxu1 %v8287_v25  ;;  %2138 = vmatprep.subr.mxu0 %v5766_v2  ;;  %v8293_v2 = vld [vmem:[#allocation128_spill] sm:$0xff] }
 0x484   :  { %2044 = vmatprep.subr.mxu1 %v8288_v27  ;;  %2139 = vmatpush1.msra.mxu0 %v5770_v4  ;;  %v8294_v4 = vld [vmem:[#allocation129_spill] sm:$0xff] }
 0x485   :  { %2045 = vmatpush1.msra.mxu1 %v8289_v11  ;;  %2140 = vmatprep.subr.mxu0 %v5774_v13  ;;  %v8295_v13 = vld [vmem:[#allocation77_spill] sm:$0xff] }
 0x486   :  { %2046 = vmatprep.subr.mxu1 %v8290_v19  ;;  %2141 = vmatpush1.msra.mxu0 %v5778_v54  ;;  %v8296_v54 = vld [vmem:[#allocation133_spill] sm:$0xff] }
 0x487   :  { %2047 = vmatpush1.msra.mxu1 %v8291_v35  ;;  %2142 = vmatprep.subr.mxu0 %v5782_v26  ;;  %v8297_v26 = vld [vmem:[#allocation78_spill] sm:$0xff] }
 0x488   :  { %2048 = vmatprep.subr.mxu1 %v8292_v63  ;;  %2143 = vmatpush1.msra.mxu0 %v5786_v61  ;;  %v6420_v61 = vld [vmem:[#allocation2 + $0x1a0] sm:$0xff] }
 0x489   :  { %2049 = vmatpush1.msra.mxu1 %v8293_v2  ;;  %2144 = vmatprep.subr.mxu0 %v5790_v5  ;;  %8298 = vst [vmem:[#allocation82_spill] sm:$0xff] %v6420_v61  ;;  %v8299_v5 = vld [vmem:[#allocation79_spill] sm:$0xff] }
 0x48a   :  { %2050 = vmatprep.subr.mxu1 %v8294_v4  ;;  %2145 = vmatpush1.msra.mxu0 %v5794_v0  ;;  %v6424_v0 = vld [vmem:[#allocation2 + $0x178] sm:$0xff] }
 0x48b   :  { %2051 = vmatpush1.msra.mxu1 %v6211_v38  ;;  %2146 = vmatprep.subr.mxu0 %v5798_v9  ;;  %8300 = vst [vmem:[#allocation83_spill] sm:$0xff] %v6424_v0  ;;  %v8301_v9 = vld [vmem:[#allocation80_spill] sm:$0xff] }
 0x48c   :  { %2052 = vmatprep.subr.mxu1 %v6215_v53  ;;  %2147 = vmatpush1.msra.mxu0 %v5802_v7  ;;  %v6428_v7 = vld [vmem:[#allocation2 + $0x170] sm:$0xff]  ;;  %v8351_v38 = vld [vmem:[#allocation96_spill] sm:$0xff] }
 0x48d   :  { %2053 = vmatpush1.msra.mxu1 %v6219_v47  ;;  %2148 = vmatprep.subr.mxu0 %v8295_v13  ;;  %8302 = vst [vmem:[#allocation84_spill] sm:$0xff] %v6428_v7  ;;  %v8303_v13 = vld [vmem:[#allocation13_spill] sm:$0xff]  ;;  %v230_v4 = vadd.f32 %v8351_v38, %v8033_v1 }
 0x48e   :  { %2054 = vmatprep.subr.mxu1 %v8296_v54  ;;  %2149 = vmatpush1.msra.mxu0 %v8297_v26  ;;  %v6432_v54 = vld [vmem:[#allocation2 + $0x148] sm:$0xff]  ;;  %v8352_v38 = vld [vmem:[#allocation97_spill] sm:$0xff] }
 0x48f   :  { %2055 = vmatpush1.msra.mxu1 %v6420_v61  ;;  %2150 = vmatprep.subr.mxu0 %v8299_v5  ;;  %8304 = vst [vmem:[#allocation85_spill] sm:$0xff] %v6432_v54  ;;  %v8305_v26 = vld [vmem:[#allocation16_spill] sm:$0xff]  ;;  %v6436_v61 = vld [vmem:[#allocation2 + $0x140] sm:$0xff] }
 0x490   :  { %2056 = vmatprep.subr.mxu1 %v6424_v0  ;;  %2151 = vmatpush1.msra.mxu0 %v8301_v9  ;;  %8306 = vst [vmem:[#allocation87_spill] sm:$0xff] %v6436_v61  ;;  %v8307_v5 = vld [vmem:[#allocation15_spill] sm:$0xff]  ;;  %v6440_v0 = vld [vmem:[#allocation2 + $0x118] sm:$0xff] }
 0x491   :  { %2057 = vmatpush1.msra.mxu1 %v6428_v7  ;;  %2152 = vmatprep.subr.mxu0 %v8303_v13  ;;  %8308 = vst [vmem:[#allocation88_spill] sm:$0xff] %v6440_v0  ;;  %v8309_v9 = vld [vmem:[#allocation18_spill] sm:$0xff]  ;;  %v6444_v7 = vld [vmem:[#allocation2 + $0x110] sm:$0xff] }
 0x492   :  { %2058 = vmatprep.subr.mxu1 %v6432_v54  ;;  %2153 = vmatpush1.msra.mxu0 %v8305_v26  ;;  %8310 = vst [vmem:[#allocation90_spill] sm:$0xff] %v6444_v7  ;;  %v8311_v13 = vld [vmem:[#allocation17_spill] sm:$0xff]  ;;  %v6448_v54 = vld [vmem:[#allocation2 + $0xe8] sm:$0xff] }
 0x493   :  { %2059 = vmatpush1.msra.mxu1 %v6436_v61  ;;  %2154 = vmatprep.subr.mxu0 %v8307_v5  ;;  %8312 = vst [vmem:[#allocation14_spill] sm:$0xff] %v6448_v54  ;;  %v8313_v26 = vld [vmem:[#allocation20_spill] sm:$0xff]  ;;  %v6452_v61 = vld [vmem:[#allocation2 + $0xe0] sm:$0xff] }
 0x494   :  { %2060 = vmatprep.subr.mxu1 %v6440_v0  ;;  %2155 = vmatpush1.msra.mxu0 %v8309_v9  ;;  %8314 = vst [vmem:[#allocation95_spill] sm:$0xff] %v6452_v61  ;;  %v8315_v5 = vld [vmem:[#allocation19_spill] sm:$0xff]  ;;  %v6456_v0 = vld [vmem:[#allocation2 + $0xb8] sm:$0xff] }
 0x495   :  { %2061 = vmatpush1.msra.mxu1 %v6444_v7  ;;  %2156 = vmatprep.subr.mxu0 %v8311_v13  ;;  %8316 = vst [vmem:[#allocation86_spill] sm:$0xff] %v6456_v0  ;;  %v8317_v9 = vld [vmem:[#allocation22_spill] sm:$0xff]  ;;  %v6460_v7 = vld [vmem:[#allocation2 + $0xb0] sm:$0xff] }
 0x496   :  { %2062 = vmatprep.subr.mxu1 %v6448_v54  ;;  %2157 = vmatpush1.msra.mxu0 %v8313_v26  ;;  %8318 = vst [vmem:[#allocation47_spill] sm:$0xff] %v6460_v7  ;;  %v8319_v13 = vld [vmem:[#allocation21_spill] sm:$0xff]  ;;  %v6464_v54 = vld [vmem:[#allocation2 + $0x88] sm:$0xff] }
 0x497   :  { %2063 = vmatpush1.msra.mxu1 %v6452_v61  ;;  %2158 = vmatprep.subr.mxu0 %v8315_v5  ;;  %8320 = vst [vmem:[#allocation50_spill] sm:$0xff] %v6464_v54  ;;  %v8321_v26 = vld [vmem:[#allocation24_spill] sm:$0xff]  ;;  %v6468_v61 = vld [vmem:[#allocation2 + $0x80] sm:$0xff] }
 0x498   :  { %2064 = vmatprep.subr.mxu1 %v6456_v0  ;;  %2159 = vmatpush1.msra.mxu0 %v8317_v9  ;;  %8322 = vst [vmem:[#allocation49_spill] sm:$0xff] %v6468_v61  ;;  %v8323_v5 = vld [vmem:[#allocation23_spill] sm:$0xff]  ;;  %v6472_v0 = vld [vmem:[#allocation2 + $0x58] sm:$0xff] }
 0x499   :  { %2065 = vmatpush1.msra.mxu1 %v6460_v7  ;;  %2160 = vmatprep.subr.mxu0 %v8319_v13  ;;  %8324 = vst [vmem:[#allocation52_spill] sm:$0xff] %v6472_v0  ;;  %v8325_v9 = vld [vmem:[#allocation26_spill] sm:$0xff]  ;;  %v6476_v7 = vld [vmem:[#allocation2 + $0x50] sm:$0xff] }
 0x49a   :  { %2066 = vmatprep.subr.mxu1 %v6464_v54  ;;  %2161 = vmatpush1.msra.mxu0 %v8321_v26  ;;  %8326 = vst [vmem:[#allocation51_spill] sm:$0xff] %v6476_v7  ;;  %v8327_v13 = vld [vmem:[#allocation25_spill] sm:$0xff]  ;;  %v6480_v54 = vld [vmem:[#allocation2 + $0x28] sm:$0xff] }
 0x49b   :  { %2067 = vmatpush1.msra.mxu1 %v6468_v61  ;;  %2162 = vmatprep.subr.mxu0 %v8323_v5  ;;  %8328 = vst [vmem:[#allocation54_spill] sm:$0xff] %v6480_v54  ;;  %v8329_v26 = vld [vmem:[#allocation28_spill] sm:$0xff]  ;;  %v6484_v61 = vld [vmem:[#allocation2 + $0x20] sm:$0xff] }
 0x49c   :  { %2068 = vmatprep.subr.mxu1 %v6472_v0  ;;  %2163 = vmatpush1.msra.mxu0 %v8325_v9  ;;  %8330 = vst [vmem:[#allocation53_spill] sm:$0xff] %v6484_v61  ;;  %v8331_v5 = vld [vmem:[#allocation27_spill] sm:$0xff]  ;;  %v8332_v9 = vld [vmem:[#allocation30_spill] sm:$0xff] }
 0x49d   :  { %2069 = vmatpush1.msra.mxu1 %v6476_v7  ;;  %2164 = vmatprep.subr.mxu0 %v8327_v13  ;;  %v8333_v7 = vld [vmem:[#allocation29_spill] sm:$0xff]  ;;  %v8334_v13 = vld [vmem:[#allocation32_spill] sm:$0xff] }
 0x49e   :  { %2070 = vmatprep.subr.mxu1 %v6480_v54  ;;  %2165 = vmatpush1.msra.mxu0 %v8329_v26  ;;  %v8335_v26 = vld [vmem:[#allocation31_spill] sm:$0xff] }
 0x49f   :  { %2071 = vmatpush1.msra.mxu1 %v6484_v61  ;;  %2166 = vmatprep.subr.mxu0 %v8331_v5  ;;  %v8336_v5 = vld [vmem:[#allocation34_spill] sm:$0xff] }
 0x4a0   :  { %2105 = vmatmul.mubr.f32.vlgmr.msra.gmra.mxu1 %v6348_v37  ;;  %4164 = vmatprep.subr.mxu1 %v7998_v33  ;;  %v8340_v61 = vld [vmem:[#allocation38_spill] sm:$0xff] }
 0x4a1   :  { %4165 = vmatpush3.msra.mxu1 %v8332_v9  ;;  %2167 = vmatpush1.msra.mxu0 %v8333_v7  ;;  %v8337_v9 = vld [vmem:[#allocation33_spill] sm:$0xff]  ;;  %v8338_v7 = vld [vmem:[#allocation36_spill] sm:$0xff] }
 0x4a2   :  { %4166 = vmatprep.subr.mxu1 %v7998_v33  ;;  %2200 = vmatprep.mubr.f32.mxu0 %v7998_v33 }
 0x4a3   :  { %4167 = vmatpush3.msra.mxu1 %v8334_v13  ;;  %4196 = vmatprep.mubr.msk.f32.mxu1 %vm4903_vm1, %v7998_v33  ;;  %v8339_v13 = vld [vmem:[#allocation35_spill] sm:$0xff] }
 0x4a4   :  { %4168 = vmatprep.subr.mxu1 %v7998_v33  ;;  %2299 = vmatprep.subr.mxu0 %v8335_v26  ;;  %v8341_v26 = vld [vmem:[#allocation37_spill] sm:$0xff] }
 0x4a5   :  { %4169 = vmatpush3.msra.mxu1 %v8336_v5  ;;  %v8342_v5 = vld [vmem:[#allocation40_spill] sm:$0xff] }
 0x4a6   :  { %4170 = vmatprep.subr.mxu1 %v7998_v33 }
 0x4a7   :  { %4171 = vmatpush3.msra.mxu1 %v8337_v9  ;;  %v8343_v9 = vld [vmem:[#allocation39_spill] sm:$0xff] }
 0x4a8   :  { %4172 = vmatprep.subr.mxu1 %v7998_v33 }
 0x4a9   :  { %4173 = vmatpush3.msra.mxu1 %v8338_v7  ;;  %v8344_v7 = vld [vmem:[#allocation42_spill] sm:$0xff] }
 0x4aa   :  { %4174 = vmatprep.subr.mxu1 %v7998_v33 }
 0x4ab   :  { %4175 = vmatpush3.msra.mxu1 %v8339_v13  ;;  %v8345_v13 = vld [vmem:[#allocation41_spill] sm:$0xff] }
 0x4ac   :  { %4176 = vmatprep.subr.mxu1 %v7998_v33 }
 0x4ad   :  { %4177 = vmatpush3.msra.mxu1 %v8340_v61  ;;  %v8346_v61 = vld [vmem:[#allocation44_spill] sm:$0xff] }
 0x4ae   :  { %4178 = vmatprep.subr.mxu1 %v7998_v33 }
 0x4af   :  { %4179 = vmatpush3.msra.mxu1 %v8341_v26  ;;  %v8347_v26 = vld [vmem:[#allocation43_spill] sm:$0xff] }
 0x4b0   :  { %4180 = vmatprep.subr.mxu1 %v7998_v33 }
 0x4b1   :  { %4181 = vmatpush3.msra.mxu1 %v8342_v5  ;;  %v8348_v5 = vld [vmem:[#allocation46_spill] sm:$0xff] }
 0x4b2   :  { %4182 = vmatprep.subr.mxu1 %v7998_v33 }
 0x4b3   :  { %4183 = vmatpush3.msra.mxu1 %v8343_v9  ;;  %v8349_v9 = vld [vmem:[#allocation45_spill] sm:$0xff] }
 0x4b4   :  { %4184 = vmatprep.subr.mxu1 %v7998_v33 }
 0x4b5   :  { %4185 = vmatpush3.msra.mxu1 %v8344_v7  ;;  %v8350_v7 = vld [vmem:[#allocation48_spill] sm:$0xff] }
 0x4b6   :  { %4186 = vmatprep.subr.mxu1 %v7998_v33 }
 0x4b7   :  { %4187 = vmatpush3.msra.mxu1 %v8345_v13 }
 0x4b8   :  { %4188 = vmatprep.subr.mxu1 %v7998_v33 }
 0x4b9   :  { %4189 = vmatpush3.msra.mxu1 %v8346_v61 }
 0x4ba   :  { %4190 = vmatprep.subr.mxu1 %v7998_v33 }
 0x4bb   :  { %4191 = vmatpush3.msra.mxu1 %v8347_v26 }
 0x4bc   :  { %4192 = vmatprep.subr.mxu1 %v7998_v33 }
 0x4bd   :  { %4193 = vmatpush3.msra.mxu1 %v8348_v5 }
 0x4be   :  { %4194 = vmatprep.subr.mxu1 %v7998_v33 }
 0x4bf   :  { %4195 = vmatpush3.msra.mxu1 %v8349_v9 }
 0x4c0   :  { %2370 = vmatprep.subr.mxu1 %v8350_v7 }
 0x51e   :  { %v1872_v54 = vpop.f32.mrf.mxu0  ;;  %v1801_v0 = vpop.f32.mrf.mxu1 }
 0x520   :  { %v4163_v13 = vpop.f32.mrf.mxu0  ;;  %v1803_v47 = vpop.f32.mrf.mxu1 }
 0x53f   :  { %v1964_v53 = vpop.f32.mrf.mxu1  ;;  %v2035_v61 = vpop.f32.mrf.mxu0 }
 0x540   :  { %v2111_v26 = vadd.f32 %v1964_v53, %v5657_v12 }
 0x541   :  { %v1966_v2 = vpop.f32.mrf.mxu1  ;;  %v2037_v63 = vpop.f32.mrf.mxu0 }
 0x542   :  { %v2114_v5 = vadd.f32 %v2111_v26, %v1801_v0  ;;  %v2277_v35 = vadd.f32 %v2037_v63, %v230_v4  ;;  %v2112_v9 = vadd.f32 %v1966_v2, %v5661_v18  ;;  %v232_v0 = vadd.f32 %v8352_v38, %v8034_v24 }
 0x544   :  { %v3820_v19 = vmul.f32 -1.442695, %v2114_v5  ;;  %v3822_v11 = vmul.f32 -1.442695, %v2277_v35  ;;  %v2115_v7 = vadd.f32 %v2112_v9, %v1803_v47  ;;  %v8353_v5 = vld [vmem:[#allocation92_spill] sm:$0xff] }
 0x545   :  { %v339_v9 = vadd.f32 %v8353_v5, %v5438_v40  ;;  %v8388_v5 = vld [vmem:[#allocation124_spill] sm:$0xff] }
 0x546   :  { %4421 = vpow2.f32 %v3820_v19  ;;  %v3821_v13 = vmul.f32 -1.442695, %v2115_v7  ;;  %v6536_v19 = vld [vmem:[%s7460_s7] ss:$0 sm:$0xff] }
 0x547   :  { %4423 = vpow2.f32 %v3822_v11  ;;  %v2128_v47 = vadd.f32 %v6536_v19, %v1872_v54 }
 0x548   :  { %4425 = vpow2.f32 %v3821_v13 }
 0x553   :  { %v4422_v27 = vpop.eup %4421 }
 0x554   :  { %v4424_v25 = vpop.eup %4423  ;;  %v2122_v50 = vadd.f32 1.0, %v4422_v27 }
 0x555   :  { %v2285_v3 = vadd.f32 1.0, %v4424_v25  ;;  %v4426_v53 = vpop.eup %4425  ;;  %v2113_v25 = vadd.f32 %v2035_v61, %v5674_v52 }
 0x556   :  { %4427 = vrcp.f32 %v2122_v50  ;;  %v2123_v63 = vadd.f32 1.0, %v4426_v53 }
 0x557   :  { %4429 = vrcp.f32 %v2285_v3 }
 0x558   :  { %4431 = vrcp.f32 %v2123_v63  ;;  %v8377_v63 = vld [vmem:[#allocation113_spill] sm:$0xff] }
 0x560   :  { %v2106_v4 = vpop.f32.mrf.mxu1 }
 0x561   :  { %v2278_v26 = vadd.f32 %v2106_v4, %v232_v0 }
 0x562   :  { %v2108_v11 = vpop.f32.mrf.mxu1 }
 0x563   :  { %v4428_v35 = vpop.eup %4427  ;;  %v3823_v27 = vmul.f32 -1.442695, %v2278_v26  ;;  %v2291_v50 = vadd.f32 %v6310_v39, %v2108_v11 }
 0x564   :  { %v4430_v3 = vpop.eup %4429  ;;  %v2129_v2 = vmul.f32 %v4428_v35, %v2128_v47  ;;  %v8380_v47 = vld [vmem:[#allocation116_spill] sm:$0xff]  ;;  %v8381_v35 = vld [vmem:[#allocation117_spill] sm:$0xff] }
 0x565   :  { %4433 = vpow2.f32 %v3823_v27  ;;  %v2292_v7 = vmul.f32 %v4430_v3, %v2291_v50  ;;  %v4432_v38 = vpop.eup %4431  ;;  %v6624_v27 = vld [vmem:[#allocation5 + $0x168] sm:$0xff]  ;;  %v8386_v50 = vld [vmem:[#allocation122_spill] sm:$0xff] }
 0x566   :  { %v2130_v13 = vadd.f32 %v2129_v2, %v2113_v25  ;;  %v2132_v4 = vsub.f32 1.0, %v4432_v38  ;;  %v2134_v39 = vmul.f32 %v4432_v38, %v6317_v32  ;;  %v8364_v32 = vld [vmem:[#allocation70_spill] sm:$0xff]  ;;  %v8387_v25 = vld [vmem:[#allocation123_spill] sm:$0xff]  ;;  %v6632_v2 = vld [vmem:[#allocation5 + $0x150] sm:$0xff] }
 0x567   :  { %v2293_v53 = vadd.f32 %v2292_v7, %v339_v9  ;;  %v6628_v3 = vld [vmem:[#allocation5 + $0x158] sm:$0xff]  ;;  %v6636_v9 = vld [vmem:[#allocation5 + $0x140] sm:$0xff]  ;;  %v8389_v7 = vld [vmem:[#allocation125_spill] sm:$0xff] }
 0x568   :  { %4435 = vtanh.f32 %v2130_v13  ;;  %v6640_v13 = vld [vmem:[#allocation5 + $0x138] sm:$0xff]  ;;  %v6644_v38 = vld [vmem:[#allocation5 + $0x128] sm:$0xff] }
 0x572   :  { %v4434_v54 = vpop.eup %4433 }
 0x573   :  { %v2286_v0 = vadd.f32 1.0, %v4434_v54  ;;  %v8391_v54 = vld [vmem:[#allocation127_spill] sm:$0xff] }
 0x575   :  { %v4436_v26 = vpop.eup %4435  ;;  %4437 = vrcp.f32 %v2286_v0  ;;  %v6648_v0 = vld [vmem:[#allocation5 + $0x120] sm:$0xff] }
 0x576   :  { %v2133_v11 = vmul.f32 %v4436_v26, %v2132_v4  ;;  %4439 = vtanh.f32 %v2293_v53  ;;  %v8390_v53 = vld [vmem:[#allocation126_spill] sm:$0xff]  ;;  %v8392_v4 = vld [vmem:[#allocation128_spill] sm:$0xff]  ;;  %v6652_v26 = vld [vmem:[#allocation5 + $0x110] sm:$0xff] }
 0x578   :  { %v6544_v61 = vadd.f32 %v2134_v39, %v2133_v11  ;;  %v8362_v39 = vld [vmem:[#allocation68_spill] sm:$0xff]  ;;  %v8393_v11 = vld [vmem:[#allocation129_spill] sm:$0xff] }
 0x57a   :  { %2201 = vmatmul.mubr.f32.vlgmr.msra.gmra.mxu0 %v6544_v61  ;;  %4197 = vmatmul.mubr.f32.vlgmr.msra.gmra.mxu1 %v6544_v61 }
 0x57b   :  { %2300 = vmatpush1.msra.mxu0 %v5974_v48  ;;  %2371 = vmatpush1.msra.mxu1 %v5977_v46 }
 0x57c   :  { %2301 = vmatprep.subr.mxu0 %v5980_v56  ;;  %2372 = vmatprep.subr.mxu1 %v5983_v10 }
 0x57d   :  { %2302 = vmatpush1.msra.mxu0 %v5986_v44  ;;  %2373 = vmatpush1.msra.mxu1 %v5989_v21 }
 0x57e   :  { %2303 = vmatprep.subr.mxu0 %v5992_v28  ;;  %2374 = vmatprep.subr.mxu1 %v5995_v62  ;;  %v8354_v28 = vld [vmem:[#allocation60_spill] sm:$0xff]  ;;  %v8355_v62 = vld [vmem:[#allocation59_spill] sm:$0xff] }
 0x57f   :  { %2304 = vmatpush1.msra.mxu0 %v5998_v58  ;;  %2375 = vmatpush1.msra.mxu1 %v6001_v43  ;;  %v8356_v58 = vld [vmem:[#allocation62_spill] sm:$0xff]  ;;  %v8357_v43 = vld [vmem:[#allocation61_spill] sm:$0xff] }
 0x580   :  { %2305 = vmatprep.subr.mxu0 %v6004_v41  ;;  %2376 = vmatprep.subr.mxu1 %v6007_v60  ;;  %v8358_v41 = vld [vmem:[#allocation64_spill] sm:$0xff]  ;;  %v8359_v60 = vld [vmem:[#allocation63_spill] sm:$0xff] }
 0x581   :  { %2306 = vmatpush1.msra.mxu0 %v8240_v59  ;;  %2377 = vmatpush1.msra.mxu1 %v8241_v14  ;;  %v8365_v59 = vld [vmem:[#allocation69_spill] sm:$0xff]  ;;  %v8366_v14 = vld [vmem:[#allocation72_spill] sm:$0xff] }
 0x582   :  { %v4438_v48 = vpop.eup %4437  ;;  %2307 = vmatprep.subr.mxu0 %v8242_v20  ;;  %2378 = vmatprep.subr.mxu1 %v8243_v6  ;;  %v8367_v20 = vld [vmem:[#allocation71_spill] sm:$0xff]  ;;  %v8368_v6 = vld [vmem:[#allocation74_spill] sm:$0xff] }
 0x583   :  { %2308 = vmatpush1.msra.mxu0 %v8244_v17  ;;  %2379 = vmatpush1.msra.mxu1 %v8245_v15  ;;  %v2295_v46 = vsub.f32 1.0, %v4438_v48  ;;  %v4440_v56 = vpop.eup %4439  ;;  %v2297_v44 = vmul.f32 %v4438_v48, %v6348_v37  ;;  %v8369_v17 = vld [vmem:[#allocation73_spill] sm:$0xff]  ;;  %v8370_v15 = vld [vmem:[#allocation75_spill] sm:$0xff]  ;;  %v6656_v48 = vld [vmem:[#allocation5 + $0x108] sm:$0xff] }
 0x584   :  { %2309 = vmatprep.subr.mxu0 %v8246_v36  ;;  %2380 = vmatprep.subr.mxu1 %v8247_v8  ;;  %v8371_v36 = vld [vmem:[#allocation76_spill] sm:$0xff]  ;;  %v8376_v37 = vld [vmem:[#allocation109_spill] sm:$0xff] }
 0x585   :  { %2310 = vmatpush1.msra.mxu0 %v8248_v55  ;;  %2381 = vmatpush1.msra.mxu1 %v8249_v29  ;;  %v2296_v10 = vmul.f32 %v4440_v56, %v2295_v46  ;;  %v8372_v8 = vld [vmem:[#allocation12_spill] sm:$0xff]  ;;  %v8373_v55 = vld [vmem:[#allocation105_spill] sm:$0xff]  ;;  %v8374_v29 = vld [vmem:[#allocation106_spill] sm:$0xff] }
 0x586   :  { %2311 = vmatprep.subr.mxu0 %v6041_v45  ;;  %2382 = vmatprep.subr.mxu1 %v6044_v31  ;;  %v8360_v45 = vld [vmem:[#allocation66_spill] sm:$0xff]  ;;  %v8361_v31 = vld [vmem:[#allocation65_spill] sm:$0xff] }
 0x587   :  { %2312 = vmatpush1.msra.mxu0 %v8250_v34  ;;  %2383 = vmatpush1.msra.mxu1 %v6050_v51  ;;  %v6575_v21 = vadd.f32 %v2297_v44, %v2296_v10  ;;  %v8363_v51 = vld [vmem:[#allocation67_spill] sm:$0xff]  ;;  %v8394_v46 = vld [vmem:[#allocation130_spill] sm:$0xff]  ;;  %v6664_v44 = vld [vmem:[#allocation5 + $0xf0] sm:$0xff] }
 0x588   :  { %2313 = vmatprep.subr.mxu0 %v8354_v28  ;;  %2384 = vmatprep.subr.mxu1 %v8355_v62  ;;  %v8375_v34 = vld [vmem:[#allocation107_spill] sm:$0xff]  ;;  %v6660_v56 = vld [vmem:[#allocation5 + $0xf8] sm:$0xff]  ;;  %v8396_v28 = vld [vmem:[#allocation132_spill] sm:$0xff] }
 0x589   :  { %2314 = vmatpush1.msra.mxu0 %v8356_v58  ;;  %2385 = vmatpush1.msra.mxu1 %v8357_v43  ;;  %v8395_v10 = vld [vmem:[#allocation131_spill] sm:$0xff]  ;;  %v8397_v58 = vld [vmem:[#allocation133_spill] sm:$0xff]  ;;  %v6672_v43 = vld [vmem:[#allocation5 + $0xd8] sm:$0xff] }
 0x58a   :  { %2315 = vmatprep.subr.mxu0 %v8358_v41  ;;  %2386 = vmatprep.subr.mxu1 %v8359_v60  ;;  %v6668_v62 = vld [vmem:[#allocation5 + $0xe0] sm:$0xff]  ;;  %8398 = vst [vmem:[#allocation56_spill] sm:$0xff] %v6672_v43  ;;  %v8399_v41 = vld [vmem:[#allocation82_spill] sm:$0xff]  ;;  %v6676_v60 = vld [vmem:[#allocation5 + $0xc8] sm:$0xff] }
 0x58b   :  { %2316 = vmatpush1.msra.mxu0 %v8360_v45  ;;  %2387 = vmatpush1.msra.mxu1 %v8361_v31  ;;  %8400 = vst [vmem:[#allocation55_spill] sm:$0xff] %v6676_v60  ;;  %v8401_v45 = vld [vmem:[#allocation83_spill] sm:$0xff] }
 0x58c   :  { %2317 = vmatprep.subr.mxu0 %v8362_v39  ;;  %2388 = vmatprep.subr.mxu1 %v8363_v51  ;;  %v6680_v31 = vld [vmem:[#allocation5 + $0xc0] sm:$0xff]  ;;  %v8403_v39 = vld [vmem:[#allocation84_spill] sm:$0xff]  ;;  %v6684_v51 = vld [vmem:[#allocation5 + $0xb0] sm:$0xff] }
 0x58d   :  { %2318 = vmatpush1.msra.mxu0 %v8364_v32  ;;  %2389 = vmatpush1.msra.mxu1 %v8365_v59  ;;  %8402 = vst [vmem:[#allocation58_spill] sm:$0xff] %v6680_v31  ;;  %8404 = vst [vmem:[#allocation57_spill] sm:$0xff] %v6684_v51  ;;  %v8405_v32 = vld [vmem:[#allocation85_spill] sm:$0xff]  ;;  %v6688_v59 = vld [vmem:[#allocation5 + $0xa8] sm:$0xff] }
 0x58e   :  { %2319 = vmatprep.subr.mxu0 %v8366_v14  ;;  %2390 = vmatprep.subr.mxu1 %v8367_v20  ;;  %8406 = vst [vmem:[#allocation89_spill] sm:$0xff] %v6688_v59  ;;  %v8407_v14 = vld [vmem:[#allocation87_spill] sm:$0xff]  ;;  %v6692_v20 = vld [vmem:[#allocation5 + $0x98] sm:$0xff] }
 0x58f   :  { %2320 = vmatpush1.msra.mxu0 %v8368_v6  ;;  %2391 = vmatpush1.msra.mxu1 %v8369_v17  ;;  %8408 = vst [vmem:[#allocation104_spill] sm:$0xff] %v6692_v20  ;;  %v8409_v6 = vld [vmem:[#allocation88_spill] sm:$0xff]  ;;  %v6696_v17 = vld [vmem:[#allocation5 + $0x90] sm:$0xff] }
 0x590   :  { %2321 = vmatprep.subr.mxu0 %v8370_v15  ;;  %2392 = vmatprep.subr.mxu1 %v8371_v36  ;;  %8410 = vst [vmem:[#allocation108_spill] sm:$0xff] %v6696_v17  ;;  %v8411_v15 = vld [vmem:[#allocation90_spill] sm:$0xff]  ;;  %v6700_v36 = vld [vmem:[#allocation5 + $0x80] sm:$0xff] }
 0x591   :  { %2322 = vmatpush1.msra.mxu0 %v8372_v8  ;;  %2393 = vmatpush1.msra.mxu1 %v8269_v49  ;;  %v8378_v49 = vld [vmem:[#allocation114_spill] sm:$0xff]  ;;  %8412 = vst [vmem:[#allocation110_spill] sm:$0xff] %v6700_v36 }
 0x592   :  { %2323 = vmatprep.subr.mxu0 %v8270_v30  ;;  %2394 = vmatprep.subr.mxu1 %v8373_v55  ;;  %v8379_v30 = vld [vmem:[#allocation115_spill] sm:$0xff]  ;;  %v8413_v8 = vld [vmem:[#allocation14_spill] sm:$0xff] }
 0x593   :  { %2324 = vmatpush1.msra.mxu0 %v8374_v29  ;;  %2395 = vmatpush1.msra.mxu1 %v8375_v34  ;;  %v6704_v55 = vld [vmem:[#allocation5 + $0x78] sm:$0xff]  ;;  %v8415_v29 = vld [vmem:[#allocation95_spill] sm:$0xff]  ;;  %v6708_v34 = vld [vmem:[#allocation5 + $0x68] sm:$0xff] }
 0x594   :  { %2325 = vmatprep.subr.mxu0 %v8274_v42  ;;  %2396 = vmatprep.subr.mxu1 %v8376_v37  ;;  %v8382_v42 = vld [vmem:[#allocation118_spill] sm:$0xff]  ;;  %8414 = vst [vmem:[#allocation111_spill] sm:$0xff] %v6704_v55  ;;  %8416 = vst [vmem:[#allocation112_spill] sm:$0xff] %v6708_v34 }
 0x595   :  { %2326 = vmatpush1.msra.mxu0 %v8276_v22  ;;  %2397 = vmatpush1.msra.mxu1 %v8277_v16  ;;  %v8383_v22 = vld [vmem:[#allocation119_spill] sm:$0xff]  ;;  %v6620_v16 = vld [vmem:[#allocation5 + $0x170] sm:$0xff]  ;;  %v8417_v37 = vld [vmem:[#allocation86_spill] sm:$0xff] }
 0x596   :  { %2327 = vmatprep.subr.mxu0 %v8278_v23  ;;  %2398 = vmatprep.subr.mxu1 %v8377_v63  ;;  %v8385_v23 = vld [vmem:[#allocation121_spill] sm:$0xff]  ;;  %v6712_v63 = vld [vmem:[#allocation5 + $0x60] sm:$0xff] }
 0x597   :  { %2328 = vmatpush1.msra.mxu0 %v6145_v57  ;;  %2399 = vmatpush1.msra.mxu1 %v8378_v49  ;;  %v8384_v57 = vld [vmem:[#allocation120_spill] sm:$0xff]  ;;  %8418 = vst [vmem:[#allocation77_spill] sm:$0xff] %v6712_v63  ;;  %v8419_v49 = vld [vmem:[#allocation47_spill] sm:$0xff] }
 0x598   :  { %2329 = vmatprep.subr.mxu0 %v8379_v30  ;;  %2400 = vmatprep.subr.mxu1 %v8380_v47  ;;  %v6716_v30 = vld [vmem:[#allocation5 + $0x50] sm:$0xff]  ;;  %v8421_v47 = vld [vmem:[#allocation50_spill] sm:$0xff] }
 0x599   :  { %2330 = vmatpush1.msra.mxu0 %v8381_v35  ;;  %2363 = vmatprep.mubr.f32.mxu0 %v7998_v33  ;;  %8420 = vst [vmem:[#allocation78_spill] sm:$0xff] %v6716_v30  ;;  %v6720_v35 = vld [vmem:[#allocation5 + $0x48] sm:$0xff] }
 0x59a   :  { %2401 = vmatpush1.msra.mxu1 %v8382_v42  ;;  %2434 = vmatprep.mubr.f32.mxu1 %v7998_v33  ;;  %8422 = vst [vmem:[#allocation79_spill] sm:$0xff] %v6720_v35  ;;  %v8423_v42 = vld [vmem:[#allocation49_spill] sm:$0xff] }
 0x59b   :  { %2364 = vmatmul.mubr.f32.vlgmr.msra.gmra.mxu0 %v6575_v21  ;;  %2435 = vmatmul.mubr.f32.vlgmr.msra.gmra.mxu1 %v6575_v21 }
 0x59c   :  { %2441 = vmatprep.subr.mxu0 %v8383_v22  ;;  %2505 = vmatprep.mubr.f32.mxu0 %v7998_v33  ;;  %v6724_v22 = vld [vmem:[#allocation5 + $0x38] sm:$0xff] }
 0x59d   :  { %2442 = vmatpush1.msra.mxu0 %v8384_v57  ;;  %2537 = vmatprep.subr.mxu1 %v6620_v16  ;;  %8424 = vst [vmem:[#allocation80_spill] sm:$0xff] %v6724_v22  ;;  %v8425_v57 = vld [vmem:[#allocation52_spill] sm:$0xff] }
 0x59e   :  { %2443 = vmatprep.subr.mxu0 %v8385_v23  ;;  %2538 = vmatpush1.msra.mxu1 %v6624_v27  ;;  %v6728_v23 = vld [vmem:[#allocation5 + $0x30] sm:$0xff] }
 0x59f   :  { %2444 = vmatpush1.msra.mxu0 %v8386_v50  ;;  %2539 = vmatprep.subr.mxu1 %v6628_v3  ;;  %8426 = vst [vmem:[#allocation13_spill] sm:$0xff] %v6728_v23  ;;  %v8427_v50 = vld [vmem:[#allocation51_spill] sm:$0xff] }
 0x5a0   :  { %2445 = vmatprep.subr.mxu0 %v8387_v25  ;;  %2540 = vmatpush1.msra.mxu1 %v6632_v2  ;;  %v6732_v25 = vld [vmem:[#allocation5 + $0x20] sm:$0xff] }
 0x5a1   :  { %2446 = vmatpush1.msra.mxu0 %v8388_v5  ;;  %2541 = vmatprep.subr.mxu1 %v6636_v9  ;;  %8428 = vst [vmem:[#allocation16_spill] sm:$0xff] %v6732_v25  ;;  %v8429_v5 = vld [vmem:[#allocation54_spill] sm:$0xff] }
 0x5a2   :  { %2447 = vmatprep.subr.mxu0 %v8389_v7  ;;  %2542 = vmatpush1.msra.mxu1 %v6640_v13  ;;  %v6736_v7 = vld [vmem:[#allocation5 + $0x18] sm:$0xff] }
 0x5a3   :  { %2448 = vmatpush1.msra.mxu0 %v8390_v53  ;;  %2543 = vmatprep.subr.mxu1 %v6644_v38  ;;  %8430 = vst [vmem:[#allocation15_spill] sm:$0xff] %v6736_v7  ;;  %v8431_v53 = vld [vmem:[#allocation53_spill] sm:$0xff] }
 0x5a4   :  { %2449 = vmatprep.subr.mxu0 %v8391_v54  ;;  %2544 = vmatpush1.msra.mxu1 %v6648_v0  ;;  %v6740_v54 = vld [vmem:[#allocation5 + $0x8] sm:$0xff] }
 0x5a5   :  { %2450 = vmatpush1.msra.mxu0 %v8392_v4  ;;  %2545 = vmatprep.subr.mxu1 %v6652_v26  ;;  %8432 = vst [vmem:[#allocation18_spill] sm:$0xff] %v6740_v54  ;;  %v6745_v4 = vld [vmem:[#allocation5 + $0x178] sm:$0xff] }
 0x5a6   :  { %2451 = vmatprep.subr.mxu0 %v8393_v11  ;;  %2546 = vmatpush1.msra.mxu1 %v6656_v48  ;;  %8433 = vst [vmem:[#allocation17_spill] sm:$0xff] %v6745_v4  ;;  %v6748_v11 = vld [vmem:[#allocation5] sm:$0xff] }
 0x5a7   :  { %2452 = vmatpush1.msra.mxu0 %v8394_v46  ;;  %2547 = vmatprep.subr.mxu1 %v6660_v56  ;;  %8434 = vst [vmem:[#allocation20_spill] sm:$0xff] %v6748_v11  ;;  %v6753_v46 = vld [vmem:[#allocation5 + $0x160] sm:$0xff] }
 0x5a8   :  { %2453 = vmatprep.subr.mxu0 %v8395_v10  ;;  %2548 = vmatpush1.msra.mxu1 %v6664_v44  ;;  %8435 = vst [vmem:[#allocation19_spill] sm:$0xff] %v6753_v46  ;;  %v6759_v10 = vld [vmem:[#allocation2 + $0x2d8] sm:$0xff] }
 0x5a9   :  { %2454 = vmatpush1.msra.mxu0 %v8396_v28  ;;  %2549 = vmatprep.subr.mxu1 %v6668_v62  ;;  %8436 = vst [vmem:[#allocation22_spill] sm:$0xff] %v6759_v10  ;;  %v6762_v28 = vld [vmem:[#allocation5 + $0x148] sm:$0xff] }
 0x5aa   :  { %2455 = vmatprep.subr.mxu0 %v8397_v58  ;;  %2550 = vmatpush1.msra.mxu1 %v6672_v43  ;;  %8437 = vst [vmem:[#allocation21_spill] sm:$0xff] %v6762_v28  ;;  %v6766_v58 = vld [vmem:[#allocation5 + $0x130] sm:$0xff] }
 0x5ab   :  { %2456 = vmatpush1.msra.mxu0 %v8399_v41  ;;  %2551 = vmatprep.subr.mxu1 %v6676_v60  ;;  %8438 = vst [vmem:[#allocation24_spill] sm:$0xff] %v6766_v58 }
 0x5ac   :  { %2457 = vmatprep.subr.mxu0 %v8401_v45  ;;  %2552 = vmatpush1.msra.mxu1 %v6680_v31 }
 0x5ad   :  { %2458 = vmatpush1.msra.mxu0 %v8403_v39  ;;  %2553 = vmatprep.subr.mxu1 %v6684_v51 }
 0x5ae   :  { %2459 = vmatprep.subr.mxu0 %v8405_v32  ;;  %2554 = vmatpush1.msra.mxu1 %v6688_v59 }
 0x5af   :  { %2460 = vmatpush1.msra.mxu0 %v8407_v14  ;;  %2555 = vmatprep.subr.mxu1 %v6692_v20 }
 0x5b0   :  { %2461 = vmatprep.subr.mxu0 %v8409_v6  ;;  %2556 = vmatpush1.msra.mxu1 %v6696_v17 }
 0x5b1   :  { %2462 = vmatpush1.msra.mxu0 %v8411_v15  ;;  %2557 = vmatprep.subr.mxu1 %v6700_v36 }
 0x5b2   :  { %2463 = vmatprep.subr.mxu0 %v8413_v8  ;;  %2558 = vmatpush1.msra.mxu1 %v6704_v55 }
 0x5b3   :  { %2464 = vmatpush1.msra.mxu0 %v8415_v29  ;;  %2559 = vmatprep.subr.mxu1 %v6708_v34 }
 0x5b4   :  { %2465 = vmatprep.subr.mxu0 %v8417_v37  ;;  %2560 = vmatpush1.msra.mxu1 %v6712_v63 }
 0x5b5   :  { %2466 = vmatpush1.msra.mxu0 %v8419_v49  ;;  %2561 = vmatprep.subr.mxu1 %v6716_v30 }
 0x5b6   :  { %2467 = vmatprep.subr.mxu0 %v8421_v47  ;;  %2562 = vmatpush1.msra.mxu1 %v6720_v35 }
 0x5b7   :  { %2468 = vmatpush1.msra.mxu0 %v8423_v42  ;;  %2563 = vmatprep.subr.mxu1 %v6724_v22 }
 0x5b8   :  { %2469 = vmatprep.subr.mxu0 %v8425_v57  ;;  %2564 = vmatpush1.msra.mxu1 %v6728_v23 }
 0x5b9   :  { %2470 = vmatpush1.msra.mxu0 %v8427_v50  ;;  %2565 = vmatprep.subr.mxu1 %v6732_v25 }
 0x5ba   :  { %2471 = vmatprep.subr.mxu0 %v8429_v5  ;;  %2566 = vmatpush1.msra.mxu1 %v6736_v7  ;;  %v8452_v5 = vld [vmem:[#allocation98_spill] sm:$0xff] }
 0x5bb   :  { %2472 = vmatpush1.msra.mxu0 %v8431_v53  ;;  %2567 = vmatprep.subr.mxu1 %v6740_v54  ;;  %v236_v25 = vadd.f32 %v8452_v5, %v8033_v1 }
 0x5bc   :  { %2506 = vmatmul.mubr.f32.vlgmr.msra.gmra.mxu0 %v6575_v21  ;;  %4199 = vmatprep.subr.mxu0 %v7998_v33 }
 0x5bd   :  { %4200 = vmatpush3.msra.mxu0 %v6745_v4  ;;  %2568 = vmatpush1.msra.mxu1 %v6748_v11  ;;  %v6774_v11 = vld [vmem:[#allocation5 + $0x100] sm:$0xff] }
 0x5be   :  { %4201 = vmatprep.subr.mxu0 %v7998_v33  ;;  %2601 = vmatprep.mubr.f32.mxu1 %v7998_v33  ;;  %8440 = vst [vmem:[#allocation26_spill] sm:$0xff] %v6774_v11 }
 0x5bf   :  { %4202 = vmatpush3.msra.mxu0 %v6753_v46  ;;  %4231 = vmatprep.mubr.msk.f32.mxu0 %vm4903_vm1, %v7998_v33  ;;  %v6770_v46 = vld [vmem:[#allocation5 + $0x118] sm:$0xff] }
 0x5c0   :  { %4203 = vmatprep.subr.mxu0 %v7998_v33  ;;  %2700 = vmatprep.subr.mxu1 %v6759_v10  ;;  %8439 = vst [vmem:[#allocation23_spill] sm:$0xff] %v6770_v46  ;;  %v6817_v10 = vld [vmem:[#allocation2 + $0x2e8] sm:$0xff] }
 0x5c1   :  { %4204 = vmatpush3.msra.mxu0 %v6762_v28  ;;  %v6778_v28 = vld [vmem:[#allocation5 + $0xe8] sm:$0xff]  ;;  %8451 = vst [vmem:[#allocation35_spill] sm:$0xff] %v6817_v10 }
 0x5c2   :  { %4205 = vmatprep.subr.mxu0 %v7998_v33  ;;  %8441 = vst [vmem:[#allocation25_spill] sm:$0xff] %v6778_v28 }
 0x5c3   :  { %4206 = vmatpush3.msra.mxu0 %v6766_v58  ;;  %v6782_v58 = vld [vmem:[#allocation5 + $0xd0] sm:$0xff] }
 0x5c4   :  { %4207 = vmatprep.subr.mxu0 %v7998_v33  ;;  %8442 = vst [vmem:[#allocation28_spill] sm:$0xff] %v6782_v58 }
 0x5c5   :  { %4208 = vmatpush3.msra.mxu0 %v6770_v46  ;;  %v6786_v46 = vld [vmem:[#allocation5 + $0xb8] sm:$0xff] }
 0x5c6   :  { %4209 = vmatprep.subr.mxu0 %v7998_v33  ;;  %8443 = vst [vmem:[#allocation27_spill] sm:$0xff] %v6786_v46 }
 0x5c7   :  { %4210 = vmatpush3.msra.mxu0 %v6774_v11  ;;  %v6790_v11 = vld [vmem:[#allocation5 + $0xa0] sm:$0xff] }
 0x5c8   :  { %4211 = vmatprep.subr.mxu0 %v7998_v33  ;;  %8444 = vst [vmem:[#allocation30_spill] sm:$0xff] %v6790_v11 }
 0x5c9   :  { %4212 = vmatpush3.msra.mxu0 %v6778_v28  ;;  %v6794_v28 = vld [vmem:[#allocation5 + $0x88] sm:$0xff] }
 0x5ca   :  { %4213 = vmatprep.subr.mxu0 %v7998_v33  ;;  %8445 = vst [vmem:[#allocation29_spill] sm:$0xff] %v6794_v28 }
 0x5cb   :  { %4214 = vmatpush3.msra.mxu0 %v6782_v58  ;;  %v6798_v58 = vld [vmem:[#allocation5 + $0x70] sm:$0xff] }
 0x5cc   :  { %4215 = vmatprep.subr.mxu0 %v7998_v33  ;;  %8446 = vst [vmem:[#allocation32_spill] sm:$0xff] %v6798_v58 }
 0x5cd   :  { %4216 = vmatpush3.msra.mxu0 %v6786_v46  ;;  %v6802_v46 = vld [vmem:[#allocation5 + $0x58] sm:$0xff] }
 0x5ce   :  { %4217 = vmatprep.subr.mxu0 %v7998_v33  ;;  %8447 = vst [vmem:[#allocation31_spill] sm:$0xff] %v6802_v46 }
 0x5cf   :  { %4218 = vmatpush3.msra.mxu0 %v6790_v11  ;;  %v6806_v11 = vld [vmem:[#allocation5 + $0x40] sm:$0xff] }
 0x5d0   :  { %4219 = vmatprep.subr.mxu0 %v7998_v33  ;;  %8448 = vst [vmem:[#allocation34_spill] sm:$0xff] %v6806_v11 }
 0x5d1   :  { %4220 = vmatpush3.msra.mxu0 %v6794_v28  ;;  %v6810_v28 = vld [vmem:[#allocation5 + $0x28] sm:$0xff] }
 0x5d2   :  { %4221 = vmatprep.subr.mxu0 %v7998_v33  ;;  %8449 = vst [vmem:[#allocation33_spill] sm:$0xff] %v6810_v28 }
 0x5d3   :  { %4222 = vmatpush3.msra.mxu0 %v6798_v58  ;;  %v6814_v58 = vld [vmem:[#allocation5 + $0x10] sm:$0xff] }
 0x5d4   :  { %4223 = vmatprep.subr.mxu0 %v7998_v33  ;;  %8450 = vst [vmem:[#allocation36_spill] sm:$0xff] %v6814_v58 }
 0x5d5   :  { %4224 = vmatpush3.msra.mxu0 %v6802_v46 }
 0x5d6   :  { %4225 = vmatprep.subr.mxu0 %v7998_v33 }
 0x5d7   :  { %4226 = vmatpush3.msra.mxu0 %v6806_v11 }
 0x5d8   :  { %4227 = vmatprep.subr.mxu0 %v7998_v33 }
 0x5d9   :  { %4228 = vmatpush3.msra.mxu0 %v6810_v28 }
 0x5da   :  { %4229 = vmatprep.subr.mxu0 %v7998_v33 }
 0x5db   :  { %4230 = vmatpush3.msra.mxu0 %v6814_v58 }
 0x5dc   :  { %2771 = vmatprep.subr.mxu0 %v6817_v10 }
 0x63a   :  { %v2273_v46 = vpop.f32.mrf.mxu1  ;;  %v2202_v54 = vpop.f32.mrf.mxu0 }
 0x63c   :  { %v4198_v4 = vpop.f32.mrf.mxu1  ;;  %v2204_v11 = vpop.f32.mrf.mxu0 }
 0x65b   :  { %v2365_v53 = vpop.f32.mrf.mxu0  ;;  %v2436_v7 = vpop.f32.mrf.mxu1 }
 0x65c   :  { %v2512_v28 = vadd.f32 %v2365_v53, %v5657_v12  ;;  %v8453_v53 = vld [vmem:[#allocation99_spill] sm:$0xff] }
 0x65d   :  { %v2367_v50 = vpop.f32.mrf.mxu0  ;;  %v2438_v23 = vpop.f32.mrf.mxu1 }
 0x65e   :  { %v2515_v57 = vadd.f32 %v2512_v28, %v2202_v54  ;;  %v2678_v22 = vadd.f32 %v2438_v23, %v236_v25  ;;  %v2513_v42 = vadd.f32 %v2367_v50, %v5661_v18  ;;  %v238_v54 = vadd.f32 %v8453_v53, %v8034_v24 }
 0x660   :  { %v3824_v58 = vmul.f32 -1.442695, %v2515_v57  ;;  %v3826_v35 = vmul.f32 -1.442695, %v2678_v22  ;;  %v2516_v4 = vadd.f32 %v2513_v42, %v2204_v11  ;;  %v2529_v22 = vadd.f32 %v6536_v19, %v2273_v46  ;;  %v8454_v11 = vld [vmem:[#allocation81_spill] sm:$0xff] }
 0x662   :  { %4441 = vpow2.f32 %v3824_v58  ;;  %v3825_v10 = vmul.f32 -1.442695, %v2516_v4 }
 0x663   :  { %4443 = vpow2.f32 %v3826_v35 }
 0x664   :  { %4445 = vpow2.f32 %v3825_v10 }
 0x66f   :  { %v4442_v47 = vpop.eup %4441 }
 0x670   :  { %v4444_v30 = vpop.eup %4443  ;;  %v2523_v49 = vadd.f32 1.0, %v4442_v47  ;;  %v2514_v47 = vadd.f32 %v2436_v7, %v5674_v52 }
 0x671   :  { %v2686_v63 = vadd.f32 1.0, %v4444_v30  ;;  %v4446_v5 = vpop.eup %4445 }
 0x672   :  { %4447 = vrcp.f32 %v2523_v49  ;;  %v2524_v23 = vadd.f32 1.0, %v4446_v5 }
 0x673   :  { %4449 = vrcp.f32 %v2686_v63  ;;  %v8455_v63 = vld [vmem:[#allocation91_spill] sm:$0xff] }
 0x674   :  { %4451 = vrcp.f32 %v2524_v23  ;;  %v344_v49 = vadd.f32 %v8455_v63, %v5438_v40  ;;  %v6836_v23 = vld [vmem:[#allocation2 + $0x2d0] sm:$0xff]  ;;  %v6863_v63 = vld [vmem:[#allocation2 + $0x280] sm:$0xff] }
 0x67c   :  { %v2507_v57 = vpop.f32.mrf.mxu0 }
 0x67d   :  { %v2679_v25 = vadd.f32 %v2507_v57, %v238_v54 }
 0x67e   :  { %v2509_v50 = vpop.f32.mrf.mxu0 }
 0x67f   :  { %v4448_v35 = vpop.eup %4447  ;;  %v3827_v42 = vmul.f32 -1.442695, %v2679_v25  ;;  %v2692_v10 = vadd.f32 %v8454_v11, %v2509_v50 }
 0x680   :  { %v4450_v28 = vpop.eup %4449  ;;  %v2530_v30 = vmul.f32 %v4448_v35, %v2529_v22  ;;  %v6839_v22 = vld [vmem:[#allocation2 + $0x2e0] sm:$0xff]  ;;  %v6842_v35 = vld [vmem:[#allocation2 + $0x2a8] sm:$0xff] }
 0x681   :  { %4453 = vpow2.f32 %v3827_v42  ;;  %v2693_v58 = vmul.f32 %v4450_v28, %v2692_v10  ;;  %v4452_v53 = vpop.eup %4451  ;;  %v6848_v42 = vld [vmem:[#allocation2 + $0x2a0] sm:$0xff]  ;;  %v6851_v10 = vld [vmem:[#allocation2 + $0x2b0] sm:$0xff]  ;;  %v6854_v28 = vld [vmem:[#allocation2 + $0x278] sm:$0xff] }
 0x682   :  { %v2531_v4 = vadd.f32 %v2530_v30, %v2514_v47  ;;  %v2533_v57 = vsub.f32 1.0, %v4452_v53  ;;  %v2535_v11 = vmul.f32 %v4452_v53, %v6544_v61  ;;  %v6845_v61 = vld [vmem:[#allocation2 + $0x2b8] sm:$0xff]  ;;  %v6857_v47 = vld [vmem:[#allocation2 + $0x288] sm:$0xff]  ;;  %v6860_v30 = vld [vmem:[#allocation2 + $0x270] sm:$0xff] }
 0x683   :  { %v2694_v5 = vadd.f32 %v2693_v58, %v344_v49  ;;  %v6866_v49 = vld [vmem:[#allocation2 + $0x248] sm:$0xff]  ;;  %v6869_v58 = vld [vmem:[#allocation2 + $0x258] sm:$0xff] }
 0x684   :  { %4455 = vtanh.f32 %v2531_v4  ;;  %8456 = vst [vmem:[#allocation38_spill] sm:$0xff] %v6869_v58  ;;  %v6872_v4 = vld [vmem:[#allocation2 + $0x240] sm:$0xff] }
 0x685   :  { %8457 = vst [vmem:[#allocation37_spill] sm:$0xff] %v6872_v4 }
 0x68e   :  { %v4454_v46 = vpop.eup %4453 }
 0x68f   :  { %v2687_v54 = vadd.f32 1.0, %v4454_v46  ;;  %v6878_v46 = vld [vmem:[#allocation2 + $0x218] sm:$0xff] }
 0x690   :  { %8459 = vst [vmem:[#allocation39_spill] sm:$0xff] %v6878_v46 }
 0x691   :  { %v4456_v25 = vpop.eup %4455  ;;  %4457 = vrcp.f32 %v2687_v54  ;;  %v6881_v54 = vld [vmem:[#allocation2 + $0x228] sm:$0xff] }
 0x692   :  { %v2534_v50 = vmul.f32 %v4456_v25, %v2533_v57  ;;  %4459 = vtanh.f32 %v2694_v5  ;;  %v6875_v5 = vld [vmem:[#allocation2 + $0x250] sm:$0xff]  ;;  %8460 = vst [vmem:[#allocation42_spill] sm:$0xff] %v6881_v54  ;;  %v6887_v25 = vld [vmem:[#allocation2 + $0x220] sm:$0xff] }
 0x693   :  { %8458 = vst [vmem:[#allocation40_spill] sm:$0xff] %v6875_v5  ;;  %v6884_v57 = vld [vmem:[#allocation2 + $0x210] sm:$0xff]  ;;  %8462 = vst [vmem:[#allocation44_spill] sm:$0xff] %v6887_v25 }
 0x694   :  { %v6832_v7 = vadd.f32 %v2535_v11, %v2534_v50  ;;  %8461 = vst [vmem:[#allocation41_spill] sm:$0xff] %v6884_v57 }
 0x696   :  { %2602 = vmatmul.mubr.f32.vlgmr.msra.gmra.mxu1 %v6832_v7  ;;  %4232 = vmatmul.mubr.f32.vlgmr.msra.gmra.mxu0 %v6832_v7 }
 0x697   :  { %2701 = vmatpush1.msra.mxu1 %v6836_v23  ;;  %2772 = vmatpush1.msra.mxu0 %v6839_v22 }
 0x698   :  { %2702 = vmatprep.subr.mxu1 %v6842_v35  ;;  %2773 = vmatprep.subr.mxu0 %v6845_v61 }
 0x699   :  { %2703 = vmatpush1.msra.mxu1 %v6848_v42  ;;  %2774 = vmatpush1.msra.mxu0 %v6851_v10 }
 0x69a   :  { %2704 = vmatprep.subr.mxu1 %v6854_v28  ;;  %2775 = vmatprep.subr.mxu0 %v6857_v47 }
 0x69b   :  { %2705 = vmatpush1.msra.mxu1 %v6860_v30  ;;  %2776 = vmatpush1.msra.mxu0 %v6863_v63 }
 0x69c   :  { %2706 = vmatprep.subr.mxu1 %v6866_v49  ;;  %2777 = vmatprep.subr.mxu0 %v6869_v58  ;;  %v6903_v58 = vld [vmem:[#allocation2 + $0x1b8] sm:$0xff] }
 0x69d   :  { %2707 = vmatpush1.msra.mxu1 %v6872_v4  ;;  %2778 = vmatpush1.msra.mxu0 %v6875_v5  ;;  %v6890_v5 = vld [vmem:[#allocation2 + $0x1e8] sm:$0xff]  ;;  %v6893_v4 = vld [vmem:[#allocation2 + $0x1f8] sm:$0xff] }
 0x69e   :  { %v4458_v53 = vpop.eup %4457  ;;  %2708 = vmatprep.subr.mxu1 %v6878_v46  ;;  %2779 = vmatprep.subr.mxu0 %v6881_v54  ;;  %8463 = vst [vmem:[#allocation43_spill] sm:$0xff] %v6890_v5  ;;  %8464 = vst [vmem:[#allocation46_spill] sm:$0xff] %v6893_v4  ;;  %v6896_v46 = vld [vmem:[#allocation2 + $0x1e0] sm:$0xff]  ;;  %v6899_v54 = vld [vmem:[#allocation2 + $0x1f0] sm:$0xff] }
 0x69f   :  { %2709 = vmatpush1.msra.mxu1 %v6884_v57  ;;  %2780 = vmatpush1.msra.mxu0 %v6887_v25  ;;  %v2696_v50 = vsub.f32 1.0, %v4458_v53  ;;  %v4460_v11 = vpop.eup %4459  ;;  %8465 = vst [vmem:[#allocation45_spill] sm:$0xff] %v6896_v46  ;;  %8466 = vst [vmem:[#allocation48_spill] sm:$0xff] %v6899_v54  ;;  %v2698_v25 = vmul.f32 %v4458_v53, %v6575_v21  ;;  %v6920_v21 = vld [vmem:[#allocation2 + $0x198] sm:$0xff]  ;;  %v6923_v53 = vld [vmem:[#allocation2 + $0x180] sm:$0xff] }
 0x6a0   :  { %2710 = vmatprep.subr.mxu1 %v6890_v5  ;;  %2781 = vmatprep.subr.mxu0 %v6893_v4  ;;  %v6906_v5 = vld [vmem:[#allocation2 + $0x1c8] sm:$0xff]  ;;  %v6909_v4 = vld [vmem:[#allocation2 + $0x1b0] sm:$0xff]  ;;  %8469 = vst [vmem:[#allocation92_spill] sm:$0xff] %v6920_v21  ;;  %8470 = vst [vmem:[#allocation60_spill] sm:$0xff] %v6923_v53 }
 0x6a1   :  { %2711 = vmatpush1.msra.mxu1 %v6896_v46  ;;  %2782 = vmatpush1.msra.mxu0 %v6899_v54  ;;  %v2697_v57 = vmul.f32 %v4460_v11, %v2696_v50  ;;  %8467 = vst [vmem:[#allocation96_spill] sm:$0xff] %v6909_v4  ;;  %v6912_v46 = vld [vmem:[#allocation2 + $0x1c0] sm:$0xff]  ;;  %v6917_v50 = vld [vmem:[#allocation2 + $0x188] sm:$0xff]  ;;  %v6926_v11 = vld [vmem:[#allocation2 + $0x190] sm:$0xff] }
 0x6a2   :  { %2712 = vmatprep.subr.mxu1 %v6903_v58  ;;  %2783 = vmatprep.subr.mxu0 %v6906_v5  ;;  %8468 = vst [vmem:[#allocation97_spill] sm:$0xff] %v6917_v50  ;;  %8471 = vst [vmem:[#allocation59_spill] sm:$0xff] %v6926_v11 }
 0x6a3   :  { %2713 = vmatpush1.msra.mxu1 %v6909_v4  ;;  %2784 = vmatpush1.msra.mxu0 %v6912_v46  ;;  %v6915_v54 = vadd.f32 %v2698_v25, %v2697_v57  ;;  %v6929_v4 = vld [vmem:[#allocation2 + $0x158] sm:$0xff]  ;;  %v6932_v57 = vld [vmem:[#allocation2 + $0x168] sm:$0xff]  ;;  %v6935_v25 = vld [vmem:[#allocation2 + $0x150] sm:$0xff] }
 0x6a4   :  { %2714 = vmatprep.subr.mxu1 %v6917_v50  ;;  %2785 = vmatprep.subr.mxu0 %v6920_v21  ;;  %8472 = vst [vmem:[#allocation62_spill] sm:$0xff] %v6929_v4  ;;  %8473 = vst [vmem:[#allocation61_spill] sm:$0xff] %v6932_v57  ;;  %v6938_v21 = vld [vmem:[#allocation2 + $0x160] sm:$0xff] }
 0x6a5   :  { %2715 = vmatpush1.msra.mxu1 %v6923_v53  ;;  %2786 = vmatpush1.msra.mxu0 %v6926_v11  ;;  %8474 = vst [vmem:[#allocation64_spill] sm:$0xff] %v6935_v25  ;;  %8475 = vst [vmem:[#allocation63_spill] sm:$0xff] %v6938_v21  ;;  %v6941_v53 = vld [vmem:[#allocation2 + $0x128] sm:$0xff]  ;;  %v6944_v11 = vld [vmem:[#allocation2 + $0x138] sm:$0xff] }
 0x6a6   :  { %2716 = vmatprep.subr.mxu1 %v6929_v4  ;;  %2787 = vmatprep.subr.mxu0 %v6932_v57  ;;  %8476 = vst [vmem:[#allocation66_spill] sm:$0xff] %v6941_v53  ;;  %8477 = vst [vmem:[#allocation65_spill] sm:$0xff] %v6944_v11  ;;  %v6947_v4 = vld [vmem:[#allocation2 + $0x120] sm:$0xff]  ;;  %v6950_v57 = vld [vmem:[#allocation2 + $0x130] sm:$0xff] }
 0x6a7   :  { %2717 = vmatpush1.msra.mxu1 %v6935_v25  ;;  %2788 = vmatpush1.msra.mxu0 %v6938_v21  ;;  %8478 = vst [vmem:[#allocation68_spill] sm:$0xff] %v6947_v4  ;;  %8479 = vst [vmem:[#allocation67_spill] sm:$0xff] %v6950_v57  ;;  %v6953_v25 = vld [vmem:[#allocation2 + $0xf8] sm:$0xff]  ;;  %v6956_v21 = vld [vmem:[#allocation2 + $0x108] sm:$0xff] }
 0x6a8   :  { %2718 = vmatprep.subr.mxu1 %v6941_v53  ;;  %2789 = vmatprep.subr.mxu0 %v6944_v11  ;;  %8480 = vst [vmem:[#allocation70_spill] sm:$0xff] %v6953_v25  ;;  %8481 = vst [vmem:[#allocation69_spill] sm:$0xff] %v6956_v21  ;;  %v6959_v53 = vld [vmem:[#allocation2 + $0xf0] sm:$0xff]  ;;  %v6962_v11 = vld [vmem:[#allocation2 + $0x100] sm:$0xff] }
 0x6a9   :  { %2719 = vmatpush1.msra.mxu1 %v6947_v4  ;;  %2790 = vmatpush1.msra.mxu0 %v6950_v57  ;;  %8482 = vst [vmem:[#allocation72_spill] sm:$0xff] %v6959_v53  ;;  %8483 = vst [vmem:[#allocation71_spill] sm:$0xff] %v6962_v11  ;;  %v6965_v4 = vld [vmem:[#allocation2 + $0xc8] sm:$0xff]  ;;  %v6968_v57 = vld [vmem:[#allocation2 + $0xd8] sm:$0xff] }
 0x6aa   :  { %2720 = vmatprep.subr.mxu1 %v6953_v25  ;;  %2791 = vmatprep.subr.mxu0 %v6956_v21  ;;  %8484 = vst [vmem:[#allocation74_spill] sm:$0xff] %v6965_v4  ;;  %8485 = vst [vmem:[#allocation73_spill] sm:$0xff] %v6968_v57  ;;  %v6971_v25 = vld [vmem:[#allocation2 + $0xc0] sm:$0xff]  ;;  %v6974_v21 = vld [vmem:[#allocation2 + $0xd0] sm:$0xff] }
 0x6ab   :  { %2721 = vmatpush1.msra.mxu1 %v6959_v53  ;;  %2792 = vmatpush1.msra.mxu0 %v6962_v11  ;;  %8486 = vst [vmem:[#allocation75_spill] sm:$0xff] %v6971_v25  ;;  %8487 = vst [vmem:[#allocation76_spill] sm:$0xff] %v6974_v21  ;;  %v6977_v53 = vld [vmem:[#allocation2 + $0x98] sm:$0xff]  ;;  %v6980_v11 = vld [vmem:[#allocation2 + $0xa8] sm:$0xff] }
 0x6ac   :  { %2722 = vmatprep.subr.mxu1 %v6965_v4  ;;  %2793 = vmatprep.subr.mxu0 %v6968_v57  ;;  %8488 = vst [vmem:[#allocation12_spill] sm:$0xff] %v6977_v53  ;;  %8489 = vst [vmem:[#allocation105_spill] sm:$0xff] %v6980_v11  ;;  %v6983_v4 = vld [vmem:[#allocation2 + $0x90] sm:$0xff]  ;;  %v6986_v57 = vld [vmem:[#allocation2 + $0xa0] sm:$0xff] }
 0x6ad   :  { %2723 = vmatpush1.msra.mxu1 %v6971_v25  ;;  %2794 = vmatpush1.msra.mxu0 %v6974_v21  ;;  %8490 = vst [vmem:[#allocation106_spill] sm:$0xff] %v6983_v4  ;;  %8491 = vst [vmem:[#allocation107_spill] sm:$0xff] %v6986_v57  ;;  %v6989_v25 = vld [vmem:[#allocation2 + $0x68] sm:$0xff]  ;;  %v6992_v21 = vld [vmem:[#allocation2 + $0x78] sm:$0xff] }
 0x6ae   :  { %2724 = vmatprep.subr.mxu1 %v6977_v53  ;;  %2795 = vmatprep.subr.mxu0 %v6980_v11  ;;  %8492 = vst [vmem:[#allocation109_spill] sm:$0xff] %v6989_v25  ;;  %8493 = vst [vmem:[#allocation113_spill] sm:$0xff] %v6992_v21  ;;  %v6995_v53 = vld [vmem:[#allocation2 + $0x60] sm:$0xff]  ;;  %v6998_v11 = vld [vmem:[#allocation2 + $0x70] sm:$0xff] }
 0x6af   :  { %2725 = vmatpush1.msra.mxu1 %v6983_v4  ;;  %2796 = vmatpush1.msra.mxu0 %v6986_v57  ;;  %8494 = vst [vmem:[#allocation114_spill] sm:$0xff] %v6995_v53  ;;  %8495 = vst [vmem:[#allocation115_spill] sm:$0xff] %v6998_v11  ;;  %v7001_v4 = vld [vmem:[#allocation2 + $0x38] sm:$0xff]  ;;  %v7004_v57 = vld [vmem:[#allocation2 + $0x48] sm:$0xff] }
 0x6b0   :  { %2726 = vmatprep.subr.mxu1 %v6989_v25  ;;  %2797 = vmatprep.subr.mxu0 %v6992_v21  ;;  %8496 = vst [vmem:[#allocation116_spill] sm:$0xff] %v7001_v4  ;;  %8497 = vst [vmem:[#allocation117_spill] sm:$0xff] %v7004_v57  ;;  %v7007_v25 = vld [vmem:[#allocation2 + $0x30] sm:$0xff]  ;;  %v7010_v21 = vld [vmem:[#allocation2 + $0x40] sm:$0xff] }
 0x6b1   :  { %2727 = vmatpush1.msra.mxu1 %v6995_v53  ;;  %2798 = vmatpush1.msra.mxu0 %v6998_v11  ;;  %8498 = vst [vmem:[#allocation118_spill] sm:$0xff] %v7010_v21  ;;  %v7013_v53 = vld [vmem:[#allocation2 + $0x8] sm:$0xff]  ;;  %v7016_v11 = vld [vmem:[#allocation2 + $0x18] sm:$0xff] }
 0x6b2   :  { %2728 = vmatprep.subr.mxu1 %v7001_v4  ;;  %2799 = vmatprep.subr.mxu0 %v7004_v57  ;;  %8499 = vst [vmem:[#allocation119_spill] sm:$0xff] %v7013_v53  ;;  %8500 = vst [vmem:[#allocation120_spill] sm:$0xff] %v7016_v11  ;;  %v7019_v4 = vld [vmem:[#allocation2] sm:$0xff]  ;;  %v7023_v57 = vld [vmem:[#allocation2 + $0x10] sm:$0xff] }
 0x6b3   :  { %2729 = vmatpush1.msra.mxu1 %v7007_v25  ;;  %2800 = vmatpush1.msra.mxu0 %v7010_v21  ;;  %8501 = vst [vmem:[#allocation121_spill] sm:$0xff] %v7019_v4  ;;  %8502 = vst [vmem:[#allocation122_spill] sm:$0xff] %v7023_v57 }
 0x6b4   :  { %2730 = vmatprep.subr.mxu1 %v7013_v53  ;;  %2801 = vmatprep.subr.mxu0 %v7016_v11  ;;  %v7029_v53 = vld [vmem:[#allocation2 + $0x2f8] sm:$0xff]  ;;  %v7033_v11 = vld [vmem:[#allocation2 + $0x2f0] sm:$0xff] }
 0x6b5   :  { %2731 = vmatpush1.msra.mxu1 %v7019_v4  ;;  %2764 = vmatprep.mubr.f32.mxu1 %v7998_v33  ;;  %8503 = vst [vmem:[#allocation123_spill] sm:$0xff] %v7029_v53  ;;  %8504 = vst [vmem:[#allocation124_spill] sm:$0xff] %v7033_v11  ;;  %v7037_v4 = vld [vmem:[#allocation2 + $0x2c8] sm:$0xff] }
 0x6b6   :  { %2802 = vmatpush1.msra.mxu0 %v7023_v57  ;;  %2835 = vmatprep.mubr.f32.mxu0 %v7998_v33  ;;  %8505 = vst [vmem:[#allocation125_spill] sm:$0xff] %v7037_v4  ;;  %v7041_v57 = vld [vmem:[#allocation2 + $0x2c0] sm:$0xff] }
 0x6b7   :  { %2765 = vmatmul.mubr.f32.vlgmr.msra.gmra.mxu1 %v6915_v54  ;;  %2836 = vmatmul.mubr.f32.vlgmr.msra.gmra.mxu0 %v6915_v54  ;;  %8506 = vst [vmem:[#allocation126_spill] sm:$0xff] %v7041_v57 }
 0x6b8   :  { %2842 = vmatprep.subr.mxu1 %v7029_v53  ;;  %2906 = vmatprep.mubr.f32.mxu1 %v7998_v33  ;;  %v7045_v53 = vld [vmem:[#allocation2 + $0x298] sm:$0xff] }
 0x6b9   :  { %2843 = vmatpush1.msra.mxu1 %v7033_v11  ;;  %2938 = vmatprep.subr.mxu0 %v6620_v16  ;;  %8507 = vst [vmem:[#allocation127_spill] sm:$0xff] %v7045_v53  ;;  %v7049_v11 = vld [vmem:[#allocation2 + $0x290] sm:$0xff] }
 0x6ba   :  { %2844 = vmatprep.subr.mxu1 %v7037_v4  ;;  %2939 = vmatpush1.msra.mxu0 %v6624_v27  ;;  %8508 = vst [vmem:[#allocation128_spill] sm:$0xff] %v7049_v11  ;;  %v7053_v4 = vld [vmem:[#allocation2 + $0x268] sm:$0xff] }
 0x6bb   :  { %2845 = vmatpush1.msra.mxu1 %v7041_v57  ;;  %2940 = vmatprep.subr.mxu0 %v6628_v3  ;;  %8509 = vst [vmem:[#allocation129_spill] sm:$0xff] %v7053_v4  ;;  %v7057_v57 = vld [vmem:[#allocation2 + $0x260] sm:$0xff] }
 0x6bc   :  { %2846 = vmatprep.subr.mxu1 %v7045_v53  ;;  %2941 = vmatpush1.msra.mxu0 %v6632_v2  ;;  %8510 = vst [vmem:[#allocation130_spill] sm:$0xff] %v7057_v57  ;;  %v7061_v53 = vld [vmem:[#allocation2 + $0x238] sm:$0xff] }
 0x6bd   :  { %2847 = vmatpush1.msra.mxu1 %v7049_v11  ;;  %2942 = vmatprep.subr.mxu0 %v6636_v9  ;;  %8511 = vst [vmem:[#allocation131_spill] sm:$0xff] %v7061_v53  ;;  %v7065_v11 = vld [vmem:[#allocation2 + $0x230] sm:$0xff] }
 0x6be   :  { %2848 = vmatprep.subr.mxu1 %v7053_v4  ;;  %2943 = vmatpush1.msra.mxu0 %v6640_v13  ;;  %8512 = vst [vmem:[#allocation132_spill] sm:$0xff] %v7065_v11  ;;  %v7069_v4 = vld [vmem:[#allocation2 + $0x208] sm:$0xff] }
 0x6bf   :  { %2849 = vmatpush1.msra.mxu1 %v7057_v57  ;;  %2944 = vmatprep.subr.mxu0 %v6644_v38  ;;  %8513 = vst [vmem:[#allocation133_spill] sm:$0xff] %v7069_v4  ;;  %v7073_v57 = vld [vmem:[#allocation2 + $0x200] sm:$0xff] }
 0x6c0   :  { %2850 = vmatprep.subr.mxu1 %v7061_v53  ;;  %2945 = vmatpush1.msra.mxu0 %v6648_v0  ;;  %v7077_v53 = vld [vmem:[#allocation2 + $0x1d8] sm:$0xff] }
 0x6c1   :  { %2851 = vmatpush1.msra.mxu1 %v7065_v11  ;;  %2946 = vmatprep.subr.mxu0 %v6652_v26  ;;  %v7081_v11 = vld [vmem:[#allocation2 + $0x1d0] sm:$0xff] }
 0x6c2   :  { %2852 = vmatprep.subr.mxu1 %v7069_v4  ;;  %2947 = vmatpush1.msra.mxu0 %v6656_v48  ;;  %v7085_v4 = vld [vmem:[#allocation2 + $0x1a8] sm:$0xff] }
 0x6c3   :  { %2853 = vmatpush1.msra.mxu1 %v7073_v57  ;;  %2948 = vmatprep.subr.mxu0 %v6660_v56  ;;  %8514 = vst [vmem:[#allocation82_spill] sm:$0xff] %v7085_v4 }
 0x6c4   :  { %2854 = vmatprep.subr.mxu1 %v7077_v53  ;;  %2949 = vmatpush1.msra.mxu0 %v6664_v44 }
 0x6c5   :  { %2855 = vmatpush1.msra.mxu1 %v7081_v11  ;;  %2950 = vmatprep.subr.mxu0 %v6668_v62 }
 0x6c6   :  { %2856 = vmatprep.subr.mxu1 %v7085_v4  ;;  %2951 = vmatpush1.msra.mxu0 %v6672_v43 }
 0x6c7   :  { %2857 = vmatpush1.msra.mxu1 %v8399_v41  ;;  %2952 = vmatprep.subr.mxu0 %v6676_v60  ;;  %v8515_v41 = vld [vmem:[#allocation77_spill] sm:$0xff] }
 0x6c8   :  { %2858 = vmatprep.subr.mxu1 %v8401_v45  ;;  %2953 = vmatpush1.msra.mxu0 %v6680_v31  ;;  %v8516_v45 = vld [vmem:[#allocation47_spill] sm:$0xff] }
 0x6c9   :  { %2859 = vmatpush1.msra.mxu1 %v8403_v39  ;;  %2954 = vmatprep.subr.mxu0 %v6684_v51  ;;  %v8517_v39 = vld [vmem:[#allocation78_spill] sm:$0xff] }
 0x6ca   :  { %2860 = vmatprep.subr.mxu1 %v8405_v32  ;;  %2955 = vmatpush1.msra.mxu0 %v6688_v59  ;;  %v8518_v32 = vld [vmem:[#allocation50_spill] sm:$0xff] }
 0x6cb   :  { %2861 = vmatpush1.msra.mxu1 %v8407_v14  ;;  %2956 = vmatprep.subr.mxu0 %v6692_v20  ;;  %v8519_v14 = vld [vmem:[#allocation79_spill] sm:$0xff] }
 0x6cc   :  { %2862 = vmatprep.subr.mxu1 %v8409_v6  ;;  %2957 = vmatpush1.msra.mxu0 %v6696_v17  ;;  %v8520_v6 = vld [vmem:[#allocation49_spill] sm:$0xff] }
 0x6cd   :  { %2863 = vmatpush1.msra.mxu1 %v8411_v15  ;;  %2958 = vmatprep.subr.mxu0 %v6700_v36  ;;  %v8521_v15 = vld [vmem:[#allocation80_spill] sm:$0xff] }
 0x6ce   :  { %2864 = vmatprep.subr.mxu1 %v8413_v8  ;;  %2959 = vmatpush1.msra.mxu0 %v6704_v55  ;;  %v8522_v8 = vld [vmem:[#allocation52_spill] sm:$0xff] }
 0x6cf   :  { %2865 = vmatpush1.msra.mxu1 %v8415_v29  ;;  %2960 = vmatprep.subr.mxu0 %v6708_v34  ;;  %v8523_v29 = vld [vmem:[#allocation13_spill] sm:$0xff]  ;;  %v8524_v34 = vld [vmem:[#allocation51_spill] sm:$0xff] }
 0x6d0   :  { %2866 = vmatprep.subr.mxu1 %v8417_v37  ;;  %2961 = vmatpush1.msra.mxu0 %v8515_v41  ;;  %v8525_v37 = vld [vmem:[#allocation16_spill] sm:$0xff]  ;;  %v8526_v41 = vld [vmem:[#allocation54_spill] sm:$0xff] }
 0x6d1   :  { %2867 = vmatpush1.msra.mxu1 %v8516_v45  ;;  %2962 = vmatprep.subr.mxu0 %v8517_v39  ;;  %v8527_v45 = vld [vmem:[#allocation15_spill] sm:$0xff]  ;;  %v8528_v39 = vld [vmem:[#allocation53_spill] sm:$0xff] }
 0x6d2   :  { %2868 = vmatprep.subr.mxu1 %v8518_v32  ;;  %2963 = vmatpush1.msra.mxu0 %v8519_v14  ;;  %v8529_v32 = vld [vmem:[#allocation18_spill] sm:$0xff]  ;;  %v8549_v14 = vld [vmem:[#allocation100_spill] sm:$0xff] }
 0x6d3   :  { %2869 = vmatpush1.msra.mxu1 %v8520_v6  ;;  %2964 = vmatprep.subr.mxu0 %v8521_v15  ;;  %v8530_v6 = vld [vmem:[#allocation17_spill] sm:$0xff]  ;;  %v242_v55 = vadd.f32 %v8549_v14, %v8033_v1 }
 0x6d4   :  { %2870 = vmatprep.subr.mxu1 %v8522_v8  ;;  %2965 = vmatpush1.msra.mxu0 %v8523_v29  ;;  %v8531_v8 = vld [vmem:[#allocation20_spill] sm:$0xff] }
 0x6d5   :  { %2871 = vmatpush1.msra.mxu1 %v8524_v34  ;;  %2966 = vmatprep.subr.mxu0 %v8525_v37  ;;  %v8532_v34 = vld [vmem:[#allocation19_spill] sm:$0xff] }
 0x6d6   :  { %2872 = vmatprep.subr.mxu1 %v8526_v41  ;;  %2967 = vmatpush1.msra.mxu0 %v8527_v45  ;;  %v8533_v41 = vld [vmem:[#allocation22_spill] sm:$0xff] }
 0x6d7   :  { %2873 = vmatpush1.msra.mxu1 %v8528_v39  ;;  %2968 = vmatprep.subr.mxu0 %v8529_v32  ;;  %v8534_v39 = vld [vmem:[#allocation21_spill] sm:$0xff] }
 0x6d8   :  { %2907 = vmatmul.mubr.f32.vlgmr.msra.gmra.mxu1 %v6915_v54  ;;  %4234 = vmatprep.subr.mxu1 %v7998_v33  ;;  %v8538_v32 = vld [vmem:[#allocation25_spill] sm:$0xff] }
 0x6d9   :  { %4235 = vmatpush3.msra.mxu1 %v8530_v6  ;;  %2969 = vmatpush1.msra.mxu0 %v8531_v8  ;;  %v8535_v6 = vld [vmem:[#allocation24_spill] sm:$0xff]  ;;  %v8536_v8 = vld [vmem:[#allocation23_spill] sm:$0xff] }
 0x6da   :  { %4236 = vmatprep.subr.mxu1 %v7998_v33  ;;  %3002 = vmatprep.mubr.f32.mxu0 %v7998_v33 }
 0x6db   :  { %4237 = vmatpush3.msra.mxu1 %v8532_v34  ;;  %4266 = vmatprep.mubr.msk.f32.mxu1 %vm4903_vm1, %v7998_v33  ;;  %v8537_v34 = vld [vmem:[#allocation26_spill] sm:$0xff] }
 0x6dc   :  { %4238 = vmatprep.subr.mxu1 %v7998_v33  ;;  %3101 = vmatprep.subr.mxu0 %v8533_v41  ;;  %v8539_v41 = vld [vmem:[#allocation28_spill] sm:$0xff] }
 0x6dd   :  { %4239 = vmatpush3.msra.mxu1 %v8534_v39  ;;  %v8540_v39 = vld [vmem:[#allocation27_spill] sm:$0xff] }
 0x6de   :  { %4240 = vmatprep.subr.mxu1 %v7998_v33 }
 0x6df   :  { %4241 = vmatpush3.msra.mxu1 %v8535_v6  ;;  %v8541_v6 = vld [vmem:[#allocation30_spill] sm:$0xff] }
 0x6e0   :  { %4242 = vmatprep.subr.mxu1 %v7998_v33 }
 0x6e1   :  { %4243 = vmatpush3.msra.mxu1 %v8536_v8  ;;  %v8542_v8 = vld [vmem:[#allocation29_spill] sm:$0xff] }
 0x6e2   :  { %4244 = vmatprep.subr.mxu1 %v7998_v33 }
 0x6e3   :  { %4245 = vmatpush3.msra.mxu1 %v8537_v34  ;;  %v8543_v34 = vld [vmem:[#allocation32_spill] sm:$0xff] }
 0x6e4   :  { %4246 = vmatprep.subr.mxu1 %v7998_v33 }
 0x6e5   :  { %4247 = vmatpush3.msra.mxu1 %v8538_v32  ;;  %v8544_v32 = vld [vmem:[#allocation31_spill] sm:$0xff] }
 0x6e6   :  { %4248 = vmatprep.subr.mxu1 %v7998_v33 }
 0x6e7   :  { %4249 = vmatpush3.msra.mxu1 %v8539_v41  ;;  %v8545_v41 = vld [vmem:[#allocation34_spill] sm:$0xff] }
 0x6e8   :  { %4250 = vmatprep.subr.mxu1 %v7998_v33 }
 0x6e9   :  { %4251 = vmatpush3.msra.mxu1 %v8540_v39  ;;  %v8546_v39 = vld [vmem:[#allocation33_spill] sm:$0xff] }
 0x6ea   :  { %4252 = vmatprep.subr.mxu1 %v7998_v33 }
 0x6eb   :  { %4253 = vmatpush3.msra.mxu1 %v8541_v6  ;;  %v8547_v6 = vld [vmem:[#allocation36_spill] sm:$0xff] }
 0x6ec   :  { %4254 = vmatprep.subr.mxu1 %v7998_v33 }
 0x6ed   :  { %4255 = vmatpush3.msra.mxu1 %v8542_v8  ;;  %v8548_v8 = vld [vmem:[#allocation35_spill] sm:$0xff] }
 0x6ee   :  { %4256 = vmatprep.subr.mxu1 %v7998_v33 }
 0x6ef   :  { %4257 = vmatpush3.msra.mxu1 %v8543_v34 }
 0x6f0   :  { %4258 = vmatprep.subr.mxu1 %v7998_v33 }
 0x6f1   :  { %4259 = vmatpush3.msra.mxu1 %v8544_v32 }
 0x6f2   :  { %4260 = vmatprep.subr.mxu1 %v7998_v33 }
 0x6f3   :  { %4261 = vmatpush3.msra.mxu1 %v8545_v41 }
 0x6f4   :  { %4262 = vmatprep.subr.mxu1 %v7998_v33 }
 0x6f5   :  { %4263 = vmatpush3.msra.mxu1 %v8546_v39 }
 0x6f6   :  { %4264 = vmatprep.subr.mxu1 %v7998_v33 }
 0x6f7   :  { %4265 = vmatpush3.msra.mxu1 %v8547_v6 }
 0x6f8   :  { %3172 = vmatprep.subr.mxu1 %v8548_v8 }
 0x756   :  { %v2674_v45 = vpop.f32.mrf.mxu0  ;;  %v2603_v37 = vpop.f32.mrf.mxu1 }
 0x758   :  { %v4233_v34 = vpop.f32.mrf.mxu0  ;;  %v2605_v29 = vpop.f32.mrf.mxu1 }
 0x777   :  { %v2766_v15 = vpop.f32.mrf.mxu1  ;;  %v2837_v32 = vpop.f32.mrf.mxu0 }
 0x778   :  { %v2913_v41 = vadd.f32 %v2766_v15, %v5657_v12  ;;  %v8550_v15 = vld [vmem:[#allocation101_spill] sm:$0xff] }
 0x779   :  { %v2768_v36 = vpop.f32.mrf.mxu1  ;;  %v2839_v17 = vpop.f32.mrf.mxu0 }
 0x77a   :  { %v2916_v39 = vadd.f32 %v2913_v41, %v2603_v37  ;;  %v3079_v20 = vadd.f32 %v2839_v17, %v242_v55  ;;  %v2914_v6 = vadd.f32 %v2768_v36, %v5661_v18  ;;  %v244_v37 = vadd.f32 %v8550_v15, %v8034_v24 }
 0x77c   :  { %v3828_v59 = vmul.f32 -1.442695, %v2916_v39  ;;  %v3830_v51 = vmul.f32 -1.442695, %v3079_v20  ;;  %v2917_v34 = vadd.f32 %v2914_v6, %v2605_v29  ;;  %v2930_v20 = vadd.f32 %v6536_v19, %v2674_v45  ;;  %v7172_v29 = vld [vmem:[%s7456_s3] ss:$0 sm:$0xff] }
 0x77d   :  { %v8551_v6 = vld [vmem:[#allocation94_spill] sm:$0xff] }
 0x77e   :  { %4461 = vpow2.f32 %v3828_v59  ;;  %v3829_v8 = vmul.f32 -1.442695, %v2917_v34 }
 0x77f   :  { %4463 = vpow2.f32 %v3830_v51 }
 0x780   :  { %4465 = vpow2.f32 %v3829_v8  ;;  %v349_v8 = vadd.f32 %v8551_v6, %v5438_v40 }
 0x78b   :  { %v4462_v31 = vpop.eup %4461 }
 0x78c   :  { %v4464_v60 = vpop.eup %4463  ;;  %v2924_v43 = vadd.f32 1.0, %v4462_v31  ;;  %v2915_v31 = vadd.f32 %v2837_v32, %v5674_v52 }
 0x78d   :  { %v3087_v4 = vadd.f32 1.0, %v4464_v60  ;;  %v4466_v14 = vpop.eup %4465 }
 0x78e   :  { %4467 = vrcp.f32 %v2924_v43  ;;  %v2925_v17 = vadd.f32 1.0, %v4466_v14 }
 0x78f   :  { %4469 = vrcp.f32 %v3087_v4 }
 0x790   :  { %4471 = vrcp.f32 %v2925_v17  ;;  %v8553_v17 = vld [vmem:[#allocation37_spill] sm:$0xff] }
 0x798   :  { %v2908_v55 = vpop.f32.mrf.mxu1 }
 0x799   :  { %v3080_v41 = vadd.f32 %v2908_v55, %v244_v37 }
 0x79a   :  { %v2910_v59 = vpop.f32.mrf.mxu1 }
 0x79b   :  { %v4468_v51 = vpop.eup %4467  ;;  %v3831_v36 = vmul.f32 -1.442695, %v3080_v41  ;;  %v3093_v43 = vadd.f32 %v7172_v29, %v2910_v59 }
 0x79c   :  { %v4470_v60 = vpop.eup %4469  ;;  %v2931_v4 = vmul.f32 %v4468_v51, %v2930_v20  ;;  %v8554_v20 = vld [vmem:[#allocation40_spill] sm:$0xff] }
 0x79d   :  { %4473 = vpow2.f32 %v3831_v36  ;;  %v3094_v19 = vmul.f32 %v4470_v60, %v3093_v43  ;;  %v4472_v34 = vpop.eup %4471  ;;  %v8555_v36 = vld [vmem:[#allocation39_spill] sm:$0xff]  ;;  %v8556_v43 = vld [vmem:[#allocation42_spill] sm:$0xff]  ;;  %v8557_v60 = vld [vmem:[#allocation41_spill] sm:$0xff] }
 0x79e   :  { %v2932_v45 = vadd.f32 %v2931_v4, %v2915_v31  ;;  %v2934_v37 = vsub.f32 1.0, %v4472_v34  ;;  %v2936_v59 = vmul.f32 %v4472_v34, %v6832_v7  ;;  %v8552_v7 = vld [vmem:[#allocation38_spill] sm:$0xff]  ;;  %v8558_v31 = vld [vmem:[#allocation44_spill] sm:$0xff] }
 0x79f   :  { %v3095_v39 = vadd.f32 %v3094_v19, %v349_v8  ;;  %v8559_v8 = vld [vmem:[#allocation43_spill] sm:$0xff]  ;;  %v8560_v19 = vld [vmem:[#allocation46_spill] sm:$0xff] }
 0x7a0   :  { %4475 = vtanh.f32 %v2932_v45  ;;  %v8561_v45 = vld [vmem:[#allocation45_spill] sm:$0xff] }
 0x7aa   :  { %v4474_v14 = vpop.eup %4473 }
 0x7ab   :  { %v3088_v15 = vadd.f32 1.0, %v4474_v14 }
 0x7ad   :  { %v4476_v55 = vpop.eup %4475  ;;  %4477 = vrcp.f32 %v3088_v15  ;;  %v8563_v15 = vld [vmem:[#allocation96_spill] sm:$0xff] }
 0x7ae   :  { %v2935_v41 = vmul.f32 %v4476_v55, %v2934_v37  ;;  %4479 = vtanh.f32 %v3095_v39  ;;  %v8562_v39 = vld [vmem:[#allocation48_spill] sm:$0xff] }
 0x7af   :  { %v8564_v55 = vld [vmem:[#allocation92_spill] sm:$0xff] }
 0x7b0   :  { %v7179_v32 = vadd.f32 %v2936_v59, %v2935_v41  ;;  %v8565_v41 = vld [vmem:[#allocation60_spill] sm:$0xff]  ;;  %v8566_v59 = vld [vmem:[#allocation59_spill] sm:$0xff] }
 0x7b2   :  { %3003 = vmatmul.mubr.f32.vlgmr.msra.gmra.mxu0 %v7179_v32  ;;  %4267 = vmatmul.mubr.f32.vlgmr.msra.gmra.mxu1 %v7179_v32 }
 0x7b3   :  { %3102 = vmatpush1.msra.mxu0 %v6836_v23  ;;  %3173 = vmatpush1.msra.mxu1 %v6839_v22 }
 0x7b4   :  { %3103 = vmatprep.subr.mxu0 %v6842_v35  ;;  %3174 = vmatprep.subr.mxu1 %v6845_v61 }
 0x7b5   :  { %3104 = vmatpush1.msra.mxu0 %v6848_v42  ;;  %3175 = vmatpush1.msra.mxu1 %v6851_v10 }
 0x7b6   :  { %3105 = vmatprep.subr.mxu0 %v6854_v28  ;;  %3176 = vmatprep.subr.mxu1 %v6857_v47 }
 0x7b7   :  { %3106 = vmatpush1.msra.mxu0 %v6860_v30  ;;  %3177 = vmatpush1.msra.mxu1 %v6863_v63 }
 0x7b8   :  { %3107 = vmatprep.subr.mxu0 %v6866_v49  ;;  %3178 = vmatprep.subr.mxu1 %v8552_v7 }
 0x7b9   :  { %3108 = vmatpush1.msra.mxu0 %v8553_v17  ;;  %3179 = vmatpush1.msra.mxu1 %v8554_v20 }
 0x7ba   :  { %v4478_v51 = vpop.eup %4477  ;;  %3109 = vmatprep.subr.mxu0 %v8555_v36  ;;  %3180 = vmatprep.subr.mxu1 %v8556_v43 }
 0x7bb   :  { %3110 = vmatpush1.msra.mxu0 %v8557_v60  ;;  %3181 = vmatpush1.msra.mxu1 %v8558_v31  ;;  %v3097_v4 = vsub.f32 1.0, %v4478_v51  ;;  %v4480_v6 = vpop.eup %4479  ;;  %v3099_v14 = vmul.f32 %v4478_v51, %v6915_v54  ;;  %v8568_v54 = vld [vmem:[#allocation61_spill] sm:$0xff]  ;;  %v8569_v51 = vld [vmem:[#allocation64_spill] sm:$0xff] }
 0x7bc   :  { %3111 = vmatprep.subr.mxu0 %v8559_v8  ;;  %3182 = vmatprep.subr.mxu1 %v8560_v19 }
 0x7bd   :  { %3112 = vmatpush1.msra.mxu0 %v8561_v45  ;;  %3183 = vmatpush1.msra.mxu1 %v8562_v39  ;;  %v3098_v34 = vmul.f32 %v4480_v6, %v3097_v4  ;;  %v8567_v4 = vld [vmem:[#allocation62_spill] sm:$0xff]  ;;  %v8570_v6 = vld [vmem:[#allocation63_spill] sm:$0xff] }
 0x7be   :  { %3113 = vmatprep.subr.mxu0 %v6903_v58  ;;  %3184 = vmatprep.subr.mxu1 %v6906_v5 }
 0x7bf   :  { %3114 = vmatpush1.msra.mxu0 %v8563_v15  ;;  %3185 = vmatpush1.msra.mxu1 %v6912_v46  ;;  %v7210_v37 = vadd.f32 %v3099_v14, %v3098_v34  ;;  %v8571_v15 = vld [vmem:[#allocation66_spill] sm:$0xff]  ;;  %v8572_v34 = vld [vmem:[#allocation65_spill] sm:$0xff]  ;;  %v8573_v14 = vld [vmem:[#allocation68_spill] sm:$0xff] }
 0x7c0   :  { %3115 = vmatprep.subr.mxu0 %v6917_v50  ;;  %3186 = vmatprep.subr.mxu1 %v8564_v55  ;;  %v8574_v50 = vld [vmem:[#allocation67_spill] sm:$0xff]  ;;  %v8575_v55 = vld [vmem:[#allocation70_spill] sm:$0xff] }
 0x7c1   :  { %3116 = vmatpush1.msra.mxu0 %v8565_v41  ;;  %3187 = vmatpush1.msra.mxu1 %v8566_v59  ;;  %v8576_v41 = vld [vmem:[#allocation69_spill] sm:$0xff]  ;;  %v8577_v59 = vld [vmem:[#allocation72_spill] sm:$0xff] }
 0x7c2   :  { %3117 = vmatprep.subr.mxu0 %v8567_v4  ;;  %3188 = vmatprep.subr.mxu1 %v8568_v54  ;;  %v8578_v4 = vld [vmem:[#allocation71_spill] sm:$0xff]  ;;  %v8579_v54 = vld [vmem:[#allocation74_spill] sm:$0xff] }
 0x7c3   :  { %3118 = vmatpush1.msra.mxu0 %v8569_v51  ;;  %3189 = vmatpush1.msra.mxu1 %v8570_v6  ;;  %v8580_v51 = vld [vmem:[#allocation73_spill] sm:$0xff]  ;;  %v8581_v6 = vld [vmem:[#allocation75_spill] sm:$0xff] }
 0x7c4   :  { %3119 = vmatprep.subr.mxu0 %v8571_v15  ;;  %3190 = vmatprep.subr.mxu1 %v8572_v34  ;;  %v8582_v15 = vld [vmem:[#allocation76_spill] sm:$0xff] }
 0x7c5   :  { %3120 = vmatpush1.msra.mxu0 %v8573_v14  ;;  %3191 = vmatpush1.msra.mxu1 %v8574_v50  ;;  %v8583_v34 = vld [vmem:[#allocation12_spill] sm:$0xff]  ;;  %v8584_v14 = vld [vmem:[#allocation105_spill] sm:$0xff]  ;;  %v8585_v50 = vld [vmem:[#allocation106_spill] sm:$0xff] }
 0x7c6   :  { %3121 = vmatprep.subr.mxu0 %v8575_v55  ;;  %3192 = vmatprep.subr.mxu1 %v8576_v41  ;;  %v8586_v55 = vld [vmem:[#allocation107_spill] sm:$0xff]  ;;  %v8587_v41 = vld [vmem:[#allocation109_spill] sm:$0xff] }
 0x7c7   :  { %3122 = vmatpush1.msra.mxu0 %v8577_v59  ;;  %3193 = vmatpush1.msra.mxu1 %v8578_v4  ;;  %v8588_v59 = vld [vmem:[#allocation113_spill] sm:$0xff]  ;;  %v8589_v4 = vld [vmem:[#allocation114_spill] sm:$0xff] }
 0x7c8   :  { %3123 = vmatprep.subr.mxu0 %v8579_v54  ;;  %3194 = vmatprep.subr.mxu1 %v8580_v51  ;;  %v8590_v54 = vld [vmem:[#allocation115_spill] sm:$0xff]  ;;  %v8591_v51 = vld [vmem:[#allocation116_spill] sm:$0xff] }
 0x7c9   :  { %3124 = vmatpush1.msra.mxu0 %v8581_v6  ;;  %3195 = vmatpush1.msra.mxu1 %v8582_v15  ;;  %v8592_v6 = vld [vmem:[#allocation117_spill] sm:$0xff] }
 0x7ca   :  { %3125 = vmatprep.subr.mxu0 %v8583_v34  ;;  %3196 = vmatprep.subr.mxu1 %v8584_v14  ;;  %v8593_v14 = vld [vmem:[#allocation119_spill] sm:$0xff] }
 0x7cb   :  { %3126 = vmatpush1.msra.mxu0 %v8585_v50  ;;  %3197 = vmatpush1.msra.mxu1 %v8586_v55  ;;  %v8594_v50 = vld [vmem:[#allocation120_spill] sm:$0xff]  ;;  %v8595_v55 = vld [vmem:[#allocation121_spill] sm:$0xff] }
 0x7cc   :  { %3127 = vmatprep.subr.mxu0 %v8587_v41  ;;  %3198 = vmatprep.subr.mxu1 %v8588_v59  ;;  %v8596_v59 = vld [vmem:[#allocation122_spill] sm:$0xff] }
 0x7cd   :  { %3128 = vmatpush1.msra.mxu0 %v8589_v4  ;;  %3199 = vmatpush1.msra.mxu1 %v8590_v54 }
 0x7ce   :  { %3129 = vmatprep.subr.mxu0 %v8591_v51  ;;  %3200 = vmatprep.subr.mxu1 %v8592_v6  ;;  %v8597_v6 = vld [vmem:[#allocation123_spill] sm:$0xff] }
 0x7cf   :  { %3130 = vmatpush1.msra.mxu0 %v7007_v25  ;;  %3201 = vmatpush1.msra.mxu1 %v7010_v21  ;;  %v8598_v21 = vld [vmem:[#allocation124_spill] sm:$0xff] }
 0x7d0   :  { %3131 = vmatprep.subr.mxu0 %v8593_v14  ;;  %3202 = vmatprep.subr.mxu1 %v8594_v50  ;;  %v8599_v50 = vld [vmem:[#allocation125_spill] sm:$0xff]  ;;  %v8602_v14 = vld [vmem:[#allocation128_spill] sm:$0xff] }
 0x7d1   :  { %3132 = vmatpush1.msra.mxu0 %v8595_v55  ;;  %3165 = vmatprep.mubr.f32.mxu0 %v7998_v33  ;;  %v8600_v55 = vld [vmem:[#allocation126_spill] sm:$0xff] }
 0x7d2   :  { %3203 = vmatpush1.msra.mxu1 %v8596_v59  ;;  %3236 = vmatprep.mubr.f32.mxu1 %v7998_v33  ;;  %v8601_v59 = vld [vmem:[#allocation127_spill] sm:$0xff] }
 0x7d3   :  { %3166 = vmatmul.mubr.f32.vlgmr.msra.gmra.mxu0 %v7210_v37  ;;  %3237 = vmatmul.mubr.f32.vlgmr.msra.gmra.mxu1 %v7210_v37 }
 0x7d4   :  { %3243 = vmatprep.subr.mxu0 %v8597_v6  ;;  %3307 = vmatprep.mubr.f32.mxu0 %v7998_v33  ;;  %v8603_v6 = vld [vmem:[#allocation129_spill] sm:$0xff] }
 0x7d5   :  { %3244 = vmatpush1.msra.mxu0 %v8598_v21  ;;  %3339 = vmatprep.subr.mxu1 %v6620_v16  ;;  %v8604_v16 = vld [vmem:[#allocation130_spill] sm:$0xff]  ;;  %v8613_v21 = vld [vmem:[#allocation89_spill] sm:$0xff] }
 0x7d6   :  { %3245 = vmatprep.subr.mxu0 %v8599_v50  ;;  %3340 = vmatpush1.msra.mxu1 %v6624_v27  ;;  %v8605_v27 = vld [vmem:[#allocation131_spill] sm:$0xff]  ;;  %v8612_v50 = vld [vmem:[#allocation57_spill] sm:$0xff] }
 0x7d7   :  { %3246 = vmatpush1.msra.mxu0 %v8600_v55  ;;  %3341 = vmatprep.subr.mxu1 %v6628_v3  ;;  %v8606_v3 = vld [vmem:[#allocation132_spill] sm:$0xff]  ;;  %v4795_v55 = vld [vmem:[#allocation2 + $0x110] sm:$0xff] }
 0x7d8   :  { %3247 = vmatprep.subr.mxu0 %v8601_v59  ;;  %3342 = vmatpush1.msra.mxu1 %v6632_v2  ;;  %v8607_v2 = vld [vmem:[#allocation133_spill] sm:$0xff]  ;;  %v8616_v59 = vld [vmem:[#allocation110_spill] sm:$0xff] }
 0x7d9   :  { %3248 = vmatpush1.msra.mxu0 %v8602_v14  ;;  %3343 = vmatprep.subr.mxu1 %v6636_v9  ;;  %v8608_v9 = vld [vmem:[#allocation82_spill] sm:$0xff]  ;;  %v4796_v14 = vld [vmem:[#allocation2 + $0xe8] sm:$0xff] }
 0x7da   :  { %3249 = vmatprep.subr.mxu0 %v8603_v6  ;;  %3344 = vmatpush1.msra.mxu1 %v6640_v13  ;;  %v8609_v13 = vld [vmem:[#allocation56_spill] sm:$0xff]  ;;  %v8617_v6 = vld [vmem:[#allocation111_spill] sm:$0xff] }
 0x7db   :  { %3250 = vmatpush1.msra.mxu0 %v8604_v16  ;;  %3345 = vmatprep.subr.mxu1 %v6644_v38  ;;  %v4789_v38 = vld [vmem:[#allocation2 + $0x1a0] sm:$0xff] }
 0x7dc   :  { %3251 = vmatprep.subr.mxu0 %v8605_v27  ;;  %3346 = vmatpush1.msra.mxu1 %v6648_v0  ;;  %v8610_v0 = vld [vmem:[#allocation55_spill] sm:$0xff]  ;;  %v8618_v27 = vld [vmem:[#allocation112_spill] sm:$0xff] }
 0x7dd   :  { %3252 = vmatpush1.msra.mxu0 %v8606_v3  ;;  %3347 = vmatprep.subr.mxu1 %v6652_v26  ;;  %v4790_v26 = vld [vmem:[#allocation2 + $0x178] sm:$0xff]  ;;  %v4797_v16 = vld [vmem:[#allocation2 + $0xe0] sm:$0xff] }
 0x7de   :  { %3253 = vmatprep.subr.mxu0 %v8607_v2  ;;  %3348 = vmatpush1.msra.mxu1 %v6656_v48  ;;  %v8611_v48 = vld [vmem:[#allocation58_spill] sm:$0xff]  ;;  %v8619_v2 = vld [vmem:[#allocation77_spill] sm:$0xff] }
 0x7df   :  { %3254 = vmatpush1.msra.mxu0 %v7073_v57  ;;  %3349 = vmatprep.subr.mxu1 %v6660_v56  ;;  %v4791_v56 = vld [vmem:[#allocation2 + $0x170] sm:$0xff]  ;;  %v8615_v57 = vld [vmem:[#allocation108_spill] sm:$0xff]  ;;  %v4798_v3 = vld [vmem:[#allocation2 + $0xb8] sm:$0xff] }
 0x7e0   :  { %3255 = vmatprep.subr.mxu0 %v7077_v53  ;;  %3350 = vmatpush1.msra.mxu1 %v6664_v44  ;;  %v4792_v44 = vld [vmem:[#allocation2 + $0x148] sm:$0xff] }
 0x7e1   :  { %3256 = vmatpush1.msra.mxu0 %v7081_v11  ;;  %3351 = vmatprep.subr.mxu1 %v6668_v62  ;;  %v4793_v62 = vld [vmem:[#allocation2 + $0x140] sm:$0xff]  ;;  %v8614_v53 = vld [vmem:[#allocation104_spill] sm:$0xff]  ;;  %v4794_v11 = vld [vmem:[#allocation2 + $0x118] sm:$0xff] }
 0x7e2   :  { %3257 = vmatprep.subr.mxu0 %v8608_v9  ;;  %3352 = vmatpush1.msra.mxu1 %v8609_v13  ;;  %v4799_v9 = vld [vmem:[#allocation2 + $0xb0] sm:$0xff]  ;;  %v8620_v13 = vld [vmem:[#allocation78_spill] sm:$0xff] }
 0x7e3   :  { %3258 = vmatpush1.msra.mxu0 %v4789_v38  ;;  %3353 = vmatprep.subr.mxu1 %v8610_v0  ;;  %v4800_v38 = vld [vmem:[#allocation2 + $0x88] sm:$0xff]  ;;  %v8621_v0 = vld [vmem:[#allocation79_spill] sm:$0xff] }
 0x7e4   :  { %3259 = vmatprep.subr.mxu0 %v4790_v26  ;;  %3354 = vmatpush1.msra.mxu1 %v8611_v48  ;;  %v4801_v26 = vld [vmem:[#allocation2 + $0x80] sm:$0xff]  ;;  %v8622_v48 = vld [vmem:[#allocation80_spill] sm:$0xff] }
 0x7e5   :  { %3260 = vmatpush1.msra.mxu0 %v4791_v56  ;;  %3355 = vmatprep.subr.mxu1 %v8612_v50  ;;  %v4802_v56 = vld [vmem:[#allocation2 + $0x58] sm:$0xff]  ;;  %v8623_v50 = vld [vmem:[#allocation13_spill] sm:$0xff] }
 0x7e6   :  { %3261 = vmatprep.subr.mxu0 %v4792_v44  ;;  %3356 = vmatpush1.msra.mxu1 %v8613_v21  ;;  %v4803_v44 = vld [vmem:[#allocation2 + $0x50] sm:$0xff]  ;;  %v8624_v21 = vld [vmem:[#allocation16_spill] sm:$0xff] }
 0x7e7   :  { %3262 = vmatpush1.msra.mxu0 %v4793_v62  ;;  %3357 = vmatprep.subr.mxu1 %v8614_v53  ;;  %v4804_v62 = vld [vmem:[#allocation2 + $0x28] sm:$0xff]  ;;  %v8625_v53 = vld [vmem:[#allocation15_spill] sm:$0xff] }
 0x7e8   :  { %3263 = vmatprep.subr.mxu0 %v4794_v11  ;;  %3358 = vmatpush1.msra.mxu1 %v8615_v57  ;;  %v4805_v11 = vld [vmem:[#allocation2 + $0x20] sm:$0xff]  ;;  %v8626_v57 = vld [vmem:[#allocation18_spill] sm:$0xff] }
 0x7e9   :  { %3264 = vmatpush1.msra.mxu0 %v4795_v55  ;;  %3359 = vmatprep.subr.mxu1 %v8616_v59  ;;  %v8627_v55 = vld [vmem:[#allocation17_spill] sm:$0xff]  ;;  %v8628_v59 = vld [vmem:[#allocation20_spill] sm:$0xff] }
 0x7ea   :  { %3265 = vmatprep.subr.mxu0 %v4796_v14  ;;  %3360 = vmatpush1.msra.mxu1 %v8617_v6  ;;  %v8629_v14 = vld [vmem:[#allocation19_spill] sm:$0xff]  ;;  %v8630_v6 = vld [vmem:[#allocation22_spill] sm:$0xff] }
 0x7eb   :  { %3266 = vmatpush1.msra.mxu0 %v4797_v16  ;;  %3361 = vmatprep.subr.mxu1 %v8618_v27  ;;  %v8631_v16 = vld [vmem:[#allocation21_spill] sm:$0xff]  ;;  %v8632_v27 = vld [vmem:[#allocation24_spill] sm:$0xff] }
 0x7ec   :  { %3267 = vmatprep.subr.mxu0 %v4798_v3  ;;  %3362 = vmatpush1.msra.mxu1 %v8619_v2  ;;  %v8633_v3 = vld [vmem:[#allocation23_spill] sm:$0xff]  ;;  %v8634_v2 = vld [vmem:[#allocation26_spill] sm:$0xff] }
 0x7ed   :  { %3268 = vmatpush1.msra.mxu0 %v4799_v9  ;;  %3363 = vmatprep.subr.mxu1 %v8620_v13  ;;  %v8635_v9 = vld [vmem:[#allocation25_spill] sm:$0xff]  ;;  %v8636_v13 = vld [vmem:[#allocation28_spill] sm:$0xff] }
 0x7ee   :  { %3269 = vmatprep.subr.mxu0 %v4800_v38  ;;  %3364 = vmatpush1.msra.mxu1 %v8621_v0  ;;  %v8637_v38 = vld [vmem:[#allocation27_spill] sm:$0xff]  ;;  %v8638_v0 = vld [vmem:[#allocation30_spill] sm:$0xff] }
 0x7ef   :  { %3270 = vmatpush1.msra.mxu0 %v4801_v26  ;;  %3365 = vmatprep.subr.mxu1 %v8622_v48  ;;  %v8639_v26 = vld [vmem:[#allocation29_spill] sm:$0xff]  ;;  %v8640_v48 = vld [vmem:[#allocation32_spill] sm:$0xff] }
 0x7f0   :  { %3271 = vmatprep.subr.mxu0 %v4802_v56  ;;  %3366 = vmatpush1.msra.mxu1 %v8623_v50  ;;  %v8641_v56 = vld [vmem:[#allocation31_spill] sm:$0xff]  ;;  %v8642_v50 = vld [vmem:[#allocation34_spill] sm:$0xff] }
 0x7f1   :  { %3272 = vmatpush1.msra.mxu0 %v4803_v44  ;;  %3367 = vmatprep.subr.mxu1 %v8624_v21  ;;  %v8643_v44 = vld [vmem:[#allocation33_spill] sm:$0xff]  ;;  %v8644_v21 = vld [vmem:[#allocation36_spill] sm:$0xff] }
 0x7f2   :  { %3273 = vmatprep.subr.mxu0 %v4804_v62  ;;  %3368 = vmatpush1.msra.mxu1 %v8625_v53  ;;  %v8645_v62 = vld [vmem:[#allocation35_spill] sm:$0xff] }
 0x7f3   :  { %3274 = vmatpush1.msra.mxu0 %v4805_v11  ;;  %3369 = vmatprep.subr.mxu1 %v8626_v57 }
 0x7f4   :  { %3308 = vmatmul.mubr.f32.vlgmr.msra.gmra.mxu0 %v7210_v37  ;;  %4269 = vmatprep.subr.mxu0 %v7998_v33 }
 0x7f5   :  { %4270 = vmatpush3.msra.mxu0 %v8627_v55  ;;  %3370 = vmatpush1.msra.mxu1 %v8628_v59 }
 0x7f6   :  { %4271 = vmatprep.subr.mxu0 %v7998_v33  ;;  %3403 = vmatprep.mubr.f32.mxu1 %v7998_v33 }
 0x7f7   :  { %4272 = vmatpush3.msra.mxu0 %v8629_v14  ;;  %4301 = vmatprep.mubr.msk.f32.mxu0 %vm4903_vm1, %v7998_v33 }
 0x7f8   :  { %4273 = vmatprep.subr.mxu0 %v7998_v33  ;;  %3502 = vmatprep.subr.mxu1 %v8630_v6  ;;  %v8646_v6 = vld [vmem:[#allocation102_spill] sm:$0xff] }
 0x7f9   :  { %4274 = vmatpush3.msra.mxu0 %v8631_v16  ;;  %v248_v16 = vadd.f32 %v8646_v6, %v8033_v1 }
 0x7fa   :  { %4275 = vmatprep.subr.mxu0 %v7998_v33 }
 0x7fb   :  { %4276 = vmatpush3.msra.mxu0 %v8632_v27 }
 0x7fc   :  { %4277 = vmatprep.subr.mxu0 %v7998_v33 }
 0x7fd   :  { %4278 = vmatpush3.msra.mxu0 %v8633_v3 }
 0x7fe   :  { %4279 = vmatprep.subr.mxu0 %v7998_v33 }
 0x7ff   :  { %4280 = vmatpush3.msra.mxu0 %v8634_v2 }
 0x800   :  { %4281 = vmatprep.subr.mxu0 %v7998_v33 }
 0x801   :  { %4282 = vmatpush3.msra.mxu0 %v8635_v9 }
 0x802   :  { %4283 = vmatprep.subr.mxu0 %v7998_v33 }
 0x803   :  { %4284 = vmatpush3.msra.mxu0 %v8636_v13 }
 0x804   :  { %4285 = vmatprep.subr.mxu0 %v7998_v33 }
 0x805   :  { %4286 = vmatpush3.msra.mxu0 %v8637_v38 }
 0x806   :  { %4287 = vmatprep.subr.mxu0 %v7998_v33 }
 0x807   :  { %4288 = vmatpush3.msra.mxu0 %v8638_v0 }
 0x808   :  { %4289 = vmatprep.subr.mxu0 %v7998_v33 }
 0x809   :  { %4290 = vmatpush3.msra.mxu0 %v8639_v26 }
 0x80a   :  { %4291 = vmatprep.subr.mxu0 %v7998_v33 }
 0x80b   :  { %4292 = vmatpush3.msra.mxu0 %v8640_v48 }
 0x80c   :  { %4293 = vmatprep.subr.mxu0 %v7998_v33 }
 0x80d   :  { %4294 = vmatpush3.msra.mxu0 %v8641_v56 }
 0x80e   :  { %4295 = vmatprep.subr.mxu0 %v7998_v33 }
 0x80f   :  { %4296 = vmatpush3.msra.mxu0 %v8642_v50 }
 0x810   :  { %4297 = vmatprep.subr.mxu0 %v7998_v33 }
 0x811   :  { %4298 = vmatpush3.msra.mxu0 %v8643_v44 }
 0x812   :  { %4299 = vmatprep.subr.mxu0 %v7998_v33 }
 0x813   :  { %4300 = vmatpush3.msra.mxu0 %v8644_v21 }
 0x814   :  { %3573 = vmatprep.subr.mxu0 %v8645_v62 }
 0x872   :  { %v3075_v53 = vpop.f32.mrf.mxu1  ;;  %v3004_v57 = vpop.f32.mrf.mxu0 }
 0x874   :  { %v4268_v11 = vpop.f32.mrf.mxu1  ;;  %v3006_v55 = vpop.f32.mrf.mxu0 }
 0x875   :  { %v8647_v11 = vld [vmem:[#allocation103_spill] sm:$0xff] }
 0x893   :  { %v3167_v59 = vpop.f32.mrf.mxu0  ;;  %v3238_v14 = vpop.f32.mrf.mxu1 }
 0x894   :  { %v3314_v27 = vadd.f32 %v3167_v59, %v5657_v12 }
 0x895   :  { %v3169_v3 = vpop.f32.mrf.mxu0  ;;  %v3240_v2 = vpop.f32.mrf.mxu1 }
 0x896   :  { %v3317_v9 = vadd.f32 %v3314_v27, %v3004_v57  ;;  %v3480_v13 = vadd.f32 %v3240_v2, %v248_v16  ;;  %v3315_v0 = vadd.f32 %v3169_v3, %v5661_v18  ;;  %v250_v57 = vadd.f32 %v8647_v11, %v8034_v24  ;;  %v7347_v27 = vld [vmem:[%s7460_s7] ss:$0 sm:$0xff]  ;;  %v8648_v24 = vld [vmem:[#allocation93_spill] sm:$0xff] }
 0x898   :  { %v3832_v38 = vmul.f32 -1.442695, %v3317_v9  ;;  %v3834_v26 = vmul.f32 -1.442695, %v3480_v13  ;;  %v3318_v48 = vadd.f32 %v3315_v0, %v3006_v55  ;;  %v3331_v55 = vadd.f32 %v7347_v27, %v3075_v53 }
 0x899   :  { %v3316_v0 = vadd.f32 %v3238_v14, %v5674_v52 }
 0x89a   :  { %4481 = vpow2.f32 %v3832_v38  ;;  %v3833_v56 = vmul.f32 -1.442695, %v3318_v48  ;;  %v354_v48 = vadd.f32 %v8648_v24, %v5438_v40  ;;  %v3673_v24 = vld [vmem:[#allocation7 + $0x28] sm:$0xff] }
 0x89b   :  { %4483 = vpow2.f32 %v3834_v26 }
 0x89c   :  { %4485 = vpow2.f32 %v3833_v56 }
 0x8a7   :  { %v4482_v50 = vpop.eup %4481 }
 0x8a8   :  { %v4484_v44 = vpop.eup %4483  ;;  %v3325_v21 = vadd.f32 1.0, %v4482_v50 }
 0x8a9   :  { %v3488_v62 = vadd.f32 1.0, %v4484_v44  ;;  %v4486_v1 = vpop.eup %4485 }
 0x8aa   :  { %4487 = vrcp.f32 %v3325_v21  ;;  %v3326_v59 = vadd.f32 1.0, %v4486_v1 }
 0x8ab   :  { %4489 = vrcp.f32 %v3488_v62 }
 0x8ac   :  { %4491 = vrcp.f32 %v3326_v59  ;;  %v8671_v59 = vld [vmem:[#allocation107_spill] sm:$0xff] }
 0x8b4   :  { %v3309_v6 = vpop.f32.mrf.mxu0 }
 0x8b5   :  { %v3481_v16 = vadd.f32 %v3309_v6, %v250_v57  ;;  %v8672_v6 = vld [vmem:[#allocation113_spill] sm:$0xff] }
 0x8b6   :  { %v3311_v3 = vpop.f32.mrf.mxu0 }
 0x8b7   :  { %v4488_v2 = vpop.eup %4487  ;;  %v3835_v9 = vmul.f32 -1.442695, %v3481_v16  ;;  %v3494_v13 = vadd.f32 %v7172_v29, %v3311_v3  ;;  %v8673_v16 = vld [vmem:[#allocation117_spill] sm:$0xff] }
 0x8b8   :  { %v4490_v38 = vpop.eup %4489  ;;  %v3332_v26 = vmul.f32 %v4488_v2, %v3331_v55  ;;  %v8676_v55 = vld [vmem:[#allocation120_spill] sm:$0xff]  ;;  %v8677_v3 = vld [vmem:[#allocation121_spill] sm:$0xff]  ;;  %v3679_v2 = vld [vmem:[#allocation7 + $0x58] sm:$0xff] }
 0x8b9   :  { %4493 = vpow2.f32 %v3835_v9  ;;  %v3495_v56 = vmul.f32 %v4490_v38, %v3494_v13  ;;  %v4492_v21 = vpop.eup %4491  ;;  %v3678_v9 = vld [vmem:[#allocation7 + $0x50] sm:$0xff]  ;;  %v3677_v13 = vld [vmem:[#allocation7 + $0x48] sm:$0xff]  ;;  %v3676_v38 = vld [vmem:[#allocation7 + $0x40] sm:$0xff] }
 0x8ba   :  { %v3333_v50 = vadd.f32 %v3332_v26, %v3316_v0  ;;  %v3335_v1 = vsub.f32 1.0, %v4492_v21  ;;  %v3337_v57 = vmul.f32 %v4492_v21, %v7179_v32  ;;  %v8655_v32 = vld [vmem:[#allocation61_spill] sm:$0xff]  ;;  %v3675_v0 = vld [vmem:[#allocation7 + $0x38] sm:$0xff]  ;;  %v3668_v21 = vld [vmem:[#allocation7] sm:$0xff] }
 0x8bb   :  { %v3496_v44 = vadd.f32 %v3495_v56, %v354_v48  ;;  %v3674_v26 = vld [vmem:[#allocation7 + $0x30] sm:$0xff]  ;;  %v3672_v48 = vld [vmem:[#allocation7 + $0x20] sm:$0xff]  ;;  %v3671_v56 = vld [vmem:[#allocation7 + $0x18] sm:$0xff] }
 0x8bc   :  { %4495 = vtanh.f32 %v3333_v50  ;;  %v3670_v50 = vld [vmem:[#allocation7 + $0x10] sm:$0xff] }
 0x8c6   :  { %v4494_v53 = vpop.eup %4493 }
 0x8c7   :  { %v3489_v62 = vadd.f32 1.0, %v4494_v53 }
 0x8c9   :  { %v4496_v11 = vpop.eup %4495  ;;  %4497 = vrcp.f32 %v3489_v62 }
 0x8ca   :  { %v3336_v29 = vmul.f32 %v4496_v11, %v3335_v1  ;;  %4499 = vtanh.f32 %v3496_v44  ;;  %v3669_v44 = vld [vmem:[#allocation7 + $0x8] sm:$0xff] }
 0x8cc   :  { %v7355_v14 = vadd.f32 %v3337_v57, %v3336_v29 }
 0x8ce   :  { %3404 = vmatmul.mubr.f32.vlgmr.msra.gmra.mxu1 %v7355_v14  ;;  %4302 = vmatmul.mubr.f32.vlgmr.msra.gmra.mxu0 %v7355_v14 }
 0x8cf   :  { %3503 = vmatpush1.msra.mxu1 %v6836_v23  ;;  %3574 = vmatpush1.msra.mxu0 %v6839_v22 }
 0x8d0   :  { %3504 = vmatprep.subr.mxu1 %v6842_v35  ;;  %3575 = vmatprep.subr.mxu0 %v6845_v61 }
 0x8d1   :  { %3505 = vmatpush1.msra.mxu1 %v6848_v42  ;;  %3576 = vmatpush1.msra.mxu0 %v6851_v10  ;;  %v8649_v42 = vld [vmem:[#allocation96_spill] sm:$0xff] }
 0x8d2   :  { %3506 = vmatprep.subr.mxu1 %v6854_v28  ;;  %3577 = vmatprep.subr.mxu0 %v6857_v47  ;;  %v8650_v28 = vld [vmem:[#allocation97_spill] sm:$0xff]  ;;  %v8651_v47 = vld [vmem:[#allocation92_spill] sm:$0xff] }
 0x8d3   :  { %3507 = vmatpush1.msra.mxu1 %v6860_v30  ;;  %3578 = vmatpush1.msra.mxu0 %v6863_v63  ;;  %v8652_v30 = vld [vmem:[#allocation60_spill] sm:$0xff]  ;;  %v8653_v63 = vld [vmem:[#allocation59_spill] sm:$0xff] }
 0x8d4   :  { %3508 = vmatprep.subr.mxu1 %v6866_v49  ;;  %3579 = vmatprep.subr.mxu0 %v8552_v7  ;;  %v8654_v49 = vld [vmem:[#allocation62_spill] sm:$0xff] }
 0x8d5   :  { %3509 = vmatpush1.msra.mxu1 %v8553_v17  ;;  %3580 = vmatpush1.msra.mxu0 %v8554_v20  ;;  %v8658_v7 = vld [vmem:[#allocation66_spill] sm:$0xff]  ;;  %v8660_v17 = vld [vmem:[#allocation68_spill] sm:$0xff]  ;;  %v8661_v20 = vld [vmem:[#allocation67_spill] sm:$0xff] }
 0x8d6   :  { %v4498_v40 = vpop.eup %4497  ;;  %3510 = vmatprep.subr.mxu1 %v8555_v36  ;;  %3581 = vmatprep.subr.mxu0 %v8556_v43  ;;  %v8662_v36 = vld [vmem:[#allocation70_spill] sm:$0xff]  ;;  %v8663_v43 = vld [vmem:[#allocation69_spill] sm:$0xff] }
 0x8d7   :  { %3511 = vmatpush1.msra.mxu1 %v8557_v60  ;;  %3582 = vmatpush1.msra.mxu0 %v8558_v31  ;;  %v3498_v23 = vsub.f32 1.0, %v4498_v40  ;;  %v4500_v22 = vpop.eup %4499  ;;  %v3500_v61 = vmul.f32 %v4498_v40, %v7210_v37  ;;  %v8664_v60 = vld [vmem:[#allocation72_spill] sm:$0xff]  ;;  %v8665_v31 = vld [vmem:[#allocation71_spill] sm:$0xff]  ;;  %v8670_v37 = vld [vmem:[#allocation106_spill] sm:$0xff] }
 0x8d8   :  { %3512 = vmatprep.subr.mxu1 %v8559_v8  ;;  %3583 = vmatprep.subr.mxu0 %v8560_v19  ;;  %v8666_v8 = vld [vmem:[#allocation74_spill] sm:$0xff]  ;;  %v8667_v19 = vld [vmem:[#allocation73_spill] sm:$0xff] }
 0x8d9   :  { %3513 = vmatpush1.msra.mxu1 %v8561_v45  ;;  %3584 = vmatpush1.msra.mxu0 %v8562_v39  ;;  %v3499_v35 = vmul.f32 %v4500_v22, %v3498_v23  ;;  %v8668_v45 = vld [vmem:[#allocation75_spill] sm:$0xff]  ;;  %v8669_v39 = vld [vmem:[#allocation105_spill] sm:$0xff] }
 0x8da   :  { %3514 = vmatprep.subr.mxu1 %v6903_v58  ;;  %3585 = vmatprep.subr.mxu0 %v6906_v5  ;;  %v8656_v58 = vld [vmem:[#allocation64_spill] sm:$0xff]  ;;  %v8657_v5 = vld [vmem:[#allocation63_spill] sm:$0xff] }
 0x8db   :  { %3515 = vmatpush1.msra.mxu1 %v8649_v42  ;;  %3586 = vmatpush1.msra.mxu0 %v6912_v46  ;;  %v3501_v10 = vadd.f32 %v3500_v61, %v3499_v35  ;;  %v8659_v46 = vld [vmem:[#allocation65_spill] sm:$0xff] }
 0x8dc   :  { %3516 = vmatprep.subr.mxu1 %v8650_v28  ;;  %3587 = vmatprep.subr.mxu0 %v8651_v47 }
 0x8dd   :  { %3517 = vmatpush1.msra.mxu1 %v8652_v30  ;;  %3588 = vmatpush1.msra.mxu0 %v8653_v63 }
 0x8de   :  { %3518 = vmatprep.subr.mxu1 %v8654_v49  ;;  %3589 = vmatprep.subr.mxu0 %v8655_v32 }
 0x8df   :  { %3519 = vmatpush1.msra.mxu1 %v8656_v58  ;;  %3590 = vmatpush1.msra.mxu0 %v8657_v5 }
 0x8e0   :  { %3520 = vmatprep.subr.mxu1 %v8658_v7  ;;  %3591 = vmatprep.subr.mxu0 %v8659_v46 }
 0x8e1   :  { %3521 = vmatpush1.msra.mxu1 %v8660_v17  ;;  %3592 = vmatpush1.msra.mxu0 %v8661_v20 }
 0x8e2   :  { %3522 = vmatprep.subr.mxu1 %v8662_v36  ;;  %3593 = vmatprep.subr.mxu0 %v8663_v43  ;;  %v3838_v43 = vld [vmem:[%s7462_s9] ss:$0 sm:$0xff]  ;;  %s4867_s9 = scalar_lea.vmem %s3779_s8, 128 }
 0x8e3   :  { %3523 = vmatpush1.msra.mxu1 %v8664_v60  ;;  %3594 = vmatpush1.msra.mxu0 %v8665_v31  ;;  %p4868_p1 = scmp.ne.s32.totalorder %s3779_s8, %s4867_s9  ;;  %p4873_p3 = scmp.lt.s32.totalorder %s4867_s9, %s4867_s9 }
 0x8e4   :  { %3524 = vmatprep.subr.mxu1 %v8666_v8  ;;  %3595 = vmatprep.subr.mxu0 %v8667_v19 }
 0x8e5   :  { %3525 = vmatpush1.msra.mxu1 %v8668_v45  ;;  %3596 = vmatpush1.msra.mxu0 %v8582_v15  ;;  %v8674_v15 = vld [vmem:[#allocation118_spill] sm:$0xff]  ;;  %p4874_p4 = por %p4873_p3, %p4872_p2 }
 0x8e6   :  { %3526 = vmatprep.subr.mxu1 %v8583_v34  ;;  %3597 = vmatprep.subr.mxu0 %v8669_v39  ;;  %v8675_v34 = vld [vmem:[#allocation119_spill] sm:$0xff] }
 0x8e7   :  { %3527 = vmatpush1.msra.mxu1 %v8670_v37  ;;  %3598 = vmatpush1.msra.mxu0 %v8671_v59  ;;  %p4875_p5 = pnand %p4874_p4, %p4868_p1 }
 0x8e8   :  { %3528 = vmatprep.subr.mxu1 %v8587_v41  ;;  %3599 = vmatprep.subr.mxu0 %v8672_v6  ;;  %v8678_v41 = vld [vmem:[#allocation122_spill] sm:$0xff] }
 0x8e9   :  { %3529 = vmatpush1.msra.mxu1 %v8589_v4  ;;  %3600 = vmatpush1.msra.mxu0 %v8590_v54  ;;  %v3682_v4 = vld [vmem:[#allocation7 + $0x70] sm:$0xff]  ;;  %v3681_v54 = vld [vmem:[#allocation7 + $0x68] sm:$0xff] }
 0x8ea   :  { %3530 = vmatprep.subr.mxu1 %v8591_v51  ;;  %3601 = vmatprep.subr.mxu0 %v8673_v16  ;;  %v3680_v51 = vld [vmem:[#allocation7 + $0x60] sm:$0xff] }
 0x8eb   :  { %3531 = vmatpush1.msra.mxu1 %v7007_v25  ;;  %3602 = vmatpush1.msra.mxu0 %v8674_v15  ;;  %v3683_v25 = vld [vmem:[#allocation7 + $0x78] sm:$0xff] }
 0x8ec   :  { %3532 = vmatprep.subr.mxu1 %v8675_v34  ;;  %3603 = vmatprep.subr.mxu0 %v8676_v55 }
 0x8ed   :  { %3533 = vmatpush1.msra.mxu1 %v8677_v3  ;;  %3566 = vmatprep.mubr.f32.mxu1 %v7998_v33 }
 0x8ee   :  { %3604 = vmatpush1.msra.mxu0 %v8678_v41  ;;  %3637 = vmatprep.mubr.f32.mxu0 %v7998_v33 }
 0x8ef   :  { %3567 = vmatmul.mubr.f32.vlgmr.msra.gmra.mxu1 %v3501_v10  ;;  %3638 = vmatmul.mubr.f32.vlgmr.msra.gmra.mxu0 %v3501_v10 }
 0x8f0   :  { %4304 = vmatprep.subr.mxu1 %v7998_v33  ;;  %4336 = vmatprep.mubr.msk.f32.mxu1 %vm4903_vm1, %v7998_v33 }
 0x8f1   :  { %4305 = vmatpush3.msra.mxu1 %v3683_v25 }
 0x8f2   :  { %4306 = vmatprep.subr.mxu1 %v7998_v33 }
 0x8f3   :  { %4307 = vmatpush3.msra.mxu1 %v3682_v4 }
 0x8f4   :  { %4308 = vmatprep.subr.mxu1 %v7998_v33 }
 0x8f5   :  { %4309 = vmatpush3.msra.mxu1 %v3681_v54 }
 0x8f6   :  { %4310 = vmatprep.subr.mxu1 %v7998_v33 }
 0x8f7   :  { %4311 = vmatpush3.msra.mxu1 %v3680_v51 }
 0x8f8   :  { %4312 = vmatprep.subr.mxu1 %v7998_v33 }
 0x8f9   :  { %4313 = vmatpush3.msra.mxu1 %v3679_v2 }
 0x8fa   :  { %4314 = vmatprep.subr.mxu1 %v7998_v33 }
 0x8fb   :  { %4315 = vmatpush3.msra.mxu1 %v3678_v9 }
 0x8fc   :  { %4316 = vmatprep.subr.mxu1 %v7998_v33 }
 0x8fd   :  { %4317 = vmatpush3.msra.mxu1 %v3677_v13 }
 0x8fe   :  { %4318 = vmatprep.subr.mxu1 %v7998_v33 }
 0x8ff   :  { %4319 = vmatpush3.msra.mxu1 %v3676_v38 }
 0x900   :  { %4320 = vmatprep.subr.mxu1 %v7998_v33 }
 0x901   :  { %4321 = vmatpush3.msra.mxu1 %v3675_v0 }
 0x902   :  { %4322 = vmatprep.subr.mxu1 %v7998_v33 }
 0x903   :  { %4323 = vmatpush3.msra.mxu1 %v3674_v26 }
 0x904   :  { %4324 = vmatprep.subr.mxu1 %v7998_v33 }
 0x905   :  { %4325 = vmatpush3.msra.mxu1 %v3673_v24 }
 0x906   :  { %4326 = vmatprep.subr.mxu1 %v7998_v33 }
 0x907   :  { %4327 = vmatpush3.msra.mxu1 %v3672_v48 }
 0x908   :  { %4328 = vmatprep.subr.mxu1 %v7998_v33 }
 0x909   :  { %4329 = vmatpush3.msra.mxu1 %v3671_v56 }
 0x90a   :  { %4330 = vmatprep.subr.mxu1 %v7998_v33 }
 0x90b   :  { %4331 = vmatpush3.msra.mxu1 %v3670_v50 }
 0x90c   :  { %4332 = vmatprep.subr.mxu1 %v7998_v33 }
 0x90d   :  { %4333 = vmatpush3.msra.mxu1 %v3669_v44 }
 0x90e   :  { %4334 = vmatprep.subr.mxu1 %v7998_v33 }
 0x90f   :  { %4335 = vmatpush3.msra.mxu1 %v3668_v21 }
 0x98e   :  { %v3476_v53 = vpop.f32.mrf.mxu0  ;;  %v3405_v1 = vpop.f32.mrf.mxu1 }
 0x98f   :  { %v3660_v49 = vadd.f32 %v7347_v27, %v3476_v53 }
 0x990   :  { %v4303_v62 = vpop.f32.mrf.mxu0  ;;  %v3407_v11 = vpop.f32.mrf.mxu1 }
 0x9af   :  { %v3568_v29 = vpop.f32.mrf.mxu1  ;;  %v3639_v57 = vpop.f32.mrf.mxu0 }
 0x9b0   :  { %v3643_v40 = vadd.f32 %v3568_v29, %v5657_v12  ;;  %v3645_v12 = vadd.f32 %v3639_v57, %v5674_v52 }
 0x9b1   :  { %v3570_v23 = vpop.f32.mrf.mxu1  ;;  %v3641_v22 = vpop.f32.mrf.mxu0 }
 0x9b2   :  { %v3646_v35 = vadd.f32 %v3643_v40, %v3405_v1  ;;  %v3644_v42 = vadd.f32 %v3570_v23, %v5661_v18 }
 0x9b4   :  { %v3836_v61 = vmul.f32 -1.442695, %v3646_v35  ;;  %v3647_v10 = vadd.f32 %v3644_v42, %v3407_v11 }
 0x9b6   :  { %4501 = vpow2.f32 %v3836_v61  ;;  %v3837_v28 = vmul.f32 -1.442695, %v3647_v10 }
 0x9b8   :  { %4503 = vpow2.f32 %v3837_v28 }
 0x9c3   :  { %v4502_v33 = vpop.eup %4501 }
 0x9c4   :  { %v3654_v47 = vadd.f32 1.0, %v4502_v33 }
 0x9c5   :  { %v4504_v30 = vpop.eup %4503 }
 0x9c6   :  { %4505 = vrcp.f32 %v3654_v47  ;;  %v3655_v63 = vadd.f32 1.0, %v4504_v30 }
 0x9c8   :  { %4507 = vrcp.f32 %v3655_v63 }
 0x9d3   :  { %v4506_v32 = vpop.eup %4505 }
 0x9d4   :  { %v3661_v58 = vmul.f32 %v4506_v32, %v3660_v49 }
 0x9d5   :  { %v4508_v7 = vpop.eup %4507 }
 0x9d6   :  { %v3662_v5 = vadd.f32 %v3661_v58, %v3645_v12  ;;  %v3664_v18 = vsub.f32 1.0, %v4508_v7  ;;  %v3666_v20 = vmul.f32 %v4508_v7, %v7355_v14 }
 0x9d8   :  { %4509 = vtanh.f32 %v3662_v5 }
 0x9e5   :  { %v4510_v46 = vpop.eup %4509 }
 0x9e6   :  { %v3665_v17 = vmul.f32 %v4510_v46, %v3664_v18 }
 0x9e8   :  { %v3667_v36 = vadd.f32 %v3666_v20, %v3665_v17 }
 0x9ea   :  { %4337 = vmatmul.mubr.f32.vlgmr.msra.gmra.mxu1 %v3667_v36 }
 0xaaa   :  { %v3757_v27 = vpop.f32.mrf.mxu1 }
 0xaab   :  { %v3758_v60 = vadd.f32 %v3838_v43, %v3757_v27 }
 0xaac   :  { %v4338_v31 = vpop.f32.mrf.mxu1 }
 0xaad   :  { %3761 = vmax.xlane.f32.xlu0 %v3758_v60 }
 0xb36   :  { %v3762_v52 = vpop.xlane.xlu0 %3761 }
 0xb37   :  { %v3763_v8 = vsub.f32 %v3758_v60, %v3762_v52 }
 0xb39   :  { %v3764_v19 = vmul.f32 1.442695, %v3763_v8 }
 0xb3b   :  { %4511 = vpow2.f32 %v3764_v19 }
 0xb48   :  { %v4512_v45 = vpop.eup %4511 }
 0xb49   :  { %3766 = vadd.xlane.f32.xlu0 %v4512_v45 }
 0xbd2   :  { %v3767_v39 = vpop.xlane.xlu0 %3766 }
 0xbd3   :  { %4513 = vlog2.f32 %v3767_v39 }
 0xbe0   :  { %v4514_v37 = vpop.eup %4513 }
 0xbe1   :  { %v3769_v14 = vmul.f32 0.6931472, %v4514_v37 }
 0xbe3   :  { %v3770_v59 = vsub.f32 %v3763_v8, %v3769_v14 }
 0xbe5   :  { %3771 = vst [vmem:[#allocation8] sm:$0xff] %v3770_v59 }
 0xbe6   :  { %4878 = shalt.err (!%p4875_p5)
}
 0xbe7   :  { %3781 = dma.vmem_to_hbm [thread:$0]  %s3779_s8, 128, %s7463_s10, [#allocation4]  }
 0xbe8   :  { %4891 = dma.done.wait [#allocation4], 128  }
 0xbe9   :  { %4892 = vsyncadd [#allocation4], 4294967168 }
 0xbea   :  { %3785 = vsyncpa [#allocation3], 1 }
 0xbeb   :  { %3786 = vsyncpa [#allocation6], 1 }
 0xbec   :  { %3787 = vsyncpa [#allocation4], 1 }

</bundles_post_ra>
